<compile_context>
chip_gen: v5e
topology: v5e:2x2
jax: 0.10.0
libtpu: 0.0.40
codegen_flags: <defaults>
</compile_context>

<pallas_src>
import jax
import jax.numpy as jnp
from jax import lax
from jax.experimental import pallas as pl
from jax.experimental.pallas import tpu as pltpu

HIDDEN = 768          # BERT hidden size (pooler_output dim)
FC1 = 512             # fc1 output dim
NUM_CLASSES = 2       # fc2 output dim
CLS_PAD = 128         # class dim padded to full lane width for TPU stores
NEG_BIG = -1e30       # finite "minus infinity" for padded class lanes


def bert_head_kernel(cls_ref, wp_ref, bp_ref, w1_ref, b1_ref, w2_ref, b2_ref,
                     out_ref):
    # ---- BERT pooler: tanh(cls @ Wp + bp) --------------------------------
    cls = cls_ref[...]                                          # bf16 [TB, 768]
    pooled = jnp.tanh(
        jnp.dot(cls, wp_ref[...], preferred_element_type=jnp.float32)
        + bp_ref[...])                                          # f32 [TB, 768]

    # ---- fc1 + ReLU (bf16 operands, f32 MXU accumulate) ------------------
    h = jnp.dot(pooled.astype(jnp.bfloat16), w1_ref[...],
                preferred_element_type=jnp.float32) + b1_ref[...]  # [TB, 512]
    h = jnp.maximum(h, 0.0)

    # ---- dropout(p=0.1): identity in eval mode (PyTorch .eval()) ---------
    # (training-mode stochastic dropout would use pltpu.prng_random_bits)

    # ---- fc2 (class dim padded to 128 lanes, lane-dense store) -----------
    logits = jnp.dot(h.astype(jnp.bfloat16), w2_ref[...],
                     preferred_element_type=jnp.float32) + b2_ref[...]  # [TB,128]

    # mask padded class columns with a large finite negative (robust: no -inf
    # arithmetic anywhere, exp underflows cleanly to 0)
    valid = lax.broadcasted_iota(jnp.int32, logits.shape, 1) < NUM_CLASSES
    logits = jnp.where(valid, logits, jnp.float32(NEG_BIG))

    # ---- LogSoftmax over dim=1 (class axis) ------------------------------
    m = jnp.max(logits, axis=-1, keepdims=True)
    lse = jnp.log(jnp.sum(jnp.exp(logits - m), axis=-1, keepdims=True)) + m
    out_ref[...] = jnp.where(valid, logits - lse, 0.0)


def _batch_tiling(batch):
    """Pad batch to a TPU-friendly size and pick a batch tile."""
    b_pad8 = ((batch + 7) // 8) * 8          # sublane multiple
    if b_pad8 <= 128:
        return b_pad8, b_pad8                # single tile for small batches
    tb = 128
    b_pad = ((batch + tb - 1) // tb) * tb
    return b_pad, tb


def bert_arch_forward(sent_id, mask, params):
    """Forward pass of BERT_Arch (eval mode)."""
    B, _ = sent_id.shape
    del mask  # attention mask is consumed by the real BERT encoder

    # --- glue: synthetic BERT encoder stand-in ----------------------------
    # TODO(synk): full pretrained BERT transformer stack has no in-script
    # Pallas equivalent; gather only the [CLS] token embedding instead
    # (avoids materializing a [B, S, 768] intermediate).
    cls_hs_in = params["embedding"][sent_id[:, 0]].astype(jnp.bfloat16)  # [B,768]

    B_pad, TB = _batch_tiling(B)
    if B_pad != B:
        cls_hs_in = jnp.pad(cls_hs_in, ((0, B_pad - B), (0, 0)))

    # weights / biases: same block for every grid step -> stay VMEM-resident
    def weight_spec(shape):
        return pl.BlockSpec(shape, lambda i: (0,) * len(shape))

    out_padded = pl.pallas_call(
        bert_head_kernel,
        out_shape=jax.ShapeDtypeStruct((B_pad, CLS_PAD), jnp.float32),
        grid=(B_pad // TB,),
        in_specs=[
            pl.BlockSpec((TB, HIDDEN), lambda i: (i, 0)),   # cls hidden states
            weight_spec((HIDDEN, HIDDEN)),                  # pooler weight (in,out) bf16
            weight_spec((1, HIDDEN)),                       # pooler bias f32
            weight_spec((HIDDEN, FC1)),                     # fc1 weight bf16
            weight_spec((1, FC1)),                          # fc1 bias f32
            weight_spec((FC1, CLS_PAD)),                    # fc2 weight bf16 (padded)
            weight_spec((1, CLS_PAD)),                      # fc2 bias f32 (padded)
        ],
        out_specs=pl.BlockSpec((TB, CLS_PAD), lambda i: (i, 0)),
        compiler_params=pltpu.CompilerParams(
            dimension_semantics=("parallel",)),
    )(cls_hs_in,
      params["pooler_w"], params["pooler_b"],
      params["fc1_w"], params["fc1_b"],
      params["fc2_w"], params["fc2_b"])

    return out_padded[:B, :NUM_CLASSES]                      # [B, 2] log-probs


def init_params(key, vocab_size=100):
    """Deterministic parameter init matching the module's layer shapes."""
    ks = jax.random.split(key, 7)
    scale = 0.02

    def norm(k, shape, dtype=jnp.float32):
        return (scale * jax.random.normal(k, shape)).astype(dtype)

    # PyTorch nn.Linear(768, 512) weight is [512, 768]; we store transposed
    # (in_features, out_features) so the kernel computes x @ W.
    fc1_w_pt = scale * jax.random.normal(ks[0], (FC1, HIDDEN))
    fc2_w_pt = scale * jax.random.normal(ks[1], (NUM_CLASSES, FC1))
    fc2_w = jnp.zeros((FC1, CLS_PAD), jnp.float32).at[:, :NUM_CLASSES].set(
        fc2_w_pt.T)
    fc2_b = jnp.zeros((1, CLS_PAD), jnp.float32).at[0, :NUM_CLASSES].set(
        scale * jax.random.normal(ks[2], (NUM_CLASSES,)))

    return {
        "embedding": norm(ks[3], (vocab_size, HIDDEN)),                 # f32
        "pooler_w": norm(ks[4], (HIDDEN, HIDDEN), jnp.bfloat16),        # bf16
        "pooler_b": norm(ks[5], (1, HIDDEN)),                           # f32
        "fc1_w": fc1_w_pt.T.astype(jnp.bfloat16),                       # [768,512] bf16
        "fc1_b": norm(ks[6], (1, FC1)),                                 # f32
        "fc2_w": fc2_w.astype(jnp.bfloat16),                            # [512,128] bf16
        "fc2_b": fc2_b,                                                 # [1,128] f32
    }


if __name__ == "__main__":
    key = jax.random.PRNGKey(0)
    k_tok, k_param = jax.random.split(key)

    B, S, VOCAB = 8, 16, 100
    sent_id = jax.random.randint(k_tok, (B, S), 0, VOCAB, dtype=jnp.int32)
    mask = jnp.ones((B, S), dtype=jnp.int32)

    params = init_params(k_param, vocab_size=VOCAB)

    log_probs = jax.block_until_ready(bert_arch_forward(sent_id, mask, params))

    assert log_probs.shape == (B, NUM_CLASSES)
    # sanity: rows of a log-softmax exponentiate-sum to 1
    assert jnp.allclose(jnp.exp(log_probs).sum(axis=1), 1.0, atol=1e-5)
    print("KERNEL_OK")
</pallas_src>

<mosaic_0001>
module attributes {stable_mosaic.version = 11 : i64} {
  func.func @bert_head_kernel(%arg0: i32, %arg1: memref<8x768xbf16, #tpu.memory_space<vmem>>, %arg2: memref<768x768xbf16, #tpu.memory_space<vmem>>, %arg3: memref<1x768xf32, #tpu.memory_space<vmem>>, %arg4: memref<768x512xbf16, #tpu.memory_space<vmem>>, %arg5: memref<1x512xf32, #tpu.memory_space<vmem>>, %arg6: memref<512x128xbf16, #tpu.memory_space<vmem>>, %arg7: memref<1x128xf32, #tpu.memory_space<vmem>>, %arg8: memref<8x128xf32, #tpu.memory_space<vmem>>) attributes {dimension_semantics = [#tpu.dimension_semantics<parallel>], iteration_bounds = array<i64: 1>, scalar_prefetch = 0 : i64, scratch_operands = 0 : i64, tpu.core_type = #tpu.core_type<tc>, window_params = [{transform_indices = @transform_0, window_bounds = array<i64: 8, 768>}, {pipeline_mode = #tpu.pipeline_mode<synchronous>, transform_indices = @transform_1, window_bounds = array<i64: 768, 768>}, {pipeline_mode = #tpu.pipeline_mode<synchronous>, transform_indices = @transform_2, window_bounds = array<i64: 1, 768>}, {pipeline_mode = #tpu.pipeline_mode<synchronous>, transform_indices = @transform_3, window_bounds = array<i64: 768, 512>}, {pipeline_mode = #tpu.pipeline_mode<synchronous>, transform_indices = @transform_4, window_bounds = array<i64: 1, 512>}, {pipeline_mode = #tpu.pipeline_mode<synchronous>, transform_indices = @transform_5, window_bounds = array<i64: 512, 128>}, {pipeline_mode = #tpu.pipeline_mode<synchronous>, transform_indices = @transform_6, window_bounds = array<i64: 1, 128>}, {transform_indices = @transform_7, window_bounds = array<i64: 8, 128>}]} {
    %c0 = arith.constant 0 : index
    %c0_0 = arith.constant 0 : index
    %0 = vector.load %arg1[%c0, %c0_0] : memref<8x768xbf16, #tpu.memory_space<vmem>>, vector<8x768xbf16>
    %c0_1 = arith.constant 0 : index
    %c0_2 = arith.constant 0 : index
    %1 = vector.load %arg2[%c0_1, %c0_2] : memref<768x768xbf16, #tpu.memory_space<vmem>>, vector<768x768xbf16>
    %cst = arith.constant dense<0.000000e+00> : vector<8x768xf32>
    %2 = tpu.matmul %0, %1, %cst {dimension_numbers = #tpu.dot_dimension_numbers<[1], [0], [0], [1], [0, 0, 1, 1], [], []>} : vector<8x768xbf16>, vector<768x768xbf16>, vector<8x768xf32> -> vector<8x768xf32>
    %c0_3 = arith.constant 0 : index
    %c0_4 = arith.constant 0 : index
    %3 = vector.load %arg3[%c0_3, %c0_4] : memref<1x768xf32, #tpu.memory_space<vmem>>, vector<1x768xf32>
    %4 = vector.broadcast %3 : vector<1x768xf32> to vector<8x768xf32>
    %5 = arith.addf %2, %4 : vector<8x768xf32>
    %6 = math.tanh %5 : vector<8x768xf32>
    %7 = arith.truncf %6 : vector<8x768xf32> to vector<8x768xbf16>
    %c0_5 = arith.constant 0 : index
    %c0_6 = arith.constant 0 : index
    %8 = vector.load %arg4[%c0_5, %c0_6] : memref<768x512xbf16, #tpu.memory_space<vmem>>, vector<768x512xbf16>
    %cst_7 = arith.constant dense<0.000000e+00> : vector<8x512xf32>
    %9 = tpu.matmul %7, %8, %cst_7 {dimension_numbers = #tpu.dot_dimension_numbers<[1], [0], [0], [1], [0, 0, 1, 1], [], []>} : vector<8x768xbf16>, vector<768x512xbf16>, vector<8x512xf32> -> vector<8x512xf32>
    %c0_8 = arith.constant 0 : index
    %c0_9 = arith.constant 0 : index
    %10 = vector.load %arg5[%c0_8, %c0_9] : memref<1x512xf32, #tpu.memory_space<vmem>>, vector<1x512xf32>
    %11 = vector.broadcast %10 : vector<1x512xf32> to vector<8x512xf32>
    %12 = arith.addf %9, %11 : vector<8x512xf32>
    %cst_10 = arith.constant 0.000000e+00 : f32
    %13 = vector.broadcast %cst_10 : f32 to vector<8x512xf32>
    %14 = arith.maximumf %12, %13 : vector<8x512xf32>
    %15 = arith.truncf %14 : vector<8x512xf32> to vector<8x512xbf16>
    %c0_11 = arith.constant 0 : index
    %c0_12 = arith.constant 0 : index
    %16 = vector.load %arg6[%c0_11, %c0_12] : memref<512x128xbf16, #tpu.memory_space<vmem>>, vector<512x128xbf16>
    %cst_13 = arith.constant dense<0.000000e+00> : vector<8x128xf32>
    %17 = tpu.matmul %15, %16, %cst_13 {dimension_numbers = #tpu.dot_dimension_numbers<[1], [0], [0], [1], [0, 0, 1, 1], [], []>} : vector<8x512xbf16>, vector<512x128xbf16>, vector<8x128xf32> -> vector<8x128xf32>
    %c0_14 = arith.constant 0 : index
    %c0_15 = arith.constant 0 : index
    %18 = vector.load %arg7[%c0_14, %c0_15] : memref<1x128xf32, #tpu.memory_space<vmem>>, vector<1x128xf32>
    %19 = vector.broadcast %18 : vector<1x128xf32> to vector<8x128xf32>
    %20 = arith.addf %17, %19 : vector<8x128xf32>
    %21 = tpu.iota {dimensions = array<i32: 1>} : vector<8x128xi32>
    %c2_i32 = arith.constant 2 : i32
    %22 = vector.broadcast %c2_i32 : i32 to vector<8x128xi32>
    %23 = arith.cmpi slt, %21, %22 : vector<8x128xi32>
    %cst_16 = arith.constant -1.000000e+30 : f32
    %24 = vector.broadcast %cst_16 : f32 to vector<8x128xf32>
    %25 = arith.select %23, %20, %24 : vector<8x128xi1>, vector<8x128xf32>
    %cst_17 = arith.constant dense<0xFF800000> : vector<8xf32>
    %26 = vector.multi_reduction <maximumf>, %25, %cst_17 [1] : vector<8x128xf32> to vector<8xf32>
    %27 = vector.shape_cast %26 : vector<8xf32> to vector<8x1xf32>
    %28 = vector.broadcast %27 : vector<8x1xf32> to vector<8x128xf32>
    %29 = arith.subf %25, %28 : vector<8x128xf32>
    %30 = math.exp %29 : vector<8x128xf32>
    %cst_18 = arith.constant dense<0.000000e+00> : vector<8xf32>
    %31 = vector.multi_reduction <add>, %30, %cst_18 [1] : vector<8x128xf32> to vector<8xf32>
    %32 = vector.shape_cast %31 : vector<8xf32> to vector<8x1xf32>
    %33 = math.log %32 : vector<8x1xf32>
    %34 = arith.addf %33, %27 : vector<8x1xf32>
    %35 = vector.broadcast %34 : vector<8x1xf32> to vector<8x128xf32>
    %36 = arith.subf %25, %35 : vector<8x128xf32>
    %cst_19 = arith.constant 0.000000e+00 : f32
    %37 = vector.broadcast %cst_19 : f32 to vector<8x128xf32>
    %38 = arith.select %23, %36, %37 : vector<8x128xi1>, vector<8x128xf32>
    %c0_20 = arith.constant 0 : index
    %c0_21 = arith.constant 0 : index
    %39 = vector.load %arg8[%c0_20, %c0_21] : memref<8x128xf32, #tpu.memory_space<vmem>>, vector<8x128xf32>
    tpu.vector_store %arg8[%c0_20, %c0_21], %38 {strides = array<i32>} : memref<8x128xf32, #tpu.memory_space<vmem>>, vector<8x128xf32>,
    return
  }
  func.func @transform_0(%arg0: i32) -> (i32, i32) {
    %c0_i32 = arith.constant 0 : i32
    %c0_i32_0 = arith.constant 0 : i32
    return %arg0, %c0_i32 : i32, i32
  }
  func.func @transform_1(%arg0: i32) -> (i32, i32) {
    %c0_i32 = arith.constant 0 : i32
    %c0_i32_0 = arith.constant 0 : i32
    %c0_i32_1 = arith.constant 0 : i32
    return %c0_i32, %c0_i32_0 : i32, i32
  }
  func.func @transform_2(%arg0: i32) -> (i32, i32) {
    %c0_i32 = arith.constant 0 : i32
    %c0_i32_0 = arith.constant 0 : i32
    %c0_i32_1 = arith.constant 0 : i32
    return %c0_i32, %c0_i32_0 : i32, i32
  }
  func.func @transform_3(%arg0: i32) -> (i32, i32) {
    %c0_i32 = arith.constant 0 : i32
    %c0_i32_0 = arith.constant 0 : i32
    %c0_i32_1 = arith.constant 0 : i32
    return %c0_i32, %c0_i32_0 : i32, i32
  }
  func.func @transform_4(%arg0: i32) -> (i32, i32) {
    %c0_i32 = arith.constant 0 : i32
    %c0_i32_0 = arith.constant 0 : i32
    %c0_i32_1 = arith.constant 0 : i32
    return %c0_i32, %c0_i32_0 : i32, i32
  }
  func.func @transform_5(%arg0: i32) -> (i32, i32) {
    %c0_i32 = arith.constant 0 : i32
    %c0_i32_0 = arith.constant 0 : i32
    %c0_i32_1 = arith.constant 0 : i32
    return %c0_i32, %c0_i32_0 : i32, i32
  }
  func.func @transform_6(%arg0: i32) -> (i32, i32) {
    %c0_i32 = arith.constant 0 : i32
    %c0_i32_0 = arith.constant 0 : i32
    %c0_i32_1 = arith.constant 0 : i32
    return %c0_i32, %c0_i32_0 : i32, i32
  }
  func.func @transform_7(%arg0: i32) -> (i32, i32) {
    %c0_i32 = arith.constant 0 : i32
    %c0_i32_0 = arith.constant 0 : i32
    return %arg0, %c0_i32 : i32, i32
  }
}

</mosaic_0001>

<bundles_post_ra>
// kernel: tpu_custom_call.1
= control target key start
LH: loop header
LB: loop body
LE: loop exit
PB: predicated region body
PF: predicated region fallthrough
CT: control target
= control target key end

     0   :  { %12 = vsyncpa [#allocation3], 0  ;;  %s7242_s0 = inlined_call_operand.hbm [shape: bf16[8,768], index: 0, kind: input, shape index: {}]   ;;  %s7243_s1 = inlined_call_operand.hbm [shape: bf16[768,768], index: 1, kind: input, shape index: {}]   ;;  %s7244_s2 = inlined_call_operand.hbm [shape: f32[1,768], index: 2, kind: input, shape index: {}]   ;;  %s7245_s3 = inlined_call_operand.hbm [shape: bf16[768,512], index: 3, kind: input, shape index: {}]   ;;  %s7246_s4 = inlined_call_operand.hbm [shape: f32[1,512], index: 4, kind: input, shape index: {}]   ;;  %s7247_s5 = inlined_call_operand.hbm [shape: bf16[512,128], index: 5, kind: input, shape index: {}]   ;;  %s7248_s6 = inlined_call_operand.hbm [shape: f32[1,128], index: 6, kind: input, shape index: {}]   ;;  %s7249_s7 = inlined_call_operand.hbm [shape: f32[8,128], index: 7, kind: output, shape index: {}]  }
   0x1   :  { %13 = vsyncpa [#allocation6], 0 }
   0x2   :  { %14 = vsyncpa [#allocation9], 0 }
   0x3   :  { %15 = vsyncpa [#allocation12], 0  ;;  %s32_s26 = sshll.u32 %s7243_s1, 4  ;;  %s33_s26 = int_to_ptr.hbm [resolvable:$true] %s32_s26 }
   0x4   :  { %16 = vsyncpa [#allocation4], 0  ;;  %s6999_s27 = smov [#allocation5]   ;;  %s56_s8 = sshll.u32 %s7245_s3, 4  ;;  %s57_s8 = int_to_ptr.hbm [resolvable:$true] %s56_s8 }
   0x5   :  { %s34_s28 = sshll.u32 %s6999_s27, 4  ;;  %s7000_s9 = smov 384   ;;  %s35_s28 = int_to_ptr.vmem [resolvable:$true] %s34_s28 }
   0x6   :  { %s7001_s10 = smov 24   ;;  %s7002_s11 = smov [#allocation8]  }
   0x7   :  { %40 = dma.hbm_to_vmem [thread:$0]  %s33_s26, 36864, %s35_s28, [#allocation6], %s7000_s9, %s7000_s9, %s7001_s10  }
   0x8   :  { %s58_s12 = sshll.u32 %s7002_s11, 4  ;;  %s7003_s13 = smov 256   ;;  %s59_s12 = int_to_ptr.vmem [resolvable:$true] %s58_s12 }
   0x9   :  { %s7004_s14 = smov 16   ;;  %s80_s16 = sshll.u32 %s7247_s5, 4  ;;  %s81_s16 = int_to_ptr.hbm [resolvable:$true] %s80_s16 }
   0xa   :  { %64 = dma.hbm_to_vmem [thread:$0]  %s57_s8, 24576, %s59_s12, [#allocation9], %s7003_s13, %s7003_s13, %s7004_s14  }
   0xb   :  { %s7005_s17 = smov [#allocation11]   ;;  %s22_s20 = sshll.u32 %s7242_s0, 4  ;;  %s23_s20 = int_to_ptr.hbm [resolvable:$true] %s22_s20 }
   0xc   :  { %s82_s18 = sshll.u32 %s7005_s17, 4  ;;  %s7006_s21 = smov 64   ;;  %s83_s18 = int_to_ptr.vmem [resolvable:$true] %s82_s18 }
   0xd   :  { %s7007_s22 = smov 4   ;;  %s7008_s23 = smov [#allocation2]  }
   0xe   :  { %88 = dma.hbm_to_vmem [thread:$0]  %s81_s16, 4096, %s83_s18, [#allocation12], %s7006_s21, %s7006_s21, %s7007_s22  }
   0xf   :  { %s24_s24 = sshll.u32 %s7008_s23, 4  ;;  %s46_s27 = sshll.u32 %s7244_s2, 4  ;;  %s25_s24 = int_to_ptr.vmem [resolvable:$true] %s24_s24  ;;  %s47_s27 = int_to_ptr.hbm [resolvable:$true] %s46_s27 }
  0x10   :  { %27 = dma.hbm_to_vmem [thread:$0]  %s23_s20, 384, %s25_s24, [#allocation3]  }
  0x11   :  { %s70_s29 = sshll.u32 %s7246_s4, 4  ;;  %s7009_s30 = smov [#allocation7]   ;;  %s71_s29 = int_to_ptr.hbm [resolvable:$true] %s70_s29 }
  0x12   :  { %s48_s8 = sshll.u32 %s7009_s30, 4  ;;  %s7010_s0 = smov [#allocation10]   ;;  %s49_s8 = int_to_ptr.vmem [resolvable:$true] %s48_s8 }
  0x13   :  { %51 = dma.hbm_to_vmem [thread:$0]  %s47_s27, 96, %s49_s8, [#allocation6]  }
  0x14   :  { %s72_s9 = sshll.u32 %s7010_s0, 4  ;;  %s94_s12 = sshll.u32 %s7248_s6, 4  ;;  %s73_s9 = int_to_ptr.vmem [resolvable:$true] %s72_s9  ;;  %s95_s12 = int_to_ptr.hbm [resolvable:$true] %s94_s12 }
  0x15   :  { %75 = dma.hbm_to_vmem [thread:$0]  %s71_s29, 64, %s73_s9, [#allocation9]  }
  0x16   :  { %s7011_s2 = smov [#allocation13]  }
  0x17   :  { %s96_s13 = sshll.u32 %s7011_s2, 4  ;;  %s97_s13 = int_to_ptr.vmem [resolvable:$true] %s96_s13 }
  0x18   :  { %99 = dma.hbm_to_vmem [thread:$0]  %s95_s12, 16, %s97_s13, [#allocation12]  }
  0x19   :  { %6989 = dma.done.wait [#allocation3], 384  }
  0x1a   :  { %6990 = vsyncadd [#allocation3], 4294966912 }
  0x1b   :  { %6991 = dma.done.wait [#allocation6], 36960  }
  0x1c   :  { %6992 = vsyncadd [#allocation6], 4294930336 }
  0x1d   :  { %6993 = dma.done.wait [#allocation9], 24640  }
  0x1e   :  { %6994 = vsyncadd [#allocation9], 4294942656 }
  0x1f   :  { %6995 = dma.done.wait [#allocation12], 4112  }
  0x20   :  { %6996 = vsyncadd [#allocation12], 4294963184  ;;  %v4375_v0 = vld [vmem:[#allocation5 + $0x150] sm:$0xf]  ;;  %v6298_v1 = vld [vmem:[#allocation5 + $0x164] sm:$0xf0] }
  0x21   :  { %v4567_v2 = vld [vmem:[#allocation5 + $0x2d0] sm:$0xf]  ;;  %v4376_v3 = vor.u32 %v6298_v1, %v4375_v0  ;;  %v6346_v4 = vld [vmem:[#allocation5 + $0x2e4] sm:$0xf0]  ;;  %v4351_v11 = vld [vmem:[#allocation5 + $0x120] sm:$0xf] }
  0x22   :  { %v4759_v5 = vld [vmem:[#allocation5 + $0x450] sm:$0xf]  ;;  %v6394_v6 = vld [vmem:[#allocation5 + $0x464] sm:$0xf0]  ;;  %v4568_v7 = vor.u32 %v6346_v4, %v4567_v2  ;;  %v6292_v13 = vld [vmem:[#allocation5 + $0x134] sm:$0xf0] }
  0x23   :  { %v4760_v8 = vor.u32 %v6394_v6, %v4759_v5  ;;  %v4951_v9 = vld [vmem:[#allocation5 + $0x5d0] sm:$0xf]  ;;  %v6442_v10 = vld [vmem:[#allocation5 + $0x5e4] sm:$0xf0]  ;;  %1894 = vmatpush.bf16.msra.mxu0 %v4376_v3  ;;  %v4543_v14 = vld [vmem:[#allocation5 + $0x2a0] sm:$0xf]  ;;  %v4352_v16 = vor.u32 %v6292_v13, %v4351_v11 }
  0x24   :  { %v4952_v12 = vor.u32 %v6442_v10, %v4951_v9  ;;  %v6340_v15 = vld [vmem:[#allocation5 + $0x2b4] sm:$0xf0]  ;;  %1907 = vmatpush.bf16.msra.mxu1 %v4568_v7  ;;  %v4735_v18 = vld [vmem:[#allocation5 + $0x420] sm:$0xf]  ;;  %v4327_v23 = vld [vmem:[#allocation5 + $0xf0] sm:$0xf] }
  0x25   :  { %1920 = vmatpush.bf16.msra.mxu2 %v4760_v8  ;;  %v4544_v17 = vor.u32 %v6340_v15, %v4543_v14  ;;  %v6388_v19 = vld [vmem:[#allocation5 + $0x434] sm:$0xf0]  ;;  %v4927_v20 = vld [vmem:[#allocation5 + $0x5a0] sm:$0xf]  ;;  %v6286_v24 = vld [vmem:[#allocation5 + $0x104] sm:$0xf0] }
  0x26   :  { %1933 = vmatpush.bf16.msra.mxu3 %v4952_v12  ;;  %v4736_v21 = vor.u32 %v6388_v19, %v4735_v18  ;;  %v6436_v22 = vld [vmem:[#allocation5 + $0x5b4] sm:$0xf0]  ;;  %v4519_v26 = vld [vmem:[#allocation5 + $0x270] sm:$0xf]  ;;  %v6334_v27 = vld [vmem:[#allocation5 + $0x284] sm:$0xf0]  ;;  %v4328_v29 = vor.u32 %v6286_v24, %v4327_v23 }
  0x27   :  { %v4928_v25 = vor.u32 %v6436_v22, %v4927_v20  ;;  %v4711_v28 = vld [vmem:[#allocation5 + $0x3f0] sm:$0xf]  ;;  %1895 = vmatpush.bf16.msra.mxu0 %v4352_v16  ;;  %v6382_v30 = vld [vmem:[#allocation5 + $0x404] sm:$0xf0]  ;;  %v4520_v33 = vor.u32 %v6334_v27, %v4519_v26  ;;  %v4303_v35 = vld [vmem:[#allocation5 + $0xc0] sm:$0xf] }
  0x28   :  { %v4903_v31 = vld [vmem:[#allocation5 + $0x570] sm:$0xf]  ;;  %v6430_v32 = vld [vmem:[#allocation5 + $0x584] sm:$0xf0]  ;;  %1908 = vmatpush.bf16.msra.mxu1 %v4544_v17  ;;  %v4712_v34 = vor.u32 %v6382_v30, %v4711_v28  ;;  %v6280_v36 = vld [vmem:[#allocation5 + $0xd4] sm:$0xf0] }
  0x29   :  { %1921 = vmatpush.bf16.msra.mxu2 %v4736_v21  ;;  %v4495_v37 = vld [vmem:[#allocation5 + $0x240] sm:$0xf]  ;;  %v4904_v38 = vor.u32 %v6430_v32, %v4903_v31  ;;  %v6328_v39 = vld [vmem:[#allocation5 + $0x254] sm:$0xf0]  ;;  %v4304_v44 = vor.u32 %v6280_v36, %v4303_v35  ;;  %v4279_v47 = vld [vmem:[#allocation5 + $0x90] sm:$0xf] }
  0x2a   :  { %1934 = vmatpush.bf16.msra.mxu3 %v4928_v25  ;;  %v4687_v40 = vld [vmem:[#allocation5 + $0x3c0] sm:$0xf]  ;;  %v6376_v41 = vld [vmem:[#allocation5 + $0x3d4] sm:$0xf0]  ;;  %v4496_v45 = vor.u32 %v6328_v39, %v4495_v37  ;;  %v6274_v48 = vld [vmem:[#allocation5 + $0xa4] sm:$0xf0] }
  0x2b   :  { %v4879_v42 = vld [vmem:[#allocation5 + $0x540] sm:$0xf]  ;;  %v6424_v43 = vld [vmem:[#allocation5 + $0x554] sm:$0xf0]  ;;  %1896 = vmatpush.bf16.msra.mxu0 %v4328_v29  ;;  %v4688_v46 = vor.u32 %v6376_v41, %v4687_v40  ;;  %v4471_v49 = vld [vmem:[#allocation5 + $0x210] sm:$0xf]  ;;  %v4280_v56 = vor.u32 %v6274_v48, %v4279_v47 }
  0x2c   :  { %1909 = vmatpush.bf16.msra.mxu1 %v4520_v33  ;;  %v4880_v50 = vor.u32 %v6424_v43, %v4879_v42  ;;  %v6322_v51 = vld [vmem:[#allocation5 + $0x224] sm:$0xf0]  ;;  %v4663_v52 = vld [vmem:[#allocation5 + $0x390] sm:$0xf]  ;;  %v4255_v59 = vld [vmem:[#allocation5 + $0x60] sm:$0xf] }
  0x2d   :  { %1922 = vmatpush.bf16.msra.mxu2 %v4712_v34  ;;  %v6370_v53 = vld [vmem:[#allocation5 + $0x3a4] sm:$0xf0]  ;;  %v4855_v54 = vld [vmem:[#allocation5 + $0x510] sm:$0xf]  ;;  %v4472_v57 = vor.u32 %v6322_v51, %v4471_v49  ;;  %v6268_v60 = vld [vmem:[#allocation5 + $0x74] sm:$0xf0] }
  0x2e   :  { %1935 = vmatpush.bf16.msra.mxu3 %v4904_v38  ;;  %v6418_v55 = vld [vmem:[#allocation5 + $0x524] sm:$0xf0]  ;;  %v4664_v58 = vor.u32 %v6370_v53, %v4663_v52  ;;  %v4447_v61 = vld [vmem:[#allocation5 + $0x1e0] sm:$0xf]  ;;  %v6316_v63 = vld [vmem:[#allocation5 + $0x1f4] sm:$0xf0]  ;;  %v4256_v4 = vor.u32 %v6268_v60, %v4255_v59 }
  0x2f   :  { %1897 = vmatpush.bf16.msra.mxu0 %v4304_v44  ;;  %v4856_v62 = vor.u32 %v6418_v55, %v4855_v54  ;;  %v4639_v0 = vld [vmem:[#allocation5 + $0x360] sm:$0xf]  ;;  %v6364_v1 = vld [vmem:[#allocation5 + $0x374] sm:$0xf0]  ;;  %v4448_v5 = vor.u32 %v6316_v63, %v4447_v61  ;;  %v4231_v7 = vld [vmem:[#allocation5 + $0x30] sm:$0xf] }
  0x30   :  { %1910 = vmatpush.bf16.msra.mxu1 %v4496_v45  ;;  %v4831_v2 = vld [vmem:[#allocation5 + $0x4e0] sm:$0xf]  ;;  %v6412_v3 = vld [vmem:[#allocation5 + $0x4f4] sm:$0xf0]  ;;  %v4640_v6 = vor.u32 %v6364_v1, %v4639_v0  ;;  %v6262_v8 = vld [vmem:[#allocation5 + $0x44] sm:$0xf0] }
  0x31   :  { %1923 = vmatpush.bf16.msra.mxu2 %v4688_v46  ;;  %v4423_v9 = vld [vmem:[#allocation5 + $0x1b0] sm:$0xf]  ;;  %v4832_v10 = vor.u32 %v6412_v3, %v4831_v2  ;;  %v6310_v11 = vld [vmem:[#allocation5 + $0x1c4] sm:$0xf0]  ;;  %v4232_v16 = vor.u32 %v6262_v8, %v4231_v7  ;;  %v4207_v17 = vld [vmem:[#allocation5] sm:$0xf] }
  0x32   :  { %1936 = vmatpush.bf16.msra.mxu3 %v4880_v50  ;;  %v4615_v12 = vld [vmem:[#allocation5 + $0x330] sm:$0xf]  ;;  %v6358_v13 = vld [vmem:[#allocation5 + $0x344] sm:$0xf0]  ;;  %v6256_v18 = vld [vmem:[#allocation5 + $0x14] sm:$0xf0]  ;;  %v4424_v19 = vor.u32 %v6310_v11, %v4423_v9 }
  0x33   :  { %1898 = vmatpush.bf16.msra.mxu0 %v4280_v56  ;;  %v4807_v14 = vld [vmem:[#allocation5 + $0x4b0] sm:$0xf]  ;;  %v6406_v15 = vld [vmem:[#allocation5 + $0x4c4] sm:$0xf0]  ;;  %v4616_v20 = vor.u32 %v6358_v13, %v4615_v12  ;;  %v4399_v21 = vld [vmem:[#allocation5 + $0x180] sm:$0xf]  ;;  %v4208_v31 = vor.u32 %v6256_v18, %v4207_v17 }
  0x34   :  { %1911 = vmatpush.bf16.msra.mxu1 %v4472_v57  ;;  %v6304_v22 = vld [vmem:[#allocation5 + $0x194] sm:$0xf0]  ;;  %v4591_v23 = vld [vmem:[#allocation5 + $0x300] sm:$0xf]  ;;  %v4808_v24 = vor.u32 %v6406_v15, %v4807_v14  ;;  %v5143_v28 = vld [vmem:[#allocation5 + $0x750] sm:$0xf] }
  0x35   :  { %1924 = vmatpush.bf16.msra.mxu2 %v4664_v58  ;;  %v6352_v25 = vld [vmem:[#allocation5 + $0x314] sm:$0xf0]  ;;  %v4783_v26 = vld [vmem:[#allocation5 + $0x480] sm:$0xf]  ;;  %v6490_v29 = vld [vmem:[#allocation5 + $0x764] sm:$0xf0]  ;;  %v4400_v35 = vor.u32 %v6304_v22, %v4399_v21 }
  0x36   :  { %1937 = vmatpush.bf16.msra.mxu3 %v4856_v62  ;;  %v6400_v27 = vld [vmem:[#allocation5 + $0x494] sm:$0xf0]  ;;  %v5335_v30 = vld [vmem:[#allocation5 + $0x8d0] sm:$0xf]  ;;  %v6538_v32 = vld [vmem:[#allocation5 + $0x8e4] sm:$0xf0]  ;;  %v4592_v36 = vor.u32 %v6352_v25, %v4591_v23  ;;  %v5144_v40 = vor.u32 %v6490_v29, %v5143_v28 }
  0x37   :  { %1899 = vmatpush.bf16.msra.mxu0 %v4256_v4  ;;  %v6295_v33 = vld [vmem:[#allocation5 + $0x154] sm:$0xf]  ;;  %v4377_v34 = vld [vmem:[#allocation5 + $0x168] sm:$0xf0]  ;;  %v4784_v39 = vor.u32 %v6400_v27, %v4783_v26  ;;  %v5336_v41 = vor.u32 %v6538_v32, %v5335_v30  ;;  %v5119_v43 = vld [vmem:[#allocation5 + $0x720] sm:$0xf] }
  0x38   :  { %1912 = vmatpush.bf16.msra.mxu1 %v4448_v5  ;;  %v6343_v37 = vld [vmem:[#allocation5 + $0x2d4] sm:$0xf]  ;;  %v4569_v38 = vld [vmem:[#allocation5 + $0x2e8] sm:$0xf0]  ;;  %v4380_v42 = vor.u32 %v6295_v33, %v4377_v34  ;;  %v6484_v44 = vld [vmem:[#allocation5 + $0x734] sm:$0xf0] }
  0x39   :  { %1925 = vmatpush.bf16.msra.mxu2 %v4640_v6  ;;  %v5311_v45 = vld [vmem:[#allocation5 + $0x8a0] sm:$0xf]  ;;  %v4572_v46 = vor.u32 %v6343_v37, %v4569_v38  ;;  %v6532_v47 = vld [vmem:[#allocation5 + $0x8b4] sm:$0xf0]  ;;  %v6289_v48 = vld [vmem:[#allocation5 + $0x124] sm:$0xf]  ;;  %v5120_v52 = vor.u32 %v6484_v44, %v5119_v43 }
  0x3a   :  { %1938 = vmatpush.bf16.msra.mxu3 %v4832_v10  ;;  %v4353_v49 = vld [vmem:[#allocation5 + $0x138] sm:$0xf0]  ;;  %v6337_v50 = vld [vmem:[#allocation5 + $0x2a4] sm:$0xf]  ;;  %v5095_v53 = vld [vmem:[#allocation5 + $0x6f0] sm:$0xf]  ;;  %v5312_v54 = vor.u32 %v6532_v47, %v5311_v45 }
  0x3b   :  { %1900 = vmatpush.bf16.msra.mxu0 %v4232_v16  ;;  %v4545_v51 = vld [vmem:[#allocation5 + $0x2b8] sm:$0xf0]  ;;  %v4356_v55 = vor.u32 %v6289_v48, %v4353_v49  ;;  %v6478_v56 = vld [vmem:[#allocation5 + $0x704] sm:$0xf0]  ;;  %v5287_v57 = vld [vmem:[#allocation5 + $0x870] sm:$0xf] }
  0x3c   :  { %1913 = vmatpush.bf16.msra.mxu1 %v4424_v19  ;;  %v6526_v58 = vld [vmem:[#allocation5 + $0x884] sm:$0xf0]  ;;  %v4548_v59 = vor.u32 %v6337_v50, %v4545_v51  ;;  %v6283_v60 = vld [vmem:[#allocation5 + $0xf4] sm:$0xf]  ;;  %v4329_v61 = vld [vmem:[#allocation5 + $0x108] sm:$0xf0]  ;;  %v5096_v0 = vor.u32 %v6478_v56, %v5095_v53 }
  0x3d   :  { %1926 = vmatpush.bf16.msra.mxu2 %v4616_v20  ;;  %v6331_v62 = vld [vmem:[#allocation5 + $0x274] sm:$0xf]  ;;  %v4521_v63 = vld [vmem:[#allocation5 + $0x288] sm:$0xf0]  ;;  %v5288_v1 = vor.u32 %v6526_v58, %v5287_v57  ;;  %v4332_v4 = vor.u32 %v6283_v60, %v4329_v61  ;;  %v5071_v5 = vld [vmem:[#allocation5 + $0x6c0] sm:$0xf] }
  0x3e   :  { %1939 = vmatpush.bf16.msra.mxu3 %v4808_v24  ;;  %v129_v2 = vld [vmem:[#allocation2 + $0x8] sm:$0xff]  ;;  %v128_v3 = vld [vmem:[#allocation2] sm:$0xff]  ;;  %v6472_v6 = vld [vmem:[#allocation5 + $0x6d4] sm:$0xf0]  ;;  %v4524_v11 = vor.u32 %v6331_v62, %v4521_v63  ;;  %s7012_s4 = smov [#allocation14]   ;;  %s4192_s15 = sshll.u32 %s7249_s7, 4  ;;  %s4193_s15 = int_to_ptr.hbm [resolvable:$true] %s4192_s15 }
  0x3f   :  { %1901 = vmatpush.bf16.msra.mxu0 %v4208_v31  ;;  %v5263_v7 = vld [vmem:[#allocation5 + $0x840] sm:$0xf]  ;;  %v438_v8 = vunpack.c.l.b16 %v129_v2  ;;  %v436_v9 = vunpack.c.l.b16 %v128_v3  ;;  %v439_v10 = vunpack.c.h.b16 %v129_v2  ;;  %v6520_v12 = vld [vmem:[#allocation5 + $0x854] sm:$0xf0]  ;;  %v6277_v13 = vld [vmem:[#allocation5 + $0xc4] sm:$0xf]  ;;  %v437_v15 = vunpack.c.h.b16 %v128_v3 }
  0x40   :  { %1914 = vmatpush.bf16.msra.mxu1 %v4400_v35  ;;  %v4305_v14 = vld [vmem:[#allocation5 + $0xd8] sm:$0xf0]  ;;  %v6325_v16 = vld [vmem:[#allocation5 + $0x244] sm:$0xf]  ;;  %v5072_v21 = vor.u32 %v6472_v6, %v5071_v5  ;;  %v5264_v23 = vor.u32 %v6520_v12, %v5263_v7  ;;  %v5047_v25 = vld [vmem:[#allocation5 + $0x690] sm:$0xf] }
  0x41   :  { %1927 = vmatpush.bf16.msra.mxu2 %v4592_v36  ;;  %v4497_v17 = vld [vmem:[#allocation5 + $0x258] sm:$0xf0]  ;;  %v7074_v18 = vpack.c.b16 %v438_v8, %v438_v8  ;;  %v7076_v19 = vpack.c.b16 %v436_v9, %v436_v9  ;;  %v7078_v20 = vpack.c.b16 %v439_v10, %v439_v10  ;;  %v7080_v22 = vpack.c.b16 %v437_v15, %v437_v15  ;;  %v6466_v26 = vld [vmem:[#allocation5 + $0x6a4] sm:$0xf0]  ;;  %v5239_v27 = vld [vmem:[#allocation5 + $0x810] sm:$0xf] }
  0x42   :  { %1940 = vmatpush.bf16.msra.mxu3 %v4784_v39  ;;  %v4308_v24 = vor.u32 %v6277_v13, %v4305_v14  ;;  %v4500_v28 = vor.u32 %v6325_v16, %v4497_v17  ;;  %v6514_v29 = vld [vmem:[#allocation5 + $0x824] sm:$0xf0]  ;;  %v6271_v30 = vld [vmem:[#allocation5 + $0x94] sm:$0xf]  ;;  %v4281_v31 = vld [vmem:[#allocation5 + $0xa8] sm:$0xf0]  ;;  %v5048_v34 = vor.u32 %v6466_v26, %v5047_v25 }
  0x43   :  { %1946 = vmatpush.bf16.msrb.mxu0 %v5144_v40  ;;  %v6319_v32 = vld [vmem:[#allocation5 + $0x214] sm:$0xf]  ;;  %v4473_v33 = vld [vmem:[#allocation5 + $0x228] sm:$0xf0]  ;;  %1915 = vmatmul.bf16.vlgmr.msra.gmra.mxu1 %v7080_v22  ;;  %v5240_v35 = vor.u32 %v6514_v29, %v5239_v27  ;;  %v4284_v36 = vor.u32 %v6271_v30, %v4281_v31  ;;  %v5023_v37 = vld [vmem:[#allocation5 + $0x660] sm:$0xf] }
  0x44   :  { %1959 = vmatpush.bf16.msrb.mxu1 %v5336_v41  ;;  %1928 = vmatmul.bf16.vlgmr.msra.gmra.mxu2 %v7074_v18  ;;  %v6460_v38 = vld [vmem:[#allocation5 + $0x674] sm:$0xf0]  ;;  %v5215_v39 = vld [vmem:[#allocation5 + $0x7e0] sm:$0xf]  ;;  %v4476_v40 = vor.u32 %v6319_v32, %v4473_v33  ;;  %v4257_v43 = vld [vmem:[#allocation5 + $0x78] sm:$0xf0] }
  0x45   :  { %1972 = vmatpush.bf16.msrb.mxu2 %v4380_v42  ;;  %1902 = vmatmul.bf16.vlgmr.msra.gmra.mxu0 %v7076_v19  ;;  %v6508_v41 = vld [vmem:[#allocation5 + $0x7f4] sm:$0xf0]  ;;  %v6265_v42 = vld [vmem:[#allocation5 + $0x64] sm:$0xf]  ;;  %v4449_v45 = vld [vmem:[#allocation5 + $0x1f8] sm:$0xf0] }
  0x46   :  { %1985 = vmatpush.bf16.msrb.mxu3 %v4572_v46  ;;  %v6313_v44 = vld [vmem:[#allocation5 + $0x1e4] sm:$0xf]  ;;  %v5024_v46 = vor.u32 %v6460_v38, %v5023_v37  ;;  %v5216_v47 = vor.u32 %v6508_v41, %v5215_v39  ;;  %v4260_v48 = vor.u32 %v6265_v42, %v4257_v43  ;;  %v4999_v49 = vld [vmem:[#allocation5 + $0x630] sm:$0xf]  ;;  %v6454_v50 = vld [vmem:[#allocation5 + $0x644] sm:$0xf0] }
  0x47   :  { %1947 = vmatpush.bf16.msrb.mxu0 %v5120_v52  ;;  %1941 = vmatmul.bf16.vlgmr.msra.gmra.mxu3 %v7078_v20  ;;  %v5191_v51 = vld [vmem:[#allocation5 + $0x7b0] sm:$0xf]  ;;  %v4452_v52 = vor.u32 %v6313_v44, %v4449_v45  ;;  %v6502_v53 = vld [vmem:[#allocation5 + $0x7c4] sm:$0xf0]  ;;  %v6307_v56 = vld [vmem:[#allocation5 + $0x1b4] sm:$0xf]  ;;  %v5000_v58 = vor.u32 %v6454_v50, %v4999_v49 }
  0x48   :  { %1960 = vmatpush.bf16.msrb.mxu1 %v5312_v54  ;;  %v6259_v54 = vld [vmem:[#allocation5 + $0x34] sm:$0xf]  ;;  %v4425_v57 = vld [vmem:[#allocation5 + $0x1c8] sm:$0xf0]  ;;  %v6448_v60 = vld [vmem:[#allocation5 + $0x614] sm:$0xf0]  ;;  %v5192_v62 = vor.u32 %v6502_v53, %v5191_v51 }
  0x49   :  { %1973 = vmatpush.bf16.msrb.mxu2 %v4356_v55  ;;  %v4233_v55 = vld [vmem:[#allocation5 + $0x48] sm:$0xf0]  ;;  %v5167_v61 = vld [vmem:[#allocation5 + $0x780] sm:$0xf]  ;;  %v130_v2 = vld [vmem:[#allocation2 + $0x10] sm:$0xff]  ;;  %v4428_v3 = vor.u32 %v6307_v56, %v4425_v57  ;;  %s4190_s6 = sshll.u32 %s7012_s4, 4  ;;  %s4191_s6 = int_to_ptr.vmem [resolvable:$true] %s4190_s6 }
  0x4a   :  { %1986 = vmatpush.bf16.msrb.mxu3 %v4548_v59  ;;  %v4975_v59 = vld [vmem:[#allocation5 + $0x600] sm:$0xf]  ;;  %v4236_v63 = vor.u32 %v6259_v54, %v4233_v55  ;;  %v6301_v5 = vld [vmem:[#allocation5 + $0x184] sm:$0xf]  ;;  %v4401_v6 = vld [vmem:[#allocation5 + $0x198] sm:$0xf0]  ;;  %v440_v14 = vunpack.c.l.b16 %v130_v2 }
  0x4b   :  { %1948 = vmatpush.bf16.msrb.mxu0 %v5096_v0  ;;  %v6496_v0 = vld [vmem:[#allocation5 + $0x794] sm:$0xf0]  ;;  %v6391_v7 = vld [vmem:[#allocation5 + $0x454] sm:$0xf]  ;;  %v4761_v8 = vld [vmem:[#allocation5 + $0x468] sm:$0xf0]  ;;  %v4976_v10 = vor.u32 %v6448_v60, %v4975_v59 }
  0x4c   :  { %1961 = vmatpush.bf16.msrb.mxu1 %v5288_v1  ;;  %v6253_v1 = vld [vmem:[#allocation5 + $0x4] sm:$0xf]  ;;  %v6439_v9 = vld [vmem:[#allocation5 + $0x5d4] sm:$0xf]  ;;  %v5145_v13 = vld [vmem:[#allocation5 + $0x768] sm:$0xf0]  ;;  %v5168_v15 = vor.u32 %v6496_v0, %v5167_v61  ;;  %v4764_v25 = vor.u32 %v6391_v7, %v4761_v8 }
  0x4d   :  { %1974 = vmatpush.bf16.msrb.mxu2 %v4332_v4  ;;  %v4209_v4 = vld [vmem:[#allocation5 + $0x18] sm:$0xf0]  ;;  %v6487_v12 = vld [vmem:[#allocation5 + $0x754] sm:$0xf]  ;;  %v6433_v30 = vld [vmem:[#allocation5 + $0x5a4] sm:$0xf] }
  0x4e   :  { %1987 = vmatpush.bf16.msrb.mxu3 %v4524_v11  ;;  %v4953_v11 = vld [vmem:[#allocation5 + $0x5e8] sm:$0xf0]  ;;  %v4212_v16 = vor.u32 %v6253_v1, %v4209_v4  ;;  %v6535_v17 = vld [vmem:[#allocation5 + $0x8d4] sm:$0xf]  ;;  %v5148_v27 = vor.u32 %v6487_v12, %v5145_v13  ;;  %v4737_v29 = vld [vmem:[#allocation5 + $0x438] sm:$0xf0] }
  0x4f   :  { %1949 = vmatpush.bf16.msrb.mxu0 %v5072_v21  ;;  %v5337_v21 = vld [vmem:[#allocation5 + $0x8e8] sm:$0xf0]  ;;  %v4956_v26 = vor.u32 %v6439_v9, %v4953_v11  ;;  %v4929_v32 = vld [vmem:[#allocation5 + $0x5b8] sm:$0xf0]  ;;  %v6481_v33 = vld [vmem:[#allocation5 + $0x724] sm:$0xf] }
  0x50   :  { %1962 = vmatpush.bf16.msrb.mxu1 %v5264_v23  ;;  %v441_v23 = vunpack.c.h.b16 %v130_v2  ;;  %v5340_v31 = vor.u32 %v6535_v17, %v5337_v21  ;;  %v5313_v37 = vld [vmem:[#allocation5 + $0x8b8] sm:$0xf0]  ;;  %v6379_v42 = vld [vmem:[#allocation5 + $0x3f4] sm:$0xf]  ;;  %v4713_v43 = vld [vmem:[#allocation5 + $0x408] sm:$0xf0] }
  0x51   :  { %1975 = vmatpush.bf16.msrb.mxu2 %v4308_v24  ;;  %v4404_v24 = vor.u32 %v6301_v5, %v4401_v6  ;;  %v6427_v44 = vld [vmem:[#allocation5 + $0x574] sm:$0xf]  ;;  %v5289_v50 = vld [vmem:[#allocation5 + $0x888] sm:$0xf0]  ;;  %v4716_v51 = vor.u32 %v6379_v42, %v4713_v43  ;;  %v6373_v54 = vld [vmem:[#allocation5 + $0x3c4] sm:$0xf] }
  0x52   :  { %1988 = vmatpush.bf16.msrb.mxu3 %v4500_v28  ;;  %v6385_v28 = vld [vmem:[#allocation5 + $0x424] sm:$0xf]  ;;  %v7088_v38 = vpack.c.b16 %v441_v23, %v441_v23  ;;  %v6523_v49 = vld [vmem:[#allocation5 + $0x874] sm:$0xf]  ;;  %v4689_v55 = vld [vmem:[#allocation5 + $0x3d8] sm:$0xf0] }
  0x53   :  { %1950 = vmatpush.bf16.msrb.mxu0 %v5048_v34  ;;  %v5121_v34 = vld [vmem:[#allocation5 + $0x738] sm:$0xf0]  ;;  %v4740_v39 = vor.u32 %v6385_v28, %v4737_v29  ;;  %v6421_v56 = vld [vmem:[#allocation5 + $0x544] sm:$0xf]  ;;  %v5292_v57 = vor.u32 %v6523_v49, %v5289_v50  ;;  %v6367_v2 = vld [vmem:[#allocation5 + $0x394] sm:$0xf] }
  0x54   :  { %1963 = vmatpush.bf16.msrb.mxu1 %v5240_v35  ;;  %v7086_v35 = vpack.c.b16 %v440_v14, %v440_v14  ;;  %v5124_v41 = vor.u32 %v6481_v33, %v5121_v34  ;;  %v6469_v59 = vld [vmem:[#allocation5 + $0x6c4] sm:$0xf]  ;;  %v5073_v60 = vld [vmem:[#allocation5 + $0x6d8] sm:$0xf0]  ;;  %v6415_v4 = vld [vmem:[#allocation5 + $0x514] sm:$0xf] }
  0x55   :  { %1976 = vmatpush.bf16.msrb.mxu2 %v4284_v36  ;;  %v6529_v36 = vld [vmem:[#allocation5 + $0x8a4] sm:$0xf]  ;;  %v5076_v1 = vor.u32 %v6469_v59, %v5073_v60  ;;  %v4857_v6 = vld [vmem:[#allocation5 + $0x528] sm:$0xf0]  ;;  %v6463_v7 = vld [vmem:[#allocation5 + $0x694] sm:$0xf] }
  0x56   :  { %1989 = vmatpush.bf16.msrb.mxu3 %v4476_v40  ;;  %v4932_v40 = vor.u32 %v6433_v30, %v4929_v32  ;;  %v5316_v45 = vor.u32 %v6529_v36, %v5313_v37  ;;  %v6517_v61 = vld [vmem:[#allocation5 + $0x844] sm:$0xf]  ;;  %v5049_v8 = vld [vmem:[#allocation5 + $0x6a8] sm:$0xf0]  ;;  %v6511_v9 = vld [vmem:[#allocation5 + $0x814] sm:$0xf]  ;;  %v4860_v12 = vor.u32 %v6415_v4, %v4857_v6 }
  0x57   :  { %1951 = vmatpush.bf16.msrb.mxu0 %v5024_v46  ;;  %v4905_v46 = vld [vmem:[#allocation5 + $0x588] sm:$0xf0]  ;;  %v5052_v13 = vor.u32 %v6463_v7, %v5049_v8  ;;  %v6361_v14 = vld [vmem:[#allocation5 + $0x364] sm:$0xf]  ;;  %v4833_v21 = vld [vmem:[#allocation5 + $0x4f8] sm:$0xf0] }
  0x58   :  { %1964 = vmatpush.bf16.msrb.mxu1 %v5216_v47  ;;  %v6475_v47 = vld [vmem:[#allocation5 + $0x6f4] sm:$0xf]  ;;  %v6457_v23 = vld [vmem:[#allocation5 + $0x664] sm:$0xf]  ;;  %v4809_v34 = vld [vmem:[#allocation5 + $0x4c8] sm:$0xf0] }
  0x59   :  { %1977 = vmatpush.bf16.msrb.mxu2 %v4260_v48  ;;  %v5097_v48 = vld [vmem:[#allocation5 + $0x708] sm:$0xf0]  ;;  %v6355_v30 = vld [vmem:[#allocation5 + $0x334] sm:$0xf]  ;;  %v6349_v42 = vld [vmem:[#allocation5 + $0x304] sm:$0xf] }
  0x5a   :  { %1990 = vmatpush.bf16.msrb.mxu3 %v4452_v52  ;;  %v4908_v52 = vor.u32 %v6427_v44, %v4905_v46  ;;  %v5100_v53 = vor.u32 %v6475_v47, %v5097_v48  ;;  %v6403_v32 = vld [vmem:[#allocation5 + $0x4b4] sm:$0xf]  ;;  %v5001_v37 = vld [vmem:[#allocation5 + $0x648] sm:$0xf0]  ;;  %v4593_v43 = vld [vmem:[#allocation5 + $0x318] sm:$0xf0] }
  0x5b   :  { %1952 = vmatpush.bf16.msrb.mxu0 %v5000_v58  ;;  %v4881_v58 = vld [vmem:[#allocation5 + $0x558] sm:$0xf0]  ;;  %v6451_v36 = vld [vmem:[#allocation5 + $0x634] sm:$0xf]  ;;  %v4812_v44 = vor.u32 %v6403_v32, %v4809_v34  ;;  %v6397_v46 = vld [vmem:[#allocation5 + $0x484] sm:$0xf] }
  0x5c   :  { %1965 = vmatpush.bf16.msrb.mxu1 %v5192_v62  ;;  %v5265_v62 = vld [vmem:[#allocation5 + $0x858] sm:$0xf0]  ;;  %v4884_v0 = vor.u32 %v6421_v56, %v4881_v58  ;;  %v6445_v48 = vld [vmem:[#allocation5 + $0x604] sm:$0xf]  ;;  %v4596_v56 = vor.u32 %v6349_v42, %v4593_v43  ;;  %v4767_v58 = vld [vmem:[#allocation5 + $0x458] sm:$0xf] }
  0x5d   :  { %1978 = vmatpush.bf16.msrb.mxu2 %v4236_v63  ;;  %v4692_v63 = vor.u32 %v6373_v54, %v4689_v55  ;;  %v5268_v5 = vor.u32 %v6517_v61, %v5265_v62  ;;  %v4785_v47 = vld [vmem:[#allocation5 + $0x498] sm:$0xf0]  ;;  %v6299_v54 = vld [vmem:[#allocation5 + $0x16c] sm:$0xf0]  ;;  %v4575_v55 = vld [vmem:[#allocation5 + $0x2d8] sm:$0xf] }
  0x5e   :  { %1991 = vmatpush.bf16.msrb.mxu3 %v4428_v3  ;;  %v4665_v3 = vld [vmem:[#allocation5 + $0x3a8] sm:$0xf0]  ;;  %v4977_v50 = vld [vmem:[#allocation5 + $0x618] sm:$0xf0]  ;;  %v6395_v59 = vld [vmem:[#allocation5 + $0x46c] sm:$0xf0]  ;;  %v4788_v60 = vor.u32 %v6397_v46, %v4785_v47 }
  0x5f   :  { %1953 = vmatpush.bf16.msrb.mxu0 %v4976_v10  ;;  %v5241_v10 = vld [vmem:[#allocation5 + $0x828] sm:$0xf0]  ;;  %v4668_v11 = vor.u32 %v6367_v2, %v4665_v3  ;;  %v4980_v61 = vor.u32 %v6445_v48, %v4977_v50  ;;  %v4959_v62 = vld [vmem:[#allocation5 + $0x5d8] sm:$0xf]  ;;  %v4768_v3 = vor.u32 %v6395_v59, %v4767_v58  ;;  %v4359_v4 = vld [vmem:[#allocation5 + $0x128] sm:$0xf] }
  0x60   :  { %1966 = vmatpush.bf16.msrb.mxu1 %v5168_v15  ;;  %v4641_v15 = vld [vmem:[#allocation5 + $0x378] sm:$0xf0]  ;;  %v5244_v17 = vor.u32 %v6511_v9, %v5241_v10  ;;  %v4551_v6 = vld [vmem:[#allocation5 + $0x2a8] sm:$0xf]  ;;  %v6341_v8 = vld [vmem:[#allocation5 + $0x2bc] sm:$0xf0] }
  0x61   :  { %1979 = vmatpush.bf16.msrb.mxu2 %v4212_v16  ;;  %v6409_v16 = vld [vmem:[#allocation5 + $0x4e4] sm:$0xf]  ;;  %v4743_v9 = vld [vmem:[#allocation5 + $0x428] sm:$0xf]  ;;  %v6389_v10 = vld [vmem:[#allocation5 + $0x43c] sm:$0xf0] }
  0x62   :  { %1992 = vmatpush.bf16.msrb.mxu3 %v4404_v24  ;;  %1954 = vmatmul.bf16.vlgmr.msrb.gmra.mxu0 %v7086_v35  ;;  %v5025_v24 = vld [vmem:[#allocation5 + $0x678] sm:$0xf0]  ;;  %v4836_v28 = vor.u32 %v6409_v16, %v4833_v21  ;;  %v4335_v16 = vld [vmem:[#allocation5 + $0xf8] sm:$0xf]  ;;  %v4311_v32 = vld [vmem:[#allocation5 + $0xc8] sm:$0xf] }
  0x63   :  { %1998 = vmatpush.bf16.msra.mxu0 %v4764_v25  ;;  %1967 = vmatmul.bf16.vlgmr.msrb.gmra.mxu1 %v7088_v38  ;;  %v6505_v25 = vld [vmem:[#allocation5 + $0x7e4] sm:$0xf]  ;;  %v5028_v29 = vor.u32 %v6457_v23, %v5025_v24  ;;  %v4527_v21 = vld [vmem:[#allocation5 + $0x278] sm:$0xf]  ;;  %v6335_v24 = vld [vmem:[#allocation5 + $0x28c] sm:$0xf0] }
  0x64   :  { %2011 = vmatpush.bf16.msra.mxu1 %v4956_v26  ;;  %1980 = vmatmul.bf16.vlgmr.msrb.gmra.mxu2 %v7076_v19  ;;  %v5217_v26 = vld [vmem:[#allocation5 + $0x7f8] sm:$0xf0]  ;;  %v4503_v34 = vld [vmem:[#allocation5 + $0x248] sm:$0xf]  ;;  %v6425_v42 = vld [vmem:[#allocation5 + $0x55c] sm:$0xf0] }
  0x65   :  { %2024 = vmatpush.bf16.msra.mxu2 %v5148_v27  ;;  %1993 = vmatmul.bf16.vlgmr.msrb.gmra.mxu3 %v7080_v22  ;;  %v4644_v27 = vor.u32 %v6361_v14, %v4641_v15  ;;  %v5220_v33 = vor.u32 %v6505_v25, %v5217_v26  ;;  %v4552_v14 = vor.u32 %v6341_v8, %v4551_v6  ;;  %v4719_v25 = vld [vmem:[#allocation5 + $0x3f8] sm:$0xf]  ;;  %v6383_v26 = vld [vmem:[#allocation5 + $0x40c] sm:$0xf0]  ;;  %v4263_v58 = vld [vmem:[#allocation5 + $0x68] sm:$0xf] }
  0x66   :  { %2037 = vmatpush.bf16.msra.mxu3 %v5340_v31  ;;  %v4617_v31 = vld [vmem:[#allocation5 + $0x348] sm:$0xf0]  ;;  %v4744_v15 = vor.u32 %v6389_v10, %v4743_v9  ;;  %v4287_v46 = vld [vmem:[#allocation5 + $0x98] sm:$0xf]  ;;  %v6275_v47 = vld [vmem:[#allocation5 + $0xac] sm:$0xf0] }
  0x67   :  { %1999 = vmatpush.bf16.msra.mxu0 %v4740_v39  ;;  %v6499_v39 = vld [vmem:[#allocation5 + $0x7b4] sm:$0xf]  ;;  %v4479_v48 = vld [vmem:[#allocation5 + $0x218] sm:$0xf]  ;;  %v6323_v50 = vld [vmem:[#allocation5 + $0x22c] sm:$0xf0] }
  0x68   :  { %2012 = vmatpush.bf16.msra.mxu1 %v4932_v40  ;;  %v5193_v40 = vld [vmem:[#allocation5 + $0x7c8] sm:$0xf0]  ;;  %v6269_v59 = vld [vmem:[#allocation5 + $0x7c] sm:$0xf0]  ;;  %v4239_v6 = vld [vmem:[#allocation5 + $0x38] sm:$0xf] }
  0x69   :  { %2025 = vmatpush.bf16.msra.mxu2 %v5124_v41  ;;  %v4620_v41 = vor.u32 %v6355_v30, %v4617_v31  ;;  %v5196_v49 = vor.u32 %v6499_v39, %v5193_v40  ;;  %v4528_v30 = vor.u32 %v6335_v24, %v4527_v21  ;;  %v4720_v31 = vor.u32 %v6383_v26, %v4719_v25  ;;  %v4695_v39 = vld [vmem:[#allocation5 + $0x3c8] sm:$0xf]  ;;  %v6377_v40 = vld [vmem:[#allocation5 + $0x3dc] sm:$0xf0]  ;;  %v4431_v8 = vld [vmem:[#allocation5 + $0x1b8] sm:$0xf] }
  0x6a   :  { %2038 = vmatpush.bf16.msra.mxu3 %v5316_v45  ;;  %v5004_v45 = vor.u32 %v6451_v36, %v5001_v37  ;;  %v6329_v37 = vld [vmem:[#allocation5 + $0x25c] sm:$0xf0]  ;;  %v6311_v10 = vld [vmem:[#allocation5 + $0x1cc] sm:$0xf0]  ;;  %v4407_v24 = vld [vmem:[#allocation5 + $0x188] sm:$0xf] }
  0x6b   :  { %2000 = vmatpush.bf16.msra.mxu0 %v4716_v51  ;;  %v6493_v51 = vld [vmem:[#allocation5 + $0x784] sm:$0xf]  ;;  %v4432_v21 = vor.u32 %v6311_v10, %v4431_v8  ;;  %v6305_v25 = vld [vmem:[#allocation5 + $0x19c] sm:$0xf0]  ;;  %v4599_v26 = vld [vmem:[#allocation5 + $0x308] sm:$0xf] }
  0x6c   :  { %2013 = vmatpush.bf16.msra.mxu1 %v4908_v52  ;;  %v5169_v52 = vld [vmem:[#allocation5 + $0x798] sm:$0xf0]  ;;  %v5079_v8 = vld [vmem:[#allocation5 + $0x6c8] sm:$0xf] }
  0x6d   :  { %2026 = vmatpush.bf16.msra.mxu2 %v5100_v53  ;;  %v4383_v53 = vld [vmem:[#allocation5 + $0x158] sm:$0xf]  ;;  %v5271_v10 = vld [vmem:[#allocation5 + $0x848] sm:$0xf] }
  0x6e   :  { %2039 = vmatpush.bf16.msra.mxu3 %v5292_v57  ;;  %v6347_v57 = vld [vmem:[#allocation5 + $0x2ec] sm:$0xf0] }
  0x6f   :  { %2001 = vmatpush.bf16.msra.mxu0 %v4692_v63  ;;  %v6443_v63 = vld [vmem:[#allocation5 + $0x5ec] sm:$0xf0]  ;;  %v4576_v2 = vor.u32 %v6347_v57, %v4575_v55  ;;  %v4288_v55 = vor.u32 %v6275_v47, %v4287_v46 }
  0x70   :  { %2014 = vmatpush.bf16.msra.mxu1 %v4884_v0  ;;  %v5172_v0 = vor.u32 %v6493_v51, %v5169_v52  ;;  %v4960_v7 = vor.u32 %v6443_v63, %v4959_v62  ;;  %v4671_v51 = vld [vmem:[#allocation5 + $0x398] sm:$0xf]  ;;  %v6371_v52 = vld [vmem:[#allocation5 + $0x3ac] sm:$0xf0]  ;;  %v6317_v62 = vld [vmem:[#allocation5 + $0x1fc] sm:$0xf0] }
  0x71   :  { %2027 = vmatpush.bf16.msra.mxu2 %v5076_v1  ;;  %v4384_v1 = vor.u32 %v6299_v54, %v4383_v53  ;;  %v4863_v53 = vld [vmem:[#allocation5 + $0x518] sm:$0xf]  ;;  %v6419_v54 = vld [vmem:[#allocation5 + $0x52c] sm:$0xf0]  ;;  %v4672_v57 = vor.u32 %v6371_v52, %v4671_v51  ;;  %v4647_v63 = vld [vmem:[#allocation5 + $0x368] sm:$0xf] }
  0x72   :  { %2040 = vmatpush.bf16.msra.mxu3 %v5268_v5  ;;  %v6293_v5 = vld [vmem:[#allocation5 + $0x13c] sm:$0xf0] }
  0x73   :  { %2002 = vmatpush.bf16.msra.mxu0 %v4668_v11  ;;  %v4935_v11 = vld [vmem:[#allocation5 + $0x5a8] sm:$0xf]  ;;  %v6533_v52 = vld [vmem:[#allocation5 + $0x8bc] sm:$0xf0] }
  0x74   :  { %2015 = vmatpush.bf16.msra.mxu1 %v4860_v12  ;;  %v6437_v12 = vld [vmem:[#allocation5 + $0x5bc] sm:$0xf0] }
  0x75   :  { %2028 = vmatpush.bf16.msra.mxu2 %v5052_v13  ;;  %v4360_v13 = vor.u32 %v6293_v5, %v4359_v4  ;;  %v4936_v23 = vor.u32 %v6437_v12, %v4935_v11  ;;  %v4623_v11 = vld [vmem:[#allocation5 + $0x338] sm:$0xf]  ;;  %v6359_v12 = vld [vmem:[#allocation5 + $0x34c] sm:$0xf0] }
  0x76   :  { %2041 = vmatpush.bf16.msra.mxu3 %v5244_v17  ;;  %v6287_v17 = vld [vmem:[#allocation5 + $0x10c] sm:$0xf0] }
  0x77   :  { %2003 = vmatpush.bf16.msra.mxu0 %v4644_v27  ;;  %v4911_v27 = vld [vmem:[#allocation5 + $0x578] sm:$0xf] }
  0x78   :  { %2016 = vmatpush.bf16.msra.mxu1 %v4836_v28  ;;  %v6431_v28 = vld [vmem:[#allocation5 + $0x58c] sm:$0xf0] }
  0x79   :  { %2029 = vmatpush.bf16.msra.mxu2 %v5028_v29  ;;  %v4336_v29 = vor.u32 %v6287_v17, %v4335_v16  ;;  %v4912_v36 = vor.u32 %v6431_v28, %v4911_v27  ;;  %v4215_v16 = vld [vmem:[#allocation5 + $0x8] sm:$0xf]  ;;  %v6257_v17 = vld [vmem:[#allocation5 + $0x1c] sm:$0xf0] }
  0x7a   :  { %2042 = vmatpush.bf16.msra.mxu3 %v5220_v33  ;;  %v6281_v33 = vld [vmem:[#allocation5 + $0xdc] sm:$0xf0] }
  0x7b   :  { %2004 = vmatpush.bf16.msra.mxu0 %v4620_v41  ;;  %v4887_v41 = vld [vmem:[#allocation5 + $0x548] sm:$0xf]  ;;  %v4312_v43 = vor.u32 %v6281_v33, %v4311_v32  ;;  %v6353_v28 = vld [vmem:[#allocation5 + $0x31c] sm:$0xf0]  ;;  %v6491_v32 = vld [vmem:[#allocation5 + $0x76c] sm:$0xf0] }
  0x7c   :  { %2017 = vmatpush.bf16.msra.mxu1 %v4812_v44  ;;  %v4504_v44 = vor.u32 %v6329_v37, %v4503_v34  ;;  %v5343_v33 = vld [vmem:[#allocation5 + $0x8d8] sm:$0xf]  ;;  %v4216_v34 = vor.u32 %v6257_v17, %v4215_v16  ;;  %v6296_v37 = vld [vmem:[#allocation5 + $0x15c] sm:$0xf]  ;;  %v4505_v16 = vld [vmem:[#allocation5 + $0x260] sm:$0xf0] }
  0x7d   :  { %2030 = vmatpush.bf16.msra.mxu2 %v5004_v45  ;;  %v4696_v45 = vor.u32 %v6377_v40, %v4695_v39  ;;  %v4385_v39 = vld [vmem:[#allocation5 + $0x170] sm:$0xf0]  ;;  %v4408_v40 = vor.u32 %v6305_v25, %v4407_v24  ;;  %v5055_v24 = vld [vmem:[#allocation5 + $0x698] sm:$0xf]  ;;  %v6467_v25 = vld [vmem:[#allocation5 + $0x6ac] sm:$0xf0] }
  0x7e   :  { %2043 = vmatpush.bf16.msra.mxu3 %v5196_v49  ;;  %v4888_v49 = vor.u32 %v6425_v42, %v4887_v41  ;;  %v4600_v41 = vor.u32 %v6353_v28, %v4599_v26  ;;  %v6344_v42 = vld [vmem:[#allocation5 + $0x2dc] sm:$0xf]  ;;  %v4388_v47 = vor.u32 %v6296_v37, %v4385_v39  ;;  %v5247_v26 = vld [vmem:[#allocation5 + $0x818] sm:$0xf]  ;;  %v6515_v28 = vld [vmem:[#allocation5 + $0x82c] sm:$0xf0] }
  0x7f   :  { %2005 = vmatpush.bf16.msra.mxu0 %v4596_v56  ;;  %v4480_v56 = vor.u32 %v6323_v50, %v4479_v48  ;;  %v5127_v48 = vld [vmem:[#allocation5 + $0x728] sm:$0xf]  ;;  %v6461_v39 = vld [vmem:[#allocation5 + $0x67c] sm:$0xf0] }
  0x80   :  { %2018 = vmatpush.bf16.msra.mxu1 %v4788_v60  ;;  %v4455_v60 = vld [vmem:[#allocation5 + $0x1e8] sm:$0xf] }
  0x81   :  { %2031 = vmatpush.bf16.msra.mxu2 %v4980_v61  ;;  %v4864_v61 = vor.u32 %v6419_v54, %v4863_v53  ;;  %v4456_v4 = vor.u32 %v6317_v62, %v4455_v60  ;;  %v5319_v50 = vld [vmem:[#allocation5 + $0x8a8] sm:$0xf]  ;;  %v6290_v53 = vld [vmem:[#allocation5 + $0x12c] sm:$0xf]  ;;  %v4361_v54 = vld [vmem:[#allocation5 + $0x140] sm:$0xf0] }
  0x82   :  { %2044 = vmatpush.bf16.msra.mxu3 %v5172_v0  ;;  %2006 = vmatmul.bf16.vlgmr.msra.gmra.mxu0 %v7074_v18  ;;  %v6365_v0 = vld [vmem:[#allocation5 + $0x37c] sm:$0xf0]  ;;  %v5103_v60 = vld [vmem:[#allocation5 + $0x6f8] sm:$0xf]  ;;  %v5031_v37 = vld [vmem:[#allocation5 + $0x668] sm:$0xf] }
  0x83   :  { %2050 = vmatpush.bf16.msrb.mxu0 %v4384_v1  ;;  %2019 = vmatmul.bf16.vlgmr.msra.gmra.mxu1 %v7078_v20  ;;  %v4839_v1 = vld [vmem:[#allocation5 + $0x4e8] sm:$0xf]  ;;  %v4648_v5 = vor.u32 %v6365_v0, %v4647_v63  ;;  %v5295_v62 = vld [vmem:[#allocation5 + $0x878] sm:$0xf]  ;;  %v6527_v0 = vld [vmem:[#allocation5 + $0x88c] sm:$0xf0] }
  0x84   :  { %2063 = vmatpush.bf16.msrb.mxu1 %v4576_v2  ;;  %2032 = vmatmul.bf16.vlgmr.msra.gmra.mxu2 %v7086_v35  ;;  %v6413_v2 = vld [vmem:[#allocation5 + $0x4fc] sm:$0xf0] }
  0x85   :  { %2076 = vmatpush.bf16.msrb.mxu2 %v4768_v3  ;;  %2045 = vmatmul.bf16.vlgmr.msra.gmra.mxu3 %v7088_v38  ;;  %v4264_v3 = vor.u32 %v6269_v59, %v4263_v58  ;;  %v4840_v9 = vor.u32 %v6413_v2, %v4839_v1  ;;  %v5320_v58 = vor.u32 %v6533_v52, %v5319_v50  ;;  %v6284_v1 = vld [vmem:[#allocation5 + $0xfc] sm:$0xf]  ;;  %v4337_v2 = vld [vmem:[#allocation5 + $0x110] sm:$0xf0]  ;;  %v5007_v50 = vld [vmem:[#allocation5 + $0x638] sm:$0xf] }
  0x86   :  { %2089 = vmatpush.bf16.msrb.mxu3 %v4960_v7  ;;  %v6263_v7 = vld [vmem:[#allocation5 + $0x4c] sm:$0xf0]  ;;  %v4364_v59 = vor.u32 %v6290_v53, %v4361_v54  ;;  %v5199_v52 = vld [vmem:[#allocation5 + $0x7b8] sm:$0xf] }
  0x87   :  { %2051 = vmatpush.bf16.msrb.mxu0 %v4360_v13  ;;  %v4815_v13 = vld [vmem:[#allocation5 + $0x4b8] sm:$0xf]  ;;  %v6503_v54 = vld [vmem:[#allocation5 + $0x7cc] sm:$0xf0] }
  0x88   :  { %2064 = vmatpush.bf16.msrb.mxu1 %v4552_v14  ;;  %v6407_v14 = vld [vmem:[#allocation5 + $0x4cc] sm:$0xf0] }
  0x89   :  { %2077 = vmatpush.bf16.msrb.mxu2 %v4744_v15  ;;  %v4240_v15 = vor.u32 %v6263_v7, %v4239_v6  ;;  %v4816_v27 = vor.u32 %v6407_v14, %v4815_v13  ;;  %v5296_v6 = vor.u32 %v6527_v0, %v5295_v62  ;;  %v4340_v7 = vor.u32 %v6284_v1, %v4337_v2  ;;  %v6278_v13 = vld [vmem:[#allocation5 + $0xcc] sm:$0xf]  ;;  %v4313_v14 = vld [vmem:[#allocation5 + $0xe0] sm:$0xf0]  ;;  %v5175_v0 = vld [vmem:[#allocation5 + $0x788] sm:$0xf] }
  0x8a   :  { %2090 = vmatpush.bf16.msrb.mxu3 %v4936_v23  ;;  %v4624_v23 = vor.u32 %v6359_v12, %v4623_v11  ;;  %v6521_v12 = vld [vmem:[#allocation5 + $0x85c] sm:$0xf0]  ;;  %v5200_v62 = vor.u32 %v6503_v54, %v5199_v52  ;;  %v6254_v2 = vld [vmem:[#allocation5 + $0xc] sm:$0xf] }
  0x8b   :  { %2052 = vmatpush.bf16.msrb.mxu0 %v4336_v29  ;;  %v4791_v29 = vld [vmem:[#allocation5 + $0x488] sm:$0xf]  ;;  %v6497_v1 = vld [vmem:[#allocation5 + $0x79c] sm:$0xf0]  ;;  %v6374_v52 = vld [vmem:[#allocation5 + $0x3cc] sm:$0xf] }
  0x8c   :  { %2065 = vmatpush.bf16.msrb.mxu1 %v4528_v30  ;;  %v6401_v30 = vld [vmem:[#allocation5 + $0x49c] sm:$0xf0]  ;;  %v6422_v54 = vld [vmem:[#allocation5 + $0x54c] sm:$0xf] }
  0x8d   :  { %2078 = vmatpush.bf16.msrb.mxu2 %v4720_v31  ;;  %v5151_v31 = vld [vmem:[#allocation5 + $0x758] sm:$0xf] }
  0x8e   :  { %2091 = vmatpush.bf16.msrb.mxu3 %v4912_v36  ;;  %v6539_v36 = vld [vmem:[#allocation5 + $0x8ec] sm:$0xf0] }
  0x8f   :  { %2053 = vmatpush.bf16.msrb.mxu0 %v4312_v43  ;;  %v4577_v43 = vld [vmem:[#allocation5 + $0x2f0] sm:$0xf0]  ;;  %v5344_v46 = vor.u32 %v6539_v36, %v5343_v33  ;;  %v5056_v33 = vor.u32 %v6467_v25, %v5055_v24 }
  0x90   :  { %2066 = vmatpush.bf16.msrb.mxu1 %v4504_v44  ;;  %v4792_v44 = vor.u32 %v6401_v30, %v4791_v29  ;;  %v4580_v51 = vor.u32 %v6344_v42, %v4577_v43  ;;  %v6272_v29 = vld [vmem:[#allocation5 + $0x9c] sm:$0xf]  ;;  %v4289_v30 = vld [vmem:[#allocation5 + $0xb0] sm:$0xf0]  ;;  %v6509_v42 = vld [vmem:[#allocation5 + $0x7fc] sm:$0xf0] }
  0x91   :  { %2079 = vmatpush.bf16.msrb.mxu2 %v4696_v45  ;;  %v5152_v45 = vor.u32 %v6491_v32, %v5151_v31  ;;  %v6320_v31 = vld [vmem:[#allocation5 + $0x21c] sm:$0xf]  ;;  %v4481_v32 = vld [vmem:[#allocation5 + $0x230] sm:$0xf0]  ;;  %v4292_v36 = vor.u32 %v6272_v29, %v4289_v30  ;;  %v6266_v43 = vld [vmem:[#allocation5 + $0x6c] sm:$0xf] }
  0x92   :  { %2092 = vmatpush.bf16.msrb.mxu3 %v4888_v49  ;;  %v6485_v49 = vld [vmem:[#allocation5 + $0x73c] sm:$0xf0]  ;;  %v4937_v30 = vld [vmem:[#allocation5 + $0x5c0] sm:$0xf0] }
  0x93   :  { %2054 = vmatpush.bf16.msrb.mxu0 %v4288_v55  ;;  %v6338_v55 = vld [vmem:[#allocation5 + $0x2ac] sm:$0xf] }
  0x94   :  { %2067 = vmatpush.bf16.msrb.mxu1 %v4480_v56  ;;  %v4553_v56 = vld [vmem:[#allocation5 + $0x2c0] sm:$0xf0] }
  0x95   :  { %2080 = vmatpush.bf16.msrb.mxu2 %v4672_v57  ;;  %v5128_v57 = vor.u32 %v6485_v49, %v5127_v48  ;;  %v4556_v63 = vor.u32 %v6338_v55, %v4553_v56  ;;  %v6260_v55 = vld [vmem:[#allocation5 + $0x3c] sm:$0xf]  ;;  %v4241_v56 = vld [vmem:[#allocation5 + $0x50] sm:$0xf0] }
  0x96   :  { %2093 = vmatpush.bf16.msrb.mxu3 %v4864_v61  ;;  %v6479_v61 = vld [vmem:[#allocation5 + $0x70c] sm:$0xf0] }
  0x97   :  { %2055 = vmatpush.bf16.msrb.mxu0 %v4264_v3  ;;  %v6332_v3 = vld [vmem:[#allocation5 + $0x27c] sm:$0xf] }
  0x98   :  { %2068 = vmatpush.bf16.msrb.mxu1 %v4456_v4  ;;  %v4529_v4 = vld [vmem:[#allocation5 + $0x290] sm:$0xf0] }
  0x99   :  { %2081 = vmatpush.bf16.msrb.mxu2 %v4648_v5  ;;  %v5104_v5 = vor.u32 %v6479_v61, %v5103_v60  ;;  %v4532_v11 = vor.u32 %v6332_v3, %v4529_v4  ;;  %v4983_v60 = vld [vmem:[#allocation5 + $0x608] sm:$0xf]  ;;  %v6449_v61 = vld [vmem:[#allocation5 + $0x61c] sm:$0xf0]  ;;  %v4217_v4 = vld [vmem:[#allocation5 + $0x20] sm:$0xf0] }
  0x9a   :  { %2094 = vmatpush.bf16.msrb.mxu3 %v4840_v9  ;;  %v6473_v9 = vld [vmem:[#allocation5 + $0x6dc] sm:$0xf0] }
  0x9b   :  { %2056 = vmatpush.bf16.msrb.mxu0 %v4240_v15  ;;  %v6326_v15 = vld [vmem:[#allocation5 + $0x24c] sm:$0xf]  ;;  %v5080_v17 = vor.u32 %v6473_v9, %v5079_v8  ;;  %v4769_v8 = vld [vmem:[#allocation5 + $0x470] sm:$0xf0]  ;;  %v6440_v9 = vld [vmem:[#allocation5 + $0x5dc] sm:$0xf] }
  0x9c   :  { %2069 = vmatpush.bf16.msrb.mxu1 %v4432_v21  ;;  %v5272_v21 = vor.u32 %v6521_v12, %v5271_v10  ;;  %v4984_v10 = vor.u32 %v6449_v61, %v4983_v60  ;;  %v6488_v12 = vld [vmem:[#allocation5 + $0x75c] sm:$0xf]  ;;  %v5273_v60 = vld [vmem:[#allocation5 + $0x860] sm:$0xf0] }
  0x9d   :  { %2082 = vmatpush.bf16.msrb.mxu2 %v4624_v23  ;;  %v4316_v23 = vor.u32 %v6278_v13, %v4313_v14  ;;  %v5153_v13 = vld [vmem:[#allocation5 + $0x770] sm:$0xf0]  ;;  %v5176_v14 = vor.u32 %v6497_v1, %v5175_v0 }
  0x9e   :  { %2095 = vmatpush.bf16.msrb.mxu3 %v4816_v27  ;;  %v4508_v27 = vor.u32 %v6326_v15, %v4505_v16  ;;  %v4220_v15 = vor.u32 %v6254_v2, %v4217_v4  ;;  %v6536_v16 = vld [vmem:[#allocation5 + $0x8dc] sm:$0xf]  ;;  %v5156_v25 = vor.u32 %v6488_v12, %v5153_v13  ;;  %v4673_v1 = vld [vmem:[#allocation5 + $0x3b0] sm:$0xf0] }
  0x9f   :  { %2057 = vmatpush.bf16.msrb.mxu0 %v4216_v34  ;;  %v5248_v34 = vor.u32 %v6515_v28, %v5247_v26  ;;  %v6386_v26 = vld [vmem:[#allocation5 + $0x42c] sm:$0xf]  ;;  %v6416_v2 = vld [vmem:[#allocation5 + $0x51c] sm:$0xf] }
  0xa0   :  { %2070 = vmatpush.bf16.msrb.mxu1 %v4408_v40  ;;  %v5223_v40 = vld [vmem:[#allocation5 + $0x7e8] sm:$0xf]  ;;  %v6434_v28 = vld [vmem:[#allocation5 + $0x5ac] sm:$0xf] }
  0xa1   :  { %2083 = vmatpush.bf16.msrb.mxu2 %v4600_v41  ;;  %v4484_v41 = vor.u32 %v6320_v31, %v4481_v32  ;;  %v5224_v48 = vor.u32 %v6509_v42, %v5223_v40  ;;  %v6482_v31 = vld [vmem:[#allocation5 + $0x72c] sm:$0xf]  ;;  %v5129_v32 = vld [vmem:[#allocation5 + $0x740] sm:$0xf0]  ;;  %v6380_v40 = vld [vmem:[#allocation5 + $0x3fc] sm:$0xf] }
  0xa2   :  { %2096 = vmatpush.bf16.msrb.mxu3 %v4792_v44  ;;  %2058 = vmatmul.bf16.vlgmr.msrb.gmra.mxu0 %v7076_v19  ;;  %v4265_v44 = vld [vmem:[#allocation5 + $0x80] sm:$0xf0]  ;;  %v6428_v42 = vld [vmem:[#allocation5 + $0x57c] sm:$0xf] }
  0xa3   :  { %2102 = vmatpush.bf16.msra.mxu0 %v5152_v45  ;;  %2071 = vmatmul.bf16.vlgmr.msrb.gmra.mxu1 %v7080_v22  ;;  %v6314_v45 = vld [vmem:[#allocation5 + $0x1ec] sm:$0xf]  ;;  %v4268_v49 = vor.u32 %v6266_v43, %v4265_v44  ;;  %v4913_v44 = vld [vmem:[#allocation5 + $0x590] sm:$0xf0] }
  0xa4   :  { %2115 = vmatpush.bf16.msra.mxu1 %v5344_v46  ;;  %2084 = vmatmul.bf16.vlgmr.msrb.gmra.mxu2 %v7074_v18  ;;  %v4457_v46 = vld [vmem:[#allocation5 + $0x200] sm:$0xf0] }
  0xa5   :  { %2128 = vmatpush.bf16.msra.mxu2 %v4388_v47  ;;  %2097 = vmatmul.bf16.vlgmr.msrb.gmra.mxu3 %v7078_v20  ;;  %v5032_v47 = vor.u32 %v6461_v39, %v5031_v37  ;;  %v4460_v53 = vor.u32 %v6314_v45, %v4457_v46  ;;  %v4940_v37 = vor.u32 %v6434_v28, %v4937_v30  ;;  %v6476_v45 = vld [vmem:[#allocation5 + $0x6fc] sm:$0xf]  ;;  %v5105_v46 = vld [vmem:[#allocation5 + $0x710] sm:$0xf0] }
  0xa6   :  { %2141 = vmatpush.bf16.msra.mxu3 %v4580_v51  ;;  %v6455_v51 = vld [vmem:[#allocation5 + $0x64c] sm:$0xf0]  ;;  %v5132_v39 = vor.u32 %v6482_v31, %v5129_v32  ;;  %v6356_v31 = vld [vmem:[#allocation5 + $0x33c] sm:$0xf]  ;;  %v4625_v32 = vld [vmem:[#allocation5 + $0x350] sm:$0xf0] }
  0xa7   :  { %2103 = vmatpush.bf16.msra.mxu0 %v5128_v57  ;;  %v6308_v57 = vld [vmem:[#allocation5 + $0x1bc] sm:$0xf] }
  0xa8   :  { %2116 = vmatpush.bf16.msra.mxu1 %v5320_v58  ;;  %v4433_v58 = vld [vmem:[#allocation5 + $0x1d0] sm:$0xf0] }
  0xa9   :  { %2129 = vmatpush.bf16.msra.mxu2 %v4364_v59  ;;  %v5008_v59 = vor.u32 %v6455_v51, %v5007_v50  ;;  %v4436_v3 = vor.u32 %v6308_v57, %v4433_v58  ;;  %v4916_v50 = vor.u32 %v6428_v42, %v4913_v44  ;;  %v5108_v51 = vor.u32 %v6476_v45, %v5105_v46  ;;  %v6470_v57 = vld [vmem:[#allocation5 + $0x6cc] sm:$0xf]  ;;  %v5081_v58 = vld [vmem:[#allocation5 + $0x6e0] sm:$0xf0]  ;;  %v6500_v42 = vld [vmem:[#allocation5 + $0x7bc] sm:$0xf] }
  0xaa   :  { %2142 = vmatpush.bf16.msra.mxu3 %v4556_v63  ;;  %v4244_v63 = vor.u32 %v6260_v55, %v4241_v56  ;;  %v4889_v56 = vld [vmem:[#allocation5 + $0x560] sm:$0xf0]  ;;  %v5084_v0 = vor.u32 %v6470_v57, %v5081_v58  ;;  %v4628_v45 = vor.u32 %v6356_v31, %v4625_v32  ;;  %v6350_v46 = vld [vmem:[#allocation5 + $0x30c] sm:$0xf] }
  0xab   :  { %2104 = vmatpush.bf16.msra.mxu0 %v5104_v5  ;;  %v6302_v5 = vld [vmem:[#allocation5 + $0x18c] sm:$0xf]  ;;  %v5177_v57 = vld [vmem:[#allocation5 + $0x7a0] sm:$0xf0] }
  0xac   :  { %2117 = vmatpush.bf16.msra.mxu1 %v5296_v6  ;;  %v4409_v6 = vld [vmem:[#allocation5 + $0x1a0] sm:$0xf0] }
  0xad   :  { %2130 = vmatpush.bf16.msra.mxu2 %v4340_v7  ;;  %v6392_v7 = vld [vmem:[#allocation5 + $0x45c] sm:$0xf] }
  0xae   :  { %2143 = vmatpush.bf16.msra.mxu3 %v4532_v11  ;;  %v4961_v11 = vld [vmem:[#allocation5 + $0x5f0] sm:$0xf0] }
  0xaf   :  { %2105 = vmatpush.bf16.msra.mxu0 %v5080_v17  ;;  %v5345_v17 = vld [vmem:[#allocation5 + $0x8f0] sm:$0xf0]  ;;  %v4964_v24 = vor.u32 %v6440_v9, %v4961_v11  ;;  %v6362_v11 = vld [vmem:[#allocation5 + $0x36c] sm:$0xf] }
  0xb0   :  { %2118 = vmatpush.bf16.msra.mxu1 %v5272_v21  ;;  %v4412_v21 = vor.u32 %v6302_v5, %v4409_v6  ;;  %v5348_v29 = vor.u32 %v6536_v16, %v5345_v17  ;;  %v6464_v5 = vld [vmem:[#allocation5 + $0x69c] sm:$0xf]  ;;  %v5057_v6 = vld [vmem:[#allocation5 + $0x6b0] sm:$0xf0] }
  0xb1   :  { %2131 = vmatpush.bf16.msra.mxu2 %v4316_v23  ;;  %v4772_v23 = vor.u32 %v6392_v7, %v4769_v8  ;;  %v7106_v7 = vld [vmem:[#allocation7] sm:$0x3f]  ;;  %v6512_v8 = vld [vmem:[#allocation5 + $0x81c] sm:$0xf]  ;;  %v5249_v9 = vld [vmem:[#allocation5 + $0x830] sm:$0xf0]  ;;  %v5060_v13 = vor.u32 %v6464_v5, %v5057_v6 }
  0xb2   :  { %2144 = vmatpush.bf16.msra.mxu3 %v4508_v27  ;;  %v4745_v27 = vld [vmem:[#allocation5 + $0x440] sm:$0xf0]  ;;  %v421_v16 = vperm.slane %v7106_v7, 0  ;;  %v5252_v17 = vor.u32 %v6512_v8, %v5249_v9  ;;  %v4967_v8 = vld [vmem:[#allocation5 + $0x5e0] sm:$0xf] }
  0xb3   :  { %2106 = vmatpush.bf16.msra.mxu0 %v5056_v33  ;;  %v6530_v33 = vld [vmem:[#allocation5 + $0x8ac] sm:$0xf]  ;;  %v6444_v9 = vld [vmem:[#allocation5 + $0x5f4] sm:$0xf0] }
  0xb4   :  { %2119 = vmatpush.bf16.msra.mxu1 %v5248_v34  ;;  %v5321_v34 = vld [vmem:[#allocation5 + $0x8c0] sm:$0xf0] }
  0xb5   :  { %2132 = vmatpush.bf16.msra.mxu2 %v4292_v36  ;;  %v4748_v36 = vor.u32 %v6386_v26, %v4745_v27  ;;  %v5324_v43 = vor.u32 %v6530_v33, %v5321_v34  ;;  %v5225_v26 = vld [vmem:[#allocation5 + $0x800] sm:$0xf0]  ;;  %v6404_v33 = vld [vmem:[#allocation5 + $0x4bc] sm:$0xf] }
  0xb6   :  { %2145 = vmatpush.bf16.msra.mxu3 %v4484_v41  ;;  %v4721_v41 = vld [vmem:[#allocation5 + $0x410] sm:$0xf0] }
  0xb7   :  { %2107 = vmatpush.bf16.msra.mxu0 %v5032_v47  ;;  %v6524_v47 = vld [vmem:[#allocation5 + $0x87c] sm:$0xf] }
  0xb8   :  { %2120 = vmatpush.bf16.msra.mxu1 %v5224_v48  ;;  %v5297_v48 = vld [vmem:[#allocation5 + $0x890] sm:$0xf0] }
  0xb9   :  { %2133 = vmatpush.bf16.msra.mxu2 %v4268_v49  ;;  %v4724_v49 = vor.u32 %v6380_v40, %v4721_v41  ;;  %v5300_v55 = vor.u32 %v6524_v47, %v5297_v48  ;;  %v6452_v40 = vld [vmem:[#allocation5 + $0x63c] sm:$0xf]  ;;  %v5009_v41 = vld [vmem:[#allocation5 + $0x650] sm:$0xf0]  ;;  %v4601_v47 = vld [vmem:[#allocation5 + $0x320] sm:$0xf0] }
  0xba   :  { %2146 = vmatpush.bf16.msra.mxu3 %v4460_v53  ;;  %v4697_v53 = vld [vmem:[#allocation5 + $0x3e0] sm:$0xf0] }
  0xbb   :  { %2108 = vmatpush.bf16.msra.mxu0 %v5008_v59  ;;  %v6518_v59 = vld [vmem:[#allocation5 + $0x84c] sm:$0xf]  ;;  %v4700_v61 = vor.u32 %v6374_v52, %v4697_v53 }
  0xbc   :  { %2121 = vmatpush.bf16.msra.mxu1 %v5200_v62  ;;  %v6368_v62 = vld [vmem:[#allocation5 + $0x39c] sm:$0xf]  ;;  %v5276_v4 = vor.u32 %v6518_v59, %v5273_v60  ;;  %v6446_v52 = vld [vmem:[#allocation5 + $0x60c] sm:$0xf]  ;;  %v4391_v60 = vld [vmem:[#allocation5 + $0x160] sm:$0xf] }
  0xbd   :  { %2134 = vmatpush.bf16.msra.mxu2 %v4244_v63  ;;  %v4892_v63 = vor.u32 %v6422_v54, %v4889_v56  ;;  %v6494_v56 = vld [vmem:[#allocation5 + $0x78c] sm:$0xf] }
  0xbe   :  { %2147 = vmatpush.bf16.msra.mxu3 %v4436_v3  ;;  %v4865_v3 = vld [vmem:[#allocation5 + $0x530] sm:$0xf0] }
  0xbf   :  { %2109 = vmatpush.bf16.msra.mxu0 %v4984_v10  ;;  %v4676_v10 = vor.u32 %v6368_v62, %v4673_v1  ;;  %v4868_v12 = vor.u32 %v6416_v2, %v4865_v3  ;;  %v4583_v62 = vld [vmem:[#allocation5 + $0x2e0] sm:$0xf]  ;;  %v6396_v2 = vld [vmem:[#allocation5 + $0x474] sm:$0xf0] }
  0xc0   :  { %2122 = vmatpush.bf16.msra.mxu1 %v5176_v14  ;;  %v4649_v14 = vld [vmem:[#allocation5 + $0x380] sm:$0xf0]  ;;  %v4775_v1 = vld [vmem:[#allocation5 + $0x460] sm:$0xf] }
  0xc1   :  { %2135 = vmatpush.bf16.msra.mxu2 %v4220_v15  ;;  %v6410_v15 = vld [vmem:[#allocation5 + $0x4ec] sm:$0xf]  ;;  %v4652_v27 = vor.u32 %v6362_v11, %v4649_v14  ;;  %v5180_v11 = vor.u32 %v6494_v56, %v5177_v57  ;;  %v4776_v14 = vor.u32 %v6396_v2, %v4775_v1  ;;  %v6324_v2 = vld [vmem:[#allocation5 + $0x234] sm:$0xf0] }
  0xc2   :  { %2148 = vmatpush.bf16.msra.mxu3 %v4412_v21  ;;  %2110 = vmatmul.bf16.vlgmr.msra.gmra.mxu0 %v7086_v35  ;;  %v4841_v21 = vld [vmem:[#allocation5 + $0x500] sm:$0xf0]  ;;  %v1903_v28 = vpop.f32.mrf.mxu0 }
  0xc3   :  { %2154 = vmatpush.bf16.msrb.mxu0 %v4772_v23  ;;  %2123 = vmatmul.bf16.vlgmr.msra.gmra.mxu1 %v7088_v38  ;;  %v6458_v23 = vld [vmem:[#allocation5 + $0x66c] sm:$0xf]  ;;  %v1904_v34 = vadd.f32 %v1903_v28, %v421_v16  ;;  %v6294_v16 = vld [vmem:[#allocation5 + $0x144] sm:$0xf0] }
  0xc4   :  { %2167 = vmatpush.bf16.msrb.mxu1 %v4964_v24  ;;  %2136 = vmatmul.bf16.vlgmr.msra.gmra.mxu2 %v7076_v19  ;;  %v5033_v24 = vld [vmem:[#allocation5 + $0x680] sm:$0xf0] }
  0xc5   :  { %2180 = vmatpush.bf16.msrb.mxu2 %v5156_v25  ;;  %2149 = vmatmul.bf16.vlgmr.msra.gmra.mxu3 %v7080_v22  ;;  %v6506_v25 = vld [vmem:[#allocation5 + $0x7ec] sm:$0xf]  ;;  %v5036_v30 = vor.u32 %v6458_v23, %v5033_v24  ;;  %v6342_v23 = vld [vmem:[#allocation5 + $0x2c4] sm:$0xf0]  ;;  %v4751_v24 = vld [vmem:[#allocation5 + $0x430] sm:$0xf] }
  0xc6   :  { %2193 = vmatpush.bf16.msrb.mxu3 %v5348_v29  ;;  %v4844_v29 = vor.u32 %v6410_v15, %v4841_v21  ;;  %v4367_v15 = vld [vmem:[#allocation5 + $0x130] sm:$0xf]  ;;  %v4968_v21 = vor.u32 %v6444_v9, %v4967_v8  ;;  %v4871_v8 = vld [vmem:[#allocation5 + $0x520] sm:$0xf]  ;;  %v6420_v9 = vld [vmem:[#allocation5 + $0x534] sm:$0xf0] }
  0xc7   :  { %2155 = vmatpush.bf16.msrb.mxu0 %v4748_v36  ;;  %v1916_v36 = vpop.f32.mrf.mxu1  ;;  %v1929_v53 = vpop.f32.mrf.mxu2 }
  0xc8   :  { %2168 = vmatpush.bf16.msrb.mxu1 %v4940_v37  ;;  %v5228_v37 = vor.u32 %v6506_v25, %v5225_v26  ;;  %v1917_v44 = vadd.f32 %v1916_v36, %v1904_v34  ;;  %v6390_v25 = vld [vmem:[#allocation5 + $0x444] sm:$0xf0]  ;;  %v4943_v26 = vld [vmem:[#allocation5 + $0x5b0] sm:$0xf]  ;;  %v6288_v34 = vld [vmem:[#allocation5 + $0x114] sm:$0xf0] }
  0xc9   :  { %2181 = vmatpush.bf16.msrb.mxu2 %v5132_v39  ;;  %v4817_v39 = vld [vmem:[#allocation5 + $0x4d0] sm:$0xf0]  ;;  %v4752_v32 = vor.u32 %v6390_v25, %v4751_v24  ;;  %v4535_v36 = vld [vmem:[#allocation5 + $0x280] sm:$0xf]  ;;  %v4847_v25 = vld [vmem:[#allocation5 + $0x4f0] sm:$0xf] }
  0xca   :  { %2194 = vmatpush.bf16.msrb.mxu3 %v5324_v43  ;;  %v5201_v43 = vld [vmem:[#allocation5 + $0x7d0] sm:$0xf0]  ;;  %v4820_v48 = vor.u32 %v6404_v33, %v4817_v39  ;;  %v1930_v58 = vadd.f32 %v1929_v53, %v1917_v44  ;;  %v1942_v59 = vpop.f32.mrf.mxu3  ;;  %v4343_v33 = vld [vmem:[#allocation5 + $0x100] sm:$0xf]  ;;  %v6336_v39 = vld [vmem:[#allocation5 + $0x294] sm:$0xf0] }
  0xcb   :  { %2156 = vmatpush.bf16.msrb.mxu0 %v4724_v49  ;;  %v5012_v49 = vor.u32 %v6452_v40, %v5009_v41  ;;  %v5204_v54 = vor.u32 %v6500_v42, %v5201_v43  ;;  %v4727_v40 = vld [vmem:[#allocation5 + $0x400] sm:$0xf]  ;;  %v6384_v41 = vld [vmem:[#allocation5 + $0x414] sm:$0xf0]  ;;  %v4344_v44 = vor.u32 %v6288_v34, %v4343_v33  ;;  %v6378_v53 = vld [vmem:[#allocation5 + $0x3e4] sm:$0xf0] }
  0xcc   :  { %2169 = vmatpush.bf16.msrb.mxu1 %v4916_v50  ;;  %v6398_v50 = vld [vmem:[#allocation5 + $0x48c] sm:$0xf]  ;;  %v7109_v3 = vadd.f32 %v1942_v59, %v1930_v58  ;;  %v4919_v42 = vld [vmem:[#allocation5 + $0x580] sm:$0xf]  ;;  %v6432_v43 = vld [vmem:[#allocation5 + $0x594] sm:$0xf0] }
  0xcd   :  { %2182 = vmatpush.bf16.msrb.mxu2 %v5108_v51  ;;  %v4793_v51 = vld [vmem:[#allocation5 + $0x4a0] sm:$0xf0]  ;;  %v4247_v34 = vld [vmem:[#allocation5 + $0x40] sm:$0xf] }
  0xce   :  { %2195 = vmatpush.bf16.msrb.mxu3 %v5300_v55  ;;  %v4985_v55 = vld [vmem:[#allocation5 + $0x620] sm:$0xf0]  ;;  %v4796_v5 = vor.u32 %v6398_v50, %v4793_v51  ;;  %v4920_v50 = vor.u32 %v6432_v43, %v4919_v42  ;;  %v6330_v51 = vld [vmem:[#allocation5 + $0x264] sm:$0xf0]  ;;  %v4631_v42 = vld [vmem:[#allocation5 + $0x340] sm:$0xf] }
  0xcf   :  { %2157 = vmatpush.bf16.msrb.mxu0 %v4700_v61  ;;  %v6300_v61 = vld [vmem:[#allocation5 + $0x174] sm:$0xf0]  ;;  %v4988_v6 = vor.u32 %v6446_v52, %v4985_v55  ;;  %v1931_v28 = vpop.f32.mrf.mxu2  ;;  %v4703_v52 = vld [vmem:[#allocation5 + $0x3d0] sm:$0xf]  ;;  %v6426_v55 = vld [vmem:[#allocation5 + $0x564] sm:$0xf0] }
  0xd0   :  { %2170 = vmatpush.bf16.msrb.mxu1 %v4892_v63  ;;  %v4604_v63 = vor.u32 %v6350_v46, %v4601_v47  ;;  %v4728_v46 = vor.u32 %v6384_v41, %v4727_v40  ;;  %v4319_v47 = vld [vmem:[#allocation5 + $0xd0] sm:$0xf]  ;;  %v6312_v41 = vld [vmem:[#allocation5 + $0x1d4] sm:$0xf0] }
  0xd1   :  { %2183 = vmatpush.bf16.msrb.mxu2 %v5084_v0  ;;  %v6348_v0 = vld [vmem:[#allocation5 + $0x2f4] sm:$0xf0] }
  0xd2   :  { %2196 = vmatpush.bf16.msrb.mxu3 %v5276_v4  ;;  %v1905_v4 = vpop.f32.mrf.mxu0  ;;  %v6360_v43 = vld [vmem:[#allocation5 + $0x354] sm:$0xf0] }
  0xd3   :  { %2158 = vmatpush.bf16.msrb.mxu0 %v4676_v10  ;;  %v1918_v10 = vpop.f32.mrf.mxu1  ;;  %v4679_v4 = vld [vmem:[#allocation5 + $0x3a0] sm:$0xf] }
  0xd4   :  { %2171 = vmatpush.bf16.msrb.mxu1 %v4868_v12  ;;  %v4392_v12 = vor.u32 %v6300_v61, %v4391_v60  ;;  %v4704_v61 = vor.u32 %v6378_v53, %v4703_v52  ;;  %v422_v10 = vperm.slane %v7106_v7, 1  ;;  %v6306_v52 = vld [vmem:[#allocation5 + $0x1a4] sm:$0xf0]  ;;  %v4607_v53 = vld [vmem:[#allocation5 + $0x310] sm:$0xf] }
  0xd5   :  { %2184 = vmatpush.bf16.msrb.mxu2 %v5060_v13  ;;  %v4584_v13 = vor.u32 %v6348_v0, %v4583_v62  ;;  %v4295_v62 = vld [vmem:[#allocation5 + $0xa0] sm:$0xf] }
  0xd6   :  { %2197 = vmatpush.bf16.msrb.mxu3 %v5252_v17  ;;  %v4559_v17 = vld [vmem:[#allocation5 + $0x2b0] sm:$0xf]  ;;  %v4487_v0 = vld [vmem:[#allocation5 + $0x220] sm:$0xf] }
  0xd7   :  { %2159 = vmatpush.bf16.msrb.mxu0 %v4652_v27  ;;  %v6438_v27 = vld [vmem:[#allocation5 + $0x5c4] sm:$0xf0]  ;;  %v4560_v31 = vor.u32 %v6342_v23, %v4559_v17 }
  0xd8   :  { %2172 = vmatpush.bf16.msrb.mxu1 %v4844_v29  ;;  %v4368_v29 = vor.u32 %v6294_v16, %v4367_v15  ;;  %v4463_v15 = vld [vmem:[#allocation5 + $0x1f0] sm:$0xf]  ;;  %v4872_v16 = vor.u32 %v6420_v9, %v4871_v8  ;;  %v6318_v17 = vld [vmem:[#allocation5 + $0x204] sm:$0xf0]  ;;  %v6345_v8 = vld [vmem:[#allocation5 + $0x2e4] sm:$0xf] }
  0xd9   :  { %2185 = vmatpush.bf16.msrb.mxu2 %v5036_v30  ;;  %v1944_v30 = vpop.f32.mrf.mxu3  ;;  %v6366_v23 = vld [vmem:[#allocation5 + $0x384] sm:$0xf0]  ;;  %v4585_v9 = vld [vmem:[#allocation5 + $0x2f8] sm:$0xf0] }
  0xda   :  { %2198 = vmatpush.bf16.msrb.mxu3 %v5228_v37  ;;  %v4944_v37 = vor.u32 %v6438_v27, %v4943_v26  ;;  %v6414_v26 = vld [vmem:[#allocation5 + $0x504] sm:$0xf0] }
  0xdb   :  { %2160 = vmatpush.bf16.msrb.mxu0 %v4628_v45  ;;  %v4536_v45 = vor.u32 %v6336_v39, %v4535_v36  ;;  %v6264_v36 = vld [vmem:[#allocation5 + $0x54] sm:$0xf0]  ;;  %v4848_v40 = vor.u32 %v6414_v26, %v4847_v25  ;;  %v4561_v25 = vld [vmem:[#allocation5 + $0x2c8] sm:$0xf0] }
  0xdc   :  { %2173 = vmatpush.bf16.msrb.mxu1 %v4820_v48  ;;  %v6282_v48 = vld [vmem:[#allocation5 + $0xe4] sm:$0xf0] }
  0xdd   :  { %2186 = vmatpush.bf16.msrb.mxu2 %v5012_v49  ;;  %v4511_v49 = vld [vmem:[#allocation5 + $0x250] sm:$0xf]  ;;  %v4320_v57 = vor.u32 %v6282_v48, %v4319_v47  ;;  %v6258_v48 = vld [vmem:[#allocation5 + $0x24] sm:$0xf0] }
  0xde   :  { %2199 = vmatpush.bf16.msrb.mxu3 %v5204_v54  ;;  %v4895_v54 = vld [vmem:[#allocation5 + $0x550] sm:$0xf]  ;;  %v4512_v60 = vor.u32 %v6330_v51, %v4511_v49 }
  0xdf   :  { %2161 = vmatpush.bf16.msrb.mxu0 %v4604_v63  ;;  %v1955_v56 = vpop.f32.mrf.mxu0  ;;  %v6276_v63 = vld [vmem:[#allocation5 + $0xb4] sm:$0xf0]  ;;  %v4896_v1 = vor.u32 %v6426_v55, %v4895_v54  ;;  %v4223_v47 = vld [vmem:[#allocation5 + $0x10] sm:$0xf]  ;;  %v6354_v55 = vld [vmem:[#allocation5 + $0x324] sm:$0xf0] }
  0xe0   :  { %2174 = vmatpush.bf16.msrb.mxu1 %v4796_v5  ;;  %v1956_v58 = vadd.f32 %v1955_v56, %v7109_v3  ;;  %v1968_v59 = vpop.f32.mrf.mxu1  ;;  %v6372_v5 = vld [vmem:[#allocation5 + $0x3b4] sm:$0xf0]  ;;  %v4296_v3 = vor.u32 %v6276_v63, %v4295_v62  ;;  %v4415_v51 = vld [vmem:[#allocation5 + $0x190] sm:$0xf]  ;;  %v4224_v63 = vor.u32 %v6258_v48, %v4223_v47  ;;  %v6522_v48 = vld [vmem:[#allocation5 + $0x864] sm:$0xf0] }
  0xe1   :  { %2187 = vmatpush.bf16.msrb.mxu2 %v4988_v6  ;;  %v4799_v56 = vld [vmem:[#allocation5 + $0x490] sm:$0xf] }
  0xe2   :  { %2200 = vmatpush.bf16.msrb.mxu3 %v5180_v11  ;;  %2162 = vmatmul.bf16.vlgmr.msrb.gmra.mxu0 %v7074_v18  ;;  %v7116_v6 = vadd.f32 %v1968_v59, %v1956_v58  ;;  %v4488_v11 = vor.u32 %v6324_v2, %v4487_v0  ;;  %v5159_v59 = vld [vmem:[#allocation5 + $0x760] sm:$0xf]  ;;  %v6540_v0 = vld [vmem:[#allocation5 + $0x8f4] sm:$0xf0]  ;;  %v4393_v2 = vld [vmem:[#allocation5 + $0x178] sm:$0xf0] }
  0xe3   :  { %2206 = vmatpush.bf16.msra.mxu0 %v4392_v12  ;;  %2175 = vmatmul.bf16.vlgmr.msrb.gmra.mxu1 %v7078_v20  ;;  %v4680_v12 = vor.u32 %v6372_v5, %v4679_v4  ;;  %v4416_v4 = vor.u32 %v6306_v52, %v4415_v51  ;;  %v4608_v5 = vor.u32 %v6354_v55, %v4607_v53  ;;  %v6327_v51 = vld [vmem:[#allocation5 + $0x254] sm:$0xf]  ;;  %v4513_v52 = vld [vmem:[#allocation5 + $0x268] sm:$0xf0] }
  0xe4   :  { %2219 = vmatpush.bf16.msra.mxu1 %v4584_v13  ;;  %2188 = vmatmul.bf16.vlgmr.msrb.gmra.mxu2 %v7086_v35  ;;  %v4271_v13 = vld [vmem:[#allocation5 + $0x70] sm:$0xf] }
  0xe5   :  { %2232 = vmatpush.bf16.msra.mxu2 %v4776_v14  ;;  %2201 = vmatmul.bf16.vlgmr.msrb.gmra.mxu3 %v7088_v38  ;;  %v6270_v14 = vld [vmem:[#allocation5 + $0x84] sm:$0xf0] }
  0xe6   :  { %2245 = vmatpush.bf16.msra.mxu3 %v4968_v21  ;;  %v4655_v21 = vld [vmem:[#allocation5 + $0x370] sm:$0xf]  ;;  %v4272_v30 = vor.u32 %v6270_v14, %v4271_v13  ;;  %v6486_v14 = vld [vmem:[#allocation5 + $0x744] sm:$0xf0] }
  0xe7   :  { %2207 = vmatpush.bf16.msra.mxu0 %v4368_v29  ;;  %v1981_v24 = vpop.f32.mrf.mxu2  ;;  %v1957_v29 = vpop.f32.mrf.mxu0  ;;  %v4656_v33 = vor.u32 %v6366_v23, %v4655_v21  ;;  %v5135_v13 = vld [vmem:[#allocation5 + $0x730] sm:$0xf]  ;;  %v6291_v21 = vld [vmem:[#allocation5 + $0x134] sm:$0xf]  ;;  %v4369_v23 = vld [vmem:[#allocation5 + $0x148] sm:$0xf0] }
  0xe8   :  { %2220 = vmatpush.bf16.msra.mxu1 %v4560_v31  ;;  %v1982_v27 = vadd.f32 %v1981_v24, %v422_v10  ;;  %v1994_v28 = vpop.f32.mrf.mxu3  ;;  %v1970_v31 = vpop.f32.mrf.mxu1  ;;  %v6339_v24 = vld [vmem:[#allocation5 + $0x2b4] sm:$0xf]  ;;  %v5136_v26 = vor.u32 %v6486_v14, %v5135_v13  ;;  %v5111_v29 = vld [vmem:[#allocation5 + $0x700] sm:$0xf]  ;;  %v6510_v14 = vld [vmem:[#allocation5 + $0x804] sm:$0xf0] }
  0xe9   :  { %2233 = vmatpush.bf16.msra.mxu2 %v4752_v32  ;;  %v4464_v32 = vor.u32 %v6318_v17, %v4463_v15  ;;  %v5327_v15 = vld [vmem:[#allocation5 + $0x8b0] sm:$0xf]  ;;  %v6534_v17 = vld [vmem:[#allocation5 + $0x8c4] sm:$0xf0]  ;;  %v5303_v31 = vld [vmem:[#allocation5 + $0x880] sm:$0xf] }
  0xea   :  { %2246 = vmatpush.bf16.msra.mxu3 %v4944_v37  ;;  %v4439_v37 = vld [vmem:[#allocation5 + $0x1c0] sm:$0xf]  ;;  %v7119_v39 = vadd.f32 %v1994_v28, %v1982_v27  ;;  %v5328_v27 = vor.u32 %v6534_v17, %v5327_v15  ;;  %v4372_v28 = vor.u32 %v6291_v21, %v4369_v23  ;;  %v6267_v15 = vld [vmem:[#allocation5 + $0x74] sm:$0xf] }
  0xeb   :  { %2208 = vmatpush.bf16.msra.mxu0 %v4344_v44  ;;  %v4823_v44 = vld [vmem:[#allocation5 + $0x4c0] sm:$0xf]  ;;  %v4440_v49 = vor.u32 %v6312_v41, %v4439_v37  ;;  %v6333_v37 = vld [vmem:[#allocation5 + $0x284] sm:$0xf]  ;;  %v6315_v23 = vld [vmem:[#allocation5 + $0x1f4] sm:$0xf] }
  0xec   :  { %2221 = vmatpush.bf16.msra.mxu1 %v4536_v45  ;;  %v6408_v45 = vld [vmem:[#allocation5 + $0x4d4] sm:$0xf0] }
  0xed   :  { %2234 = vmatpush.bf16.msra.mxu2 %v4728_v46  ;;  %v4248_v46 = vor.u32 %v6264_v36, %v4247_v34  ;;  %v4824_v54 = vor.u32 %v6408_v45, %v4823_v44  ;;  %v6285_v34 = vld [vmem:[#allocation5 + $0x104] sm:$0xf]  ;;  %v4345_v36 = vld [vmem:[#allocation5 + $0x118] sm:$0xf0]  ;;  %v5087_v44 = vld [vmem:[#allocation5 + $0x6d0] sm:$0xf] }
  0xee   :  { %2247 = vmatpush.bf16.msra.mxu3 %v4920_v50  ;;  %v4632_v50 = vor.u32 %v6360_v43, %v4631_v42  ;;  %v4348_v43 = vor.u32 %v6285_v34, %v4345_v36  ;;  %v6474_v45 = vld [vmem:[#allocation5 + $0x6e4] sm:$0xf0]  ;;  %v6504_v36 = vld [vmem:[#allocation5 + $0x7d4] sm:$0xf0] }
  0xef   :  { %2209 = vmatpush.bf16.msra.mxu0 %v4320_v57  ;;  %v6402_v57 = vld [vmem:[#allocation5 + $0x4a4] sm:$0xf0]  ;;  %v1983_v58 = vpop.f32.mrf.mxu2  ;;  %v5088_v53 = vor.u32 %v6474_v45, %v5087_v44  ;;  %v4991_v44 = vld [vmem:[#allocation5 + $0x610] sm:$0xf] }
  0xf0   :  { %2222 = vmatpush.bf16.msra.mxu1 %v4512_v60  ;;  %v6492_v60 = vld [vmem:[#allocation5 + $0x774] sm:$0xf0]  ;;  %v1996_v62 = vpop.f32.mrf.mxu3  ;;  %v4800_v10 = vor.u32 %v6402_v57, %v4799_v56  ;;  %v5063_v57 = vld [vmem:[#allocation5 + $0x6a0] sm:$0xf]  ;;  %v6450_v45 = vld [vmem:[#allocation5 + $0x624] sm:$0xf0] }
  0xf1   :  { %2235 = vmatpush.bf16.msra.mxu2 %v4704_v61  ;;  %v5351_v61 = vld [vmem:[#allocation5 + $0x8e0] sm:$0xf]  ;;  %v6468_v58 = vld [vmem:[#allocation5 + $0x6b4] sm:$0xf0]  ;;  %v4516_v62 = vor.u32 %v6327_v51, %v4513_v52 }
  0xf2   :  { %2248 = vmatpush.bf16.msra.mxu3 %v4896_v1  ;;  %v6297_v1 = vld [vmem:[#allocation5 + $0x164] sm:$0xf] }
  0xf3   :  { %2210 = vmatpush.bf16.msra.mxu0 %v4296_v3  ;;  %v5160_v3 = vor.u32 %v6492_v60, %v5159_v59  ;;  %v5255_v59 = vld [vmem:[#allocation5 + $0x820] sm:$0xf] }
  0xf4   :  { %2223 = vmatpush.bf16.msra.mxu1 %v4488_v11  ;;  %v5352_v11 = vor.u32 %v6540_v0, %v5351_v61  ;;  %v6273_v0 = vld [vmem:[#allocation5 + $0xa4] sm:$0xf] }
  0xf5   :  { %2236 = vmatpush.bf16.msra.mxu2 %v4680_v12  ;;  %v4396_v12 = vor.u32 %v6297_v1, %v4393_v2  ;;  %v4297_v1 = vld [vmem:[#allocation5 + $0xb8] sm:$0xf0]  ;;  %v6321_v2 = vld [vmem:[#allocation5 + $0x224] sm:$0xf] }
  0xf6   :  { %2249 = vmatpush.bf16.msra.mxu3 %v4872_v16  ;;  %v4588_v16 = vor.u32 %v6345_v8, %v4585_v9  ;;  %v5064_v8 = vor.u32 %v6468_v58, %v5063_v57  ;;  %v6393_v57 = vld [vmem:[#allocation5 + $0x464] sm:$0xf]  ;;  %v4777_v58 = vld [vmem:[#allocation5 + $0x478] sm:$0xf0] }
  0xf7   :  { %2211 = vmatpush.bf16.msra.mxu0 %v4272_v30  ;;  %v6480_v30 = vld [vmem:[#allocation5 + $0x714] sm:$0xf0] }
  0xf8   :  { %2224 = vmatpush.bf16.msra.mxu1 %v4464_v32  ;;  %v4564_v32 = vor.u32 %v6339_v24, %v4561_v25  ;;  %v5112_v41 = vor.u32 %v6480_v30, %v5111_v29  ;;  %v4465_v24 = vld [vmem:[#allocation5 + $0x208] sm:$0xf0]  ;;  %v5015_v30 = vld [vmem:[#allocation5 + $0x640] sm:$0xf] }
  0xf9   :  { %2237 = vmatpush.bf16.msra.mxu2 %v4656_v33  ;;  %v6528_v33 = vld [vmem:[#allocation5 + $0x894] sm:$0xf0]  ;;  %v4468_v34 = vor.u32 %v6315_v23, %v4465_v24 }
  0xfa   :  { %2250 = vmatpush.bf16.msra.mxu3 %v4848_v40  ;;  %v4537_v40 = vld [vmem:[#allocation5 + $0x298] sm:$0xf0]  ;;  %v5304_v42 = vor.u32 %v6528_v33, %v5303_v31  ;;  %v6456_v31 = vld [vmem:[#allocation5 + $0x654] sm:$0xf0] }
  0xfb   :  { %2212 = vmatpush.bf16.msra.mxu0 %v4248_v46  ;;  %v5279_v46 = vld [vmem:[#allocation5 + $0x850] sm:$0xf]  ;;  %v4540_v47 = vor.u32 %v6333_v37, %v4537_v40  ;;  %v6261_v37 = vld [vmem:[#allocation5 + $0x44] sm:$0xf]  ;;  %v4249_v40 = vld [vmem:[#allocation5 + $0x58] sm:$0xf0] }
  0xfc   :  { %2225 = vmatpush.bf16.msra.mxu1 %v4440_v49  ;;  %v6279_v49 = vld [vmem:[#allocation5 + $0xd4] sm:$0xf]  ;;  %v5280_v55 = vor.u32 %v6522_v48, %v5279_v46  ;;  %v5183_v48 = vld [vmem:[#allocation5 + $0x790] sm:$0xf] }
  0xfd   :  { %2238 = vmatpush.bf16.msra.mxu2 %v4632_v50  ;;  %v4321_v50 = vld [vmem:[#allocation5 + $0xe8] sm:$0xf0] }
  0xfe   :  { %2251 = vmatpush.bf16.msra.mxu3 %v4824_v54  ;;  %v4324_v56 = vor.u32 %v6279_v49, %v4321_v50  ;;  %v6498_v49 = vld [vmem:[#allocation5 + $0x7a4] sm:$0xf0]  ;;  %v6255_v50 = vld [vmem:[#allocation5 + $0x14] sm:$0xf] }
  0xff   :  { %2213 = vmatpush.bf16.msra.mxu0 %v4224_v63  ;;  %v2007_v54 = vpop.f32.mrf.mxu0  ;;  %v6516_v63 = vld [vmem:[#allocation5 + $0x834] sm:$0xf0] }
 0x100   :  { %2226 = vmatpush.bf16.msra.mxu1 %v4416_v4  ;;  %v2008_v60 = vadd.f32 %v2007_v54, %v7119_v39  ;;  %v2020_v61 = vpop.f32.mrf.mxu1  ;;  %v4489_v4 = vld [vmem:[#allocation5 + $0x238] sm:$0xf0]  ;;  %v5256_v9 = vor.u32 %v6516_v63, %v5255_v59  ;;  %v6303_v54 = vld [vmem:[#allocation5 + $0x194] sm:$0xf]  ;;  %v6441_v59 = vld [vmem:[#allocation5 + $0x5e4] sm:$0xf] }
 0x101   :  { %2239 = vmatpush.bf16.msra.mxu2 %v4608_v5  ;;  %v4492_v39 = vor.u32 %v6321_v2, %v4489_v4  ;;  %v5161_v63 = vld [vmem:[#allocation5 + $0x778] sm:$0xf0]  ;;  %v6537_v2 = vld [vmem:[#allocation5 + $0x8e4] sm:$0xf] }
 0x102   :  { %2252 = vmatpush.bf16.msra.mxu3 %v4800_v10  ;;  %2214 = vmatmul.bf16.vlgmr.msra.gmra.mxu0 %v7076_v19  ;;  %v2021_v5 = vadd.f32 %v2020_v61, %v2008_v60  ;;  %v4300_v10 = vor.u32 %v6273_v0, %v4297_v1  ;;  %v4992_v60 = vor.u32 %v6450_v45, %v4991_v44  ;;  %v4969_v61 = vld [vmem:[#allocation5 + $0x5f8] sm:$0xf0]  ;;  %v4897_v45 = vld [vmem:[#allocation5 + $0x568] sm:$0xf0] }
 0x103   :  { %2258 = vmatpush.bf16.msrb.mxu0 %v5160_v3  ;;  %2227 = vmatmul.bf16.vlgmr.msra.gmra.mxu1 %v7080_v22  ;;  %v5039_v3 = vld [vmem:[#allocation5 + $0x670] sm:$0xf]  ;;  %v5184_v0 = vor.u32 %v6498_v49, %v5183_v48  ;;  %v5353_v4 = vld [vmem:[#allocation5 + $0x8f8] sm:$0xf0]  ;;  %v6519_v48 = vld [vmem:[#allocation5 + $0x854] sm:$0xf] }
 0x104   :  { %2271 = vmatpush.bf16.msrb.mxu1 %v5352_v11  ;;  %2240 = vmatmul.bf16.vlgmr.msra.gmra.mxu2 %v7074_v18  ;;  %v6462_v11 = vld [vmem:[#allocation5 + $0x684] sm:$0xf0] }
 0x105   :  { %2284 = vmatpush.bf16.msrb.mxu2 %v4396_v12  ;;  %2253 = vmatmul.bf16.vlgmr.msra.gmra.mxu3 %v7078_v20  ;;  %v5231_v12 = vld [vmem:[#allocation5 + $0x7f0] sm:$0xf]  ;;  %v5040_v25 = vor.u32 %v6462_v11, %v5039_v3  ;;  %v6387_v3 = vld [vmem:[#allocation5 + $0x434] sm:$0xf]  ;;  %v4753_v11 = vld [vmem:[#allocation5 + $0x448] sm:$0xf0] }
 0x106   :  { %2297 = vmatpush.bf16.msrb.mxu3 %v4588_v16  ;;  %v4273_v16 = vld [vmem:[#allocation5 + $0x88] sm:$0xf0] }
 0x107   :  { %2259 = vmatpush.bf16.msrb.mxu0 %v5136_v26  ;;  %v2033_v13 = vpop.f32.mrf.mxu2  ;;  %v4276_v29 = vor.u32 %v6267_v15, %v4273_v16  ;;  %v5137_v15 = vld [vmem:[#allocation5 + $0x748] sm:$0xf0]  ;;  %v6531_v16 = vld [vmem:[#allocation5 + $0x8b4] sm:$0xf] }
 0x108   :  { %2272 = vmatpush.bf16.msrb.mxu1 %v5328_v27  ;;  %v2034_v17 = vadd.f32 %v2033_v13, %v2021_v5  ;;  %v2046_v21 = vpop.f32.mrf.mxu3  ;;  %v2009_v27 = vpop.f32.mrf.mxu0  ;;  %v5356_v13 = vor.u32 %v6537_v2, %v5353_v4  ;;  %v4657_v2 = vld [vmem:[#allocation5 + $0x388] sm:$0xf0]  ;;  %v6411_v4 = vld [vmem:[#allocation5 + $0x4f4] sm:$0xf] }
 0x109   :  { %2285 = vmatpush.bf16.msrb.mxu2 %v4372_v28  ;;  %v5232_v28 = vor.u32 %v6510_v14, %v5231_v12  ;;  %v2022_v33 = vpop.f32.mrf.mxu1  ;;  %v6435_v12 = vld [vmem:[#allocation5 + $0x5b4] sm:$0xf]  ;;  %v4729_v27 = vld [vmem:[#allocation5 + $0x418] sm:$0xf0] }
 0x10a   :  { %2298 = vmatpush.bf16.msrb.mxu3 %v4564_v32  ;;  %v7126_v26 = vadd.f32 %v2046_v21, %v2034_v17  ;;  %v5207_v32 = vld [vmem:[#allocation5 + $0x7c0] sm:$0xf]  ;;  %v6483_v14 = vld [vmem:[#allocation5 + $0x734] sm:$0xf]  ;;  %v5329_v17 = vld [vmem:[#allocation5 + $0x8c8] sm:$0xf0]  ;;  %v4756_v21 = vor.u32 %v6387_v3, %v4753_v11 }
 0x10b   :  { %2260 = vmatpush.bf16.msrb.mxu0 %v5112_v41  ;;  %v6309_v41 = vld [vmem:[#allocation5 + $0x1c4] sm:$0xf]  ;;  %v5208_v46 = vor.u32 %v6504_v36, %v5207_v32  ;;  %v5140_v24 = vor.u32 %v6483_v14, %v5137_v15  ;;  %v5113_v32 = vld [vmem:[#allocation5 + $0x718] sm:$0xf0]  ;;  %v6507_v11 = vld [vmem:[#allocation5 + $0x7f4] sm:$0xf] }
 0x10c   :  { %2273 = vmatpush.bf16.msrb.mxu1 %v5304_v42  ;;  %v4441_v42 = vld [vmem:[#allocation5 + $0x1d8] sm:$0xf0]  ;;  %v6525_v33 = vld [vmem:[#allocation5 + $0x884] sm:$0xf] }
 0x10d   :  { %2286 = vmatpush.bf16.msrb.mxu2 %v4348_v43  ;;  %v5016_v43 = vor.u32 %v6456_v31, %v5015_v30  ;;  %v4444_v52 = vor.u32 %v6309_v41, %v4441_v42  ;;  %v4921_v30 = vld [vmem:[#allocation5 + $0x598] sm:$0xf0]  ;;  %v6477_v31 = vld [vmem:[#allocation5 + $0x704] sm:$0xf]  ;;  %v6375_v41 = vld [vmem:[#allocation5 + $0x3d4] sm:$0xf] }
 0x10e   :  { %2299 = vmatpush.bf16.msrb.mxu3 %v4540_v47  ;;  %v4252_v47 = vor.u32 %v6261_v37, %v4249_v40  ;;  %v5116_v40 = vor.u32 %v6477_v31, %v5113_v32  ;;  %v4705_v42 = vld [vmem:[#allocation5 + $0x3e8] sm:$0xf0]  ;;  %v5209_v31 = vld [vmem:[#allocation5 + $0x7d8] sm:$0xf0] }
 0x10f   :  { %2261 = vmatpush.bf16.msrb.mxu0 %v5088_v53  ;;  %v2035_v51 = vpop.f32.mrf.mxu2  ;;  %v4225_v53 = vld [vmem:[#allocation5 + $0x28] sm:$0xf0] }
 0x110   :  { %2274 = vmatpush.bf16.msrb.mxu1 %v5280_v55  ;;  %v4417_v55 = vld [vmem:[#allocation5 + $0x1a8] sm:$0xf0]  ;;  %v4228_v1 = vor.u32 %v6255_v50, %v4225_v53  ;;  %v4708_v50 = vor.u32 %v6375_v41, %v4705_v42  ;;  %v6369_v53 = vld [vmem:[#allocation5 + $0x3a4] sm:$0xf]  ;;  %v6447_v42 = vld [vmem:[#allocation5 + $0x614] sm:$0xf] }
 0x111   :  { %2287 = vmatpush.bf16.msrb.mxu2 %v4324_v56  ;;  %v2048_v56 = vpop.f32.mrf.mxu3  ;;  %v4420_v5 = vor.u32 %v6303_v54, %v4417_v55  ;;  %v4681_v54 = vld [vmem:[#allocation5 + $0x3b8] sm:$0xf0]  ;;  %v6417_v55 = vld [vmem:[#allocation5 + $0x524] sm:$0xf]  ;;  %v4801_v41 = vld [vmem:[#allocation5 + $0x4a8] sm:$0xf0] }
 0x112   :  { %2300 = vmatpush.bf16.msrb.mxu3 %v4516_v62  ;;  %v6489_v62 = vld [vmem:[#allocation5 + $0x764] sm:$0xf] }
 0x113   :  { %2262 = vmatpush.bf16.msrb.mxu0 %v5064_v8  ;;  %v4780_v8 = vor.u32 %v6393_v57, %v4777_v58  ;;  %v4873_v57 = vld [vmem:[#allocation5 + $0x538] sm:$0xf0]  ;;  %v6465_v58 = vld [vmem:[#allocation5 + $0x6a4] sm:$0xf] }
 0x114   :  { %2275 = vmatpush.bf16.msrb.mxu1 %v5256_v9  ;;  %v4972_v9 = vor.u32 %v6441_v59, %v4969_v61  ;;  %v5065_v59 = vld [vmem:[#allocation5 + $0x6b8] sm:$0xf0] }
 0x115   :  { %2288 = vmatpush.bf16.msrb.mxu2 %v4300_v10  ;;  %v5164_v10 = vor.u32 %v6489_v62, %v5161_v63  ;;  %v5257_v61 = vld [vmem:[#allocation5 + $0x838] sm:$0xf0]  ;;  %v4684_v62 = vor.u32 %v6369_v53, %v4681_v54  ;;  %v4876_v63 = vor.u32 %v6417_v55, %v4873_v57  ;;  %v6603_v54 = vld [vmem:[#allocation8 + $0x1ec] sm:$0xf0]  ;;  %v5727_v55 = vld [vmem:[#allocation8 + $0x2e0] sm:$0xf] }
 0x116   :  { %2301 = vmatpush.bf16.msrb.mxu3 %v4492_v39  ;;  %v4945_v39 = vld [vmem:[#allocation5 + $0x5c8] sm:$0xf0] }
 0x117   :  { %2263 = vmatpush.bf16.msrb.mxu0 %v5040_v25  ;;  %v4948_v23 = vor.u32 %v6435_v12, %v4945_v39  ;;  %v6381_v25 = vld [vmem:[#allocation5 + $0x404] sm:$0xf]  ;;  %v5233_v12 = vld [vmem:[#allocation5 + $0x808] sm:$0xf0] }
 0x118   :  { %2276 = vmatpush.bf16.msrb.mxu1 %v5232_v28  ;;  %v6429_v28 = vld [vmem:[#allocation5 + $0x584] sm:$0xf]  ;;  %v4732_v36 = vor.u32 %v6381_v25, %v4729_v27  ;;  %v5236_v25 = vor.u32 %v6507_v11, %v5233_v12  ;;  %v4825_v27 = vld [vmem:[#allocation5 + $0x4d8] sm:$0xf0]  ;;  %v6563_v12 = vld [vmem:[#allocation8 + $0xac] sm:$0xf0] }
 0x119   :  { %2289 = vmatpush.bf16.msrb.mxu2 %v4276_v29  ;;  %v5332_v29 = vor.u32 %v6531_v16, %v5329_v17  ;;  %v4924_v37 = vor.u32 %v6429_v28, %v4921_v30  ;;  %v6453_v28 = vld [vmem:[#allocation5 + $0x644] sm:$0xf] }
 0x11a   :  { %2302 = vmatpush.bf16.msrb.mxu3 %v4468_v34  ;;  %v5305_v34 = vld [vmem:[#allocation5 + $0x898] sm:$0xf0]  ;;  %v6501_v30 = vld [vmem:[#allocation5 + $0x7c4] sm:$0xf] }
 0x11b   :  { %2264 = vmatpush.bf16.msrb.mxu0 %v5016_v43  ;;  %v6423_v43 = vld [vmem:[#allocation5 + $0x554] sm:$0xf]  ;;  %v5308_v44 = vor.u32 %v6525_v33, %v5305_v34  ;;  %v4609_v34 = vld [vmem:[#allocation5 + $0x328] sm:$0xf0]  ;;  %v5439_v11 = vld [vmem:[#allocation8 + $0xa0] sm:$0xf] }
 0x11c   :  { %2277 = vmatpush.bf16.msrb.mxu1 %v5208_v46  ;;  %v6471_v46 = vld [vmem:[#allocation5 + $0x6d4] sm:$0xf] }
 0x11d   :  { %2290 = vmatpush.bf16.msrb.mxu2 %v4252_v47  ;;  %v5089_v47 = vld [vmem:[#allocation5 + $0x6e8] sm:$0xf0]  ;;  %v6351_v33 = vld [vmem:[#allocation5 + $0x314] sm:$0xf] }
 0x11e   :  { %2303 = vmatpush.bf16.msrb.mxu3 %v4444_v52  ;;  %v5092_v52 = vor.u32 %v6471_v46, %v5089_v47  ;;  %v6495_v46 = vld [vmem:[#allocation5 + $0x794] sm:$0xf]  ;;  %v5185_v47 = vld [vmem:[#allocation5 + $0x7a8] sm:$0xf0]  ;;  %v4612_v53 = vor.u32 %v6351_v33, %v4609_v34 }
 0x11f   :  { %2265 = vmatpush.bf16.msrb.mxu0 %v4992_v60  ;;  %v7132_v49 = vpop.f32.mrf.mxu0  ;;  %v6513_v60 = vld [vmem:[#allocation5 + $0x824] sm:$0xf]  ;;  %v6659_v33 = vld [vmem:[#allocation8 + $0x3ac] sm:$0xf0] }
 0x120   :  { %2278 = vmatpush.bf16.msrb.mxu1 %v5184_v0  ;;  %v7134_v51 = vpop.f32.mrf.mxu1  ;;  %v5068_v0 = vor.u32 %v6465_v58, %v5065_v59  ;;  %v5188_v59 = vor.u32 %v6495_v46, %v5185_v47  ;;  %v6591_v34 = vld [vmem:[#allocation8 + $0x18c] sm:$0xf0]  ;;  %v5535_v46 = vld [vmem:[#allocation8 + $0x160] sm:$0xf] }
 0x121   :  { %2291 = vmatpush.bf16.msrb.mxu2 %v4228_v1  ;;  %v6363_v1 = vld [vmem:[#allocation5 + $0x374] sm:$0xf]  ;;  %v5807_v47 = vld [vmem:[#allocation8 + $0x380] sm:$0xf] }
 0x122   :  { %2304 = vmatpush.bf16.msrb.mxu3 %v4420_v5  ;;  %2266 = vmatmul.bf16.vlgmr.msrb.gmra.mxu0 %v7086_v35  ;;  %v5260_v5 = vor.u32 %v6513_v60, %v5257_v61  ;;  %v4660_v14 = vor.u32 %v6363_v1, %v4657_v2  ;;  %v5455_v61 = vld [vmem:[#allocation8 + $0xc0] sm:$0xf] }
 0x123   :  { %2310 = vmatpush.bf16.msra.mxu0 %v4780_v8  ;;  %2279 = vmatmul.bf16.vlgmr.msrb.gmra.mxu1 %v7088_v38  ;;  %v4849_v8 = vld [vmem:[#allocation5 + $0x508] sm:$0xf0]  ;;  %v5583_v1 = vld [vmem:[#allocation8 + $0x1c0] sm:$0xf] }
 0x124   :  { %2323 = vmatpush.bf16.msra.mxu1 %v4972_v9  ;;  %2292 = vmatmul.bf16.vlgmr.msrb.gmra.mxu2 %v7076_v19  ;;  %v5281_v19 = vld [vmem:[#allocation5 + $0x868] sm:$0xf0]  ;;  %v6459_v9 = vld [vmem:[#allocation5 + $0x674] sm:$0xf]  ;;  %v4852_v16 = vor.u32 %v6411_v4, %v4849_v8  ;;  %v5855_v2 = vld [vmem:[#allocation8 + $0x3e0] sm:$0xf] }
 0x125   :  { %2336 = vmatpush.bf16.msra.mxu2 %v5164_v10  ;;  %2305 = vmatmul.bf16.vlgmr.msrb.gmra.mxu3 %v7080_v22  ;;  %v4900_v22 = vor.u32 %v6423_v43, %v4897_v45  ;;  %v5284_v56 = vor.u32 %v6519_v48, %v5281_v19  ;;  %v5041_v10 = vld [vmem:[#allocation5 + $0x688] sm:$0xf0]  ;;  %v423_v43 = vperm.slane %v7106_v7, 2  ;;  %v5471_v19 = vld [vmem:[#allocation8 + $0xe0] sm:$0xf] }
 0x126   :  { %2349 = vmatpush.bf16.msra.mxu3 %v5356_v13  ;;  %v5044_v17 = vor.u32 %v6459_v9, %v5041_v10  ;;  %v4993_v45 = vld [vmem:[#allocation5 + $0x628] sm:$0xf0]  ;;  %v6667_v4 = vld [vmem:[#allocation8 + $0x3ec] sm:$0xf0]  ;;  %v5711_v8 = vld [vmem:[#allocation8 + $0x2c0] sm:$0xf] }
 0x127   :  { %2311 = vmatpush.bf16.msra.mxu0 %v4756_v21  ;;  %v7136_v3 = vpop.f32.mrf.mxu2  ;;  %v2061_v13 = vpop.f32.mrf.mxu0  ;;  %v6357_v21 = vld [vmem:[#allocation5 + $0x344] sm:$0xf]  ;;  %v4996_v58 = vor.u32 %v6447_v42, %v4993_v45  ;;  %v2060_v7 = vadd.f32 %v7132_v49, %v423_v43  ;;  %v6631_v9 = vld [vmem:[#allocation8 + $0x2cc] sm:$0xf0] }
 0x128   :  { %2324 = vmatpush.bf16.msra.mxu1 %v4948_v23  ;;  %v7138_v39 = vpop.f32.mrf.mxu3  ;;  %v2074_v15 = vpop.f32.mrf.mxu1  ;;  %v4633_v23 = vld [vmem:[#allocation5 + $0x358] sm:$0xf0]  ;;  %v5856_v13 = vor.u32 %v6667_v4, %v5855_v2 }
 0x129   :  { %2337 = vmatpush.bf16.msra.mxu2 %v5140_v24  ;;  %v6405_v24 = vld [vmem:[#allocation5 + $0x4c4] sm:$0xf]  ;;  %v4636_v32 = vor.u32 %v6357_v21, %v4633_v23  ;;  %v2073_v10 = vadd.f32 %v7134_v51, %v2060_v7  ;;  %v5712_v15 = vor.u32 %v6631_v9, %v5711_v8  ;;  %v6663_v21 = vld [vmem:[#allocation8 + $0x3cc] sm:$0xf0] }
 0x12a   :  { %2350 = vmatpush.bf16.msra.mxu3 %v5332_v29  ;;  %v5017_v29 = vld [vmem:[#allocation5 + $0x658] sm:$0xf0]  ;;  %v6595_v23 = vld [vmem:[#allocation8 + $0x1ac] sm:$0xf0]  ;;  %v5791_v7 = vld [vmem:[#allocation8 + $0x360] sm:$0xf] }
 0x12b   :  { %2312 = vmatpush.bf16.msra.mxu0 %v4732_v36  ;;  %v6399_v36 = vld [vmem:[#allocation5 + $0x494] sm:$0xf] }
 0x12c   :  { %2325 = vmatpush.bf16.msra.mxu1 %v4924_v37  ;;  %v4828_v37 = vor.u32 %v6405_v24, %v4825_v27  ;;  %v4804_v57 = vor.u32 %v6399_v36, %v4801_v41  ;;  %v5695_v24 = vld [vmem:[#allocation8 + $0x2a0] sm:$0xf]  ;;  %v6627_v51 = vld [vmem:[#allocation8 + $0x2ac] sm:$0xf0]  ;;  %v5440_v27 = vor.u32 %v6563_v12, %v5439_v11 }
 0x12d   :  { %2338 = vmatpush.bf16.msra.mxu2 %v5116_v40  ;;  %v5020_v40 = vor.u32 %v6453_v28, %v5017_v29  ;;  %v5423_v28 = vld [vmem:[#allocation8 + $0x80] sm:$0xf]  ;;  %v6559_v29 = vld [vmem:[#allocation8 + $0x8c] sm:$0xf0] }
 0x12e   :  { %2351 = vmatpush.bf16.msra.mxu3 %v5308_v44  ;;  %v5212_v44 = vor.u32 %v6501_v30, %v5209_v31  ;;  %v5696_v31 = vor.u32 %v6627_v51, %v5695_v24  ;;  %v5679_v36 = vld [vmem:[#allocation8 + $0x280] sm:$0xf]  ;;  %v6555_v41 = vld [vmem:[#allocation8 + $0x6c] sm:$0xf0] }
 0x12f   :  { %2313 = vmatpush.bf16.msra.mxu0 %v4708_v50  ;;  %v2087_v48 = vpop.f32.mrf.mxu2  ;;  %v6571_v50 = vld [vmem:[#allocation8 + $0xec] sm:$0xf0]  ;;  %v5503_v12 = vld [vmem:[#allocation8 + $0x120] sm:$0xf] }
 0x130   :  { %2326 = vmatpush.bf16.msra.mxu1 %v4900_v22  ;;  %v5599_v22 = vld [vmem:[#allocation8 + $0x1e0] sm:$0xf]  ;;  %v5472_v60 = vor.u32 %v6571_v50, %v5471_v19  ;;  %v6655_v48 = vld [vmem:[#allocation8 + $0x38c] sm:$0xf0] }
 0x131   :  { %2339 = vmatpush.bf16.msra.mxu2 %v5092_v52  ;;  %v2100_v52 = vpop.f32.mrf.mxu3  ;;  %v6587_v19 = vld [vmem:[#allocation8 + $0x16c] sm:$0xf0]  ;;  %v5663_v50 = vld [vmem:[#allocation8 + $0x260] sm:$0xf] }
 0x132   :  { %2352 = vmatpush.bf16.msra.mxu3 %v5284_v56  ;;  %v6635_v56 = vld [vmem:[#allocation8 + $0x2ec] sm:$0xf0]  ;;  %v5487_v51 = vld [vmem:[#allocation8 + $0x100] sm:$0xf] }
 0x133   :  { %2314 = vmatpush.bf16.msra.mxu0 %v4684_v62  ;;  %v6567_v62 = vld [vmem:[#allocation8 + $0xcc] sm:$0xf0] }
 0x134   :  { %2327 = vmatpush.bf16.msra.mxu1 %v4876_v63  ;;  %v5600_v63 = vor.u32 %v6603_v54, %v5599_v22  ;;  %v5456_v49 = vor.u32 %v6567_v62, %v5455_v61  ;;  %v6619_v22 = vld [vmem:[#allocation8 + $0x26c] sm:$0xf0]  ;;  %v5647_v61 = vld [vmem:[#allocation8 + $0x240] sm:$0xf] }
 0x135   :  { %2340 = vmatpush.bf16.msra.mxu2 %v5068_v0  ;;  %v5728_v0 = vor.u32 %v6635_v56, %v5727_v55  ;;  %v6551_v54 = vld [vmem:[#allocation8 + $0x4c] sm:$0xf0]  ;;  %v5808_v55 = vor.u32 %v6655_v48, %v5807_v47  ;;  %v5536_v56 = vor.u32 %v6587_v19, %v5535_v46  ;;  %v5743_v46 = vld [vmem:[#allocation8 + $0x300] sm:$0xf] }
 0x136   :  { %2353 = vmatpush.bf16.msra.mxu3 %v5260_v5  ;;  %v6599_v5 = vld [vmem:[#allocation8 + $0x1cc] sm:$0xf0] }
 0x137   :  { %2315 = vmatpush.bf16.msra.mxu0 %v4660_v14  ;;  %v5584_v14 = vor.u32 %v6599_v5, %v5583_v1  ;;  %v6615_v62 = vld [vmem:[#allocation8 + $0x24c] sm:$0xf0]  ;;  %v5375_v5 = vld [vmem:[#allocation8 + $0x20] sm:$0xf] }
 0x138   :  { %2328 = vmatpush.bf16.msra.mxu1 %v4852_v16  ;;  %v5567_v16 = vld [vmem:[#allocation8 + $0x1a0] sm:$0xf]  ;;  %v6547_v8 = vld [vmem:[#allocation8 + $0x2c] sm:$0xf0]  ;;  %v5648_v11 = vor.u32 %v6615_v62, %v5647_v61  ;;  %v5441_v61 = vld [vmem:[#allocation8 + $0xb0] sm:$0xf0] }
 0x139   :  { %2341 = vmatpush.bf16.msra.mxu2 %v5044_v17  ;;  %v5839_v17 = vld [vmem:[#allocation8 + $0x3c0] sm:$0xf]  ;;  %v6543_v24 = vld [vmem:[#allocation8 + $0xc] sm:$0xf0]  ;;  %v6597_v62 = vld [vmem:[#allocation8 + $0x1c4] sm:$0xf] }
 0x13a   :  { %2354 = vmatpush.bf16.msra.mxu3 %v5236_v25  ;;  %v2086_v25 = vadd.f32 %v7136_v3, %v2073_v10  ;;  %v5840_v30 = vor.u32 %v6663_v21, %v5839_v17  ;;  %v5424_v3 = vor.u32 %v6559_v29, %v5423_v28  ;;  %v6611_v17 = vld [vmem:[#allocation8 + $0x22c] sm:$0xf0]  ;;  %v5376_v21 = vor.u32 %v6547_v8, %v5375_v5 }
 0x13b   :  { %2316 = vmatpush.bf16.msra.mxu0 %v4636_v32  ;;  %v5823_v32 = vld [vmem:[#allocation8 + $0x3a0] sm:$0xf]  ;;  %v6575_v29 = vld [vmem:[#allocation8 + $0x10c] sm:$0xf0] }
 0x13c   :  { %2329 = vmatpush.bf16.msra.mxu1 %v4828_v37  ;;  %v5824_v43 = vor.u32 %v6659_v33, %v5823_v32  ;;  %v6569_v32 = vld [vmem:[#allocation8 + $0xe4] sm:$0xf]  ;;  %v5473_v33 = vld [vmem:[#allocation8 + $0xf0] sm:$0xf0]  ;;  %v6639_v47 = vld [vmem:[#allocation8 + $0x30c] sm:$0xf0] }
 0x13d   :  { %2342 = vmatpush.bf16.msra.mxu2 %v5020_v40  ;;  %v5407_v40 = vld [vmem:[#allocation8 + $0x60] sm:$0xf]  ;;  %v6691_v5 = vld [vmem:[#allocation8 + $0x4ac] sm:$0xf0] }
 0x13e   :  { %2355 = vmatpush.bf16.msra.mxu3 %v5212_v44 }
 0x13f   :  { %2317 = vmatpush.bf16.msra.mxu0 %v4612_v53  ;;  %v2111_v37 = vpop.f32.mrf.mxu0  ;;  %v5391_v53 = vld [vmem:[#allocation8 + $0x40] sm:$0xf] }
 0x140   :  { %2330 = vmatpush.bf16.msra.mxu1 %v4804_v57  ;;  %v2124_v42 = vpop.f32.mrf.mxu1  ;;  %v5664_v57 = vor.u32 %v6619_v22, %v5663_v50  ;;  %v5392_v4 = vor.u32 %v6551_v54, %v5391_v53  ;;  %v5457_v50 = vld [vmem:[#allocation8 + $0xd0] sm:$0xf0]  ;;  %v6601_v22 = vld [vmem:[#allocation8 + $0x1e4] sm:$0xf]  ;;  %v5967_v53 = vld [vmem:[#allocation8 + $0x4c0] sm:$0xf] }
 0x141   :  { %2343 = vmatpush.bf16.msra.mxu2 %v4996_v58  ;;  %v5519_v58 = vld [vmem:[#allocation8 + $0x140] sm:$0xf]  ;;  %v6695_v54 = vld [vmem:[#allocation8 + $0x4cc] sm:$0xf0] }
 0x142   :  { %2356 = vmatpush.bf16.msra.mxu3 %v5188_v59  ;;  %2318 = vmatmul.bf16.vlgmr.msra.gmra.mxu0 %v7074_v18  ;;  %v5568_v18 = vor.u32 %v6595_v23, %v5567_v16  ;;  %v6651_v59 = vld [vmem:[#allocation8 + $0x36c] sm:$0xf0]  ;;  %v5631_v16 = vld [vmem:[#allocation8 + $0x220] sm:$0xf] }
 0x143   :  { %3536 = vmatpush.bf16.msrb.mxu0 %v5472_v60  ;;  %2331 = vmatmul.bf16.vlgmr.msra.gmra.mxu1 %v7078_v20  ;;  %v5551_v20 = vld [vmem:[#allocation8 + $0x180] sm:$0xf]  ;;  %v6583_v60 = vld [vmem:[#allocation8 + $0x14c] sm:$0xf0]  ;;  %v5792_v9 = vor.u32 %v6651_v59, %v5791_v7  ;;  %v5632_v28 = vor.u32 %v6611_v17, %v5631_v16  ;;  %v6561_v7 = vld [vmem:[#allocation8 + $0xa4] sm:$0xf] }
 0x144   :  { %3549 = vmatpush.bf16.msrb.mxu1 %v5600_v63  ;;  %2344 = vmatmul.bf16.vlgmr.msra.gmra.mxu2 %v7086_v35  ;;  %v6623_v35 = vld [vmem:[#allocation8 + $0x28c] sm:$0xf0]  ;;  %v5552_v44 = vor.u32 %v6591_v34, %v5551_v20  ;;  %v5359_v23 = vld [vmem:[#allocation8] sm:$0xf]  ;;  %v5444_v8 = vor.u32 %v6561_v7, %v5441_v61  ;;  %v6697_v7 = vld [vmem:[#allocation8 + $0x4e4] sm:$0xf] }
 0x145   :  { %3562 = vmatpush.bf16.msrb.mxu2 %v5728_v0  ;;  %2357 = vmatmul.bf16.vlgmr.msra.gmra.mxu3 %v7088_v38  ;;  %v2099_v38 = vadd.f32 %v7138_v39, %v2086_v25  ;;  %v5680_v45 = vor.u32 %v6623_v35, %v5679_v36  ;;  %v5408_v39 = vor.u32 %v6555_v41, %v5407_v40  ;;  %v6607_v20 = vld [vmem:[#allocation8 + $0x20c] sm:$0xf0]  ;;  %v5983_v36 = vld [vmem:[#allocation8 + $0x4e0] sm:$0xf]  ;;  %v7155_v41 = vld [vmem:[#allocation7] sm:$0x3f] }
 0x146   :  { %3575 = vmatpush.bf16.msrb.mxu3 %v5856_v13  ;;  %v5775_v13 = vld [vmem:[#allocation8 + $0x340] sm:$0xf]  ;;  %v6699_v35 = vld [vmem:[#allocation8 + $0x4ec] sm:$0xf0] }
 0x147   :  { %3537 = vmatpush.bf16.msrb.mxu0 %v5456_v49  ;;  %v2112_v52 = vadd.f32 %v2111_v37, %v2099_v38  ;;  %v7149_v63 = vpop.f32.mrf.mxu2  ;;  %v2113_v2 = vpop.f32.mrf.mxu0  ;;  %v5520_v49 = vor.u32 %v6583_v60, %v5519_v58  ;;  %v5360_v38 = vor.u32 %v6543_v24, %v5359_v23  ;;  %v5984_v48 = vor.u32 %v6699_v35, %v5983_v36  ;;  %v5537_v36 = vld [vmem:[#allocation8 + $0x170] sm:$0xf0] }
 0x148   :  { %3550 = vmatpush.bf16.msrb.mxu1 %v5584_v14  ;;  %v7151_v1 = vpop.f32.mrf.mxu3  ;;  %v2126_v10 = vpop.f32.mrf.mxu1  ;;  %v6647_v14 = vld [vmem:[#allocation8 + $0x34c] sm:$0xf0]  ;;  %v5968_v2 = vor.u32 %v6695_v54, %v5967_v53  ;;  %v6541_v54 = vld [vmem:[#allocation8 + $0x4] sm:$0xf] }
 0x149   :  { %3563 = vmatpush.bf16.msrb.mxu2 %v5712_v15  ;;  %v2125_v0 = vadd.f32 %v2124_v42, %v2112_v52  ;;  %v6579_v15 = vld [vmem:[#allocation8 + $0x12c] sm:$0xf0]  ;;  %v5776_v25 = vor.u32 %v6647_v14, %v5775_v13  ;;  %v424_v42 = vperm.slane %v7155_v41, 3  ;;  %v5601_v52 = vld [vmem:[#allocation8 + $0x1f0] sm:$0xf0] }
 0x14a   :  { %3576 = vmatpush.bf16.msrb.mxu3 %v5840_v30  ;;  %v5759_v30 = vld [vmem:[#allocation8 + $0x320] sm:$0xf]  ;;  %v5604_v59 = vor.u32 %v6601_v22, %v5601_v52  ;;  %v6675_v52 = vld [vmem:[#allocation8 + $0x42c] sm:$0xf0] }
 0x14b   :  { %3538 = vmatpush.bf16.msrb.mxu0 %v5440_v27  ;;  %6780 = vtanh.f32 %v2125_v0  ;;  %v5504_v27 = vor.u32 %v6579_v15, %v5503_v12  ;;  %v2138_v60 = vadd.f32 %v7149_v63, %v424_v42  ;;  %v5585_v0 = vld [vmem:[#allocation8 + $0x1d0] sm:$0xf0]  ;;  %v5935_v14 = vld [vmem:[#allocation8 + $0x480] sm:$0xf]  ;;  %v6687_v15 = vld [vmem:[#allocation8 + $0x48c] sm:$0xf0] }
 0x14c   :  { %3551 = vmatpush.bf16.msrb.mxu1 %v5568_v18  ;;  %6782 = vtanh.f32 %v7116_v6  ;;  %v6643_v18 = vld [vmem:[#allocation8 + $0x32c] sm:$0xf0]  ;;  %v5588_v10 = vor.u32 %v6597_v62, %v5585_v0  ;;  %v5569_v12 = vld [vmem:[#allocation8 + $0x1b0] sm:$0xf0]  ;;  %v5887_v22 = vld [vmem:[#allocation8 + $0x420] sm:$0xf] }
 0x14d   :  { %3564 = vmatpush.bf16.msrb.mxu2 %v5696_v31  ;;  %6784 = vtanh.f32 %v7126_v26  ;;  %v5615_v31 = vld [vmem:[#allocation8 + $0x200] sm:$0xf]  ;;  %v5760_v37 = vor.u32 %v6643_v18, %v5759_v30  ;;  %v2151_v63 = vadd.f32 %v7151_v1, %v2138_v60  ;;  %v5936_v1 = vor.u32 %v6687_v15, %v5935_v14  ;;  %v6683_v30 = vld [vmem:[#allocation8 + $0x46c] sm:$0xf0]  ;;  %v5505_v60 = vld [vmem:[#allocation8 + $0x130] sm:$0xf0] }
 0x14e   :  { %3577 = vmatpush.bf16.msrb.mxu3 %v5824_v43  ;;  %v5616_v40 = vor.u32 %v6607_v20, %v5615_v31  ;;  %v6549_v20 = vld [vmem:[#allocation8 + $0x44] sm:$0xf]  ;;  %v5888_v62 = vor.u32 %v6675_v52, %v5887_v22  ;;  %v5985_v0 = vld [vmem:[#allocation8 + $0x4f0] sm:$0xf0] }
 0x14f   :  { %3539 = vmatpush.bf16.msrb.mxu0 %v5424_v3  ;;  %v2139_v6 = vpop.f32.mrf.mxu2  ;;  %v5488_v3 = vor.u32 %v6575_v29, %v5487_v51  ;;  %v5919_v29 = vld [vmem:[#allocation8 + $0x460] sm:$0xf]  ;;  %v5988_v14 = vor.u32 %v6697_v7, %v5985_v0  ;;  %v5489_v15 = vld [vmem:[#allocation8 + $0x110] sm:$0xf0]  ;;  %v6681_v52 = vld [vmem:[#allocation8 + $0x464] sm:$0xf] }
 0x150   :  { %3552 = vmatpush.bf16.msrb.mxu1 %v5552_v44  ;;  %v2152_v34 = vpop.f32.mrf.mxu3  ;;  %v5476_v44 = vor.u32 %v6569_v32, %v5473_v33  ;;  %v5393_v33 = vld [vmem:[#allocation8 + $0x50] sm:$0xf0]  ;;  %v5920_v35 = vor.u32 %v6683_v30, %v5919_v29 }
 0x151   :  { %3565 = vmatpush.bf16.msrb.mxu2 %v5680_v45  ;;  %v6781_v26 = vpop.eup %6780  ;;  %v6565_v45 = vld [vmem:[#allocation8 + $0xc4] sm:$0xf]  ;;  %v5396_v42 = vor.u32 %v6549_v20, %v5393_v33  ;;  %v6095_v20 = vld [vmem:[#allocation8 + $0x5c0] sm:$0xf]  ;;  %v5921_v7 = vld [vmem:[#allocation8 + $0x470] sm:$0xf0] }
 0x152   :  { %3578 = vmatpush.bf16.msrb.mxu3 %v5808_v55  ;;  %v6783_v43 = vpop.eup %6782  ;;  %v5460_v58 = vor.u32 %v6565_v45, %v5457_v50  ;;  %v6585_v34 = vld [vmem:[#allocation8 + $0x164] sm:$0xf]  ;;  %v6065_v0 = vld [vmem:[#allocation8 + $0x590] sm:$0xf0] }
 0x153   :  { %3540 = vmatpush.bf16.msrb.mxu0 %v5408_v39  ;;  %v6785_v19 = vpop.eup %6784  ;;  %v7158_v39 = vpack.c.bf16 %v6781_v26, %v6781_v26  ;;  %v7160_v55 = vpack.c.bf16 %v6783_v43, %v6783_v43  ;;  %v5903_v26 = vld [vmem:[#allocation8 + $0x440] sm:$0xf]  ;;  %v6545_v43 = vld [vmem:[#allocation8 + $0x24] sm:$0xf] }
 0x154   :  { %3553 = vmatpush.bf16.msrb.mxu1 %v5536_v56  ;;  %v5744_v56 = vor.u32 %v6639_v47, %v5743_v46  ;;  %v5377_v46 = vld [vmem:[#allocation8 + $0x30] sm:$0xf0]  ;;  %v6581_v47 = vld [vmem:[#allocation8 + $0x144] sm:$0xf] }
 0x155   :  { %3566 = vmatpush.bf16.msrb.mxu2 %v5664_v57  ;;  %v7162_v57 = vpack.c.bf16 %v6785_v19, %v6785_v19  ;;  %v5380_v53 = vor.u32 %v6545_v43, %v5377_v46  ;;  %v6723_v43 = vld [vmem:[#allocation8 + $0x5ac] sm:$0xf0] }
 0x156   :  { %3579 = vmatpush.bf16.msrb.mxu3 %v5792_v9  ;;  %v6557_v9 = vld [vmem:[#allocation8 + $0x84] sm:$0xf] }
 0x157   :  { %3541 = vmatpush.bf16.msrb.mxu0 %v5392_v4  ;;  %v5951_v4 = vld [vmem:[#allocation8 + $0x4a0] sm:$0xf] }
 0x158   :  { %3554 = vmatpush.bf16.msrb.mxu1 %v5520_v49  ;;  %v5425_v49 = vld [vmem:[#allocation8 + $0x90] sm:$0xf0]  ;;  %v5952_v13 = vor.u32 %v6691_v5, %v5951_v4  ;;  %v5871_v4 = vld [vmem:[#allocation8 + $0x400] sm:$0xf]  ;;  %v6671_v5 = vld [vmem:[#allocation8 + $0x40c] sm:$0xf0] }
 0x159   :  { %3567 = vmatpush.bf16.msrb.mxu2 %v5648_v11  ;;  %v6593_v11 = vld [vmem:[#allocation8 + $0x1a4] sm:$0xf]  ;;  %v5428_v16 = vor.u32 %v6557_v9, %v5425_v49  ;;  %v5729_v9 = vld [vmem:[#allocation8 + $0x2f0] sm:$0xf0] }
 0x15a   :  { %3580 = vmatpush.bf16.msrb.mxu3 %v5776_v25  ;;  %v5572_v23 = vor.u32 %v6593_v11, %v5569_v12  ;;  %v5409_v25 = vld [vmem:[#allocation8 + $0x70] sm:$0xf0]  ;;  %v6693_v49 = vld [vmem:[#allocation8 + $0x4c4] sm:$0xf] }
 0x15b   :  { %3542 = vmatpush.bf16.msrb.mxu0 %v5376_v21  ;;  %v6553_v21 = vld [vmem:[#allocation8 + $0x64] sm:$0xf] }
 0x15c   :  { %3555 = vmatpush.bf16.msrb.mxu1 %v5504_v27  ;;  %v6589_v27 = vld [vmem:[#allocation8 + $0x184] sm:$0xf]  ;;  %v5412_v31 = vor.u32 %v6553_v21, %v5409_v25  ;;  %v6731_v21 = vld [vmem:[#allocation8 + $0x5ec] sm:$0xf0] }
 0x15d   :  { %3568 = vmatpush.bf16.msrb.mxu2 %v5632_v28  ;;  %v5553_v28 = vld [vmem:[#allocation8 + $0x190] sm:$0xf0]  ;;  %v6573_v12 = vld [vmem:[#allocation8 + $0x104] sm:$0xf] }
 0x15e   :  { %3581 = vmatpush.bf16.msrb.mxu3 %v5760_v37  ;;  %v5556_v32 = vor.u32 %v6589_v27, %v5553_v28  ;;  %v6729_v25 = vld [vmem:[#allocation8 + $0x5e4] sm:$0xf]  ;;  %v6113_v27 = vld [vmem:[#allocation8 + $0x5f0] sm:$0xf0]  ;;  %v5492_v29 = vor.u32 %v6573_v12, %v5489_v15 }
 0x15f   :  { %3543 = vmatpush.bf16.msrb.mxu0 %v5360_v38  ;;  %v2163_v17 = vpop.f32.mrf.mxu0  ;;  %v6629_v28 = vld [vmem:[#allocation8 + $0x2c4] sm:$0xf]  ;;  %v6049_v15 = vld [vmem:[#allocation8 + $0x570] sm:$0xf0] }
 0x160   :  { %3556 = vmatpush.bf16.msrb.mxu1 %v5488_v3  ;;  %v2164_v24 = vadd.f32 %v2163_v17, %v2151_v63  ;;  %v2176_v51 = vpop.f32.mrf.mxu1  ;;  %v6679_v3 = vld [vmem:[#allocation8 + $0x44c] sm:$0xf0]  ;;  %v6111_v17 = vld [vmem:[#allocation8 + $0x5e0] sm:$0xf] }
 0x161   :  { %3569 = vmatpush.bf16.msrb.mxu2 %v5616_v40  ;;  %v5904_v50 = vor.u32 %v6679_v3, %v5903_v26  ;;  %v6685_v3 = vld [vmem:[#allocation8 + $0x484] sm:$0xf] }
 0x162   :  { %3544 = vmatmul.bf16.vlgmr.msrb.gmra.mxu0 %v7160_v55  ;;  %3582 = vmatpush.bf16.msrb.mxu3 %v5744_v56  ;;  %v2177_v18 = vadd.f32 %v2176_v51, %v2164_v24  ;;  %v5361_v56 = vld [vmem:[#allocation8 + $0x10] sm:$0xf0]  ;;  %v6112_v51 = vor.u32 %v6731_v21, %v6111_v17 }
 0x163   :  { %3588 = vmatpush.bf16.msra.mxu0 %v5984_v48  ;;  %3557 = vmatmul.bf16.vlgmr.msrb.gmra.mxu1 %v7162_v57  ;;  %v5521_v48 = vld [vmem:[#allocation8 + $0x150] sm:$0xf0]  ;;  %v5364_v63 = vor.u32 %v6541_v54, %v5361_v56  ;;  %v6063_v56 = vld [vmem:[#allocation8 + $0x580] sm:$0xf] }
 0x164   :  { %3570 = vmatmul.bf16.vlgmr.msrb.gmra.mxu2 %v7158_v39  ;;  %3601 = vmatpush.bf16.msra.mxu1 %v6112_v51  ;;  %v5649_v17 = vld [vmem:[#allocation8 + $0x250] sm:$0xf0] }
 0x165   :  { %3614 = vmatpush.bf16.msra.mxu2 %v5476_v44  ;;  %v5540_v44 = vor.u32 %v6585_v34, %v5537_v36  ;;  %v6725_v36 = vld [vmem:[#allocation8 + $0x5c4] sm:$0xf] }
 0x166   :  { %3627 = vmatpush.bf16.msra.mxu3 %v5604_v59  ;;  %v6577_v59 = vld [vmem:[#allocation8 + $0x124] sm:$0xf] }
 0x167   :  { %3589 = vmatpush.bf16.msra.mxu0 %v5968_v2  ;;  %v2189_v6 = vpop.f32.mrf.mxu2  ;;  %v2165_v45 = vpop.f32.mrf.mxu0  ;;  %v5508_v11 = vor.u32 %v6577_v59, %v5505_v60 }
 0x168   :  { %v2190_v38 = vadd.f32 %v2189_v6, %v2177_v18  ;;  %v2202_v37 = vpop.f32.mrf.mxu3  ;;  %v2178_v19 = vpop.f32.mrf.mxu1  ;;  %v6689_v18 = vld [vmem:[#allocation8 + $0x4a4] sm:$0xf]  ;;  %v5953_v6 = vld [vmem:[#allocation8 + $0x4b0] sm:$0xf0] }
 0x169   :  { %3615 = vmatpush.bf16.msra.mxu2 %v5460_v58  ;;  %v5524_v58 = vor.u32 %v6581_v47, %v5521_v48  ;;  %v5956_v26 = vor.u32 %v6689_v18, %v5953_v6  ;;  %v6721_v47 = vld [vmem:[#allocation8 + $0x5a4] sm:$0xf]  ;;  %v6081_v48 = vld [vmem:[#allocation8 + $0x5b0] sm:$0xf0] }
 0x16a   :  { %3628 = vmatpush.bf16.msra.mxu3 %v5588_v10  ;;  %v2203_v40 = vadd.f32 %v2202_v37, %v2190_v38  ;;  %v6625_v38 = vld [vmem:[#allocation8 + $0x2a4] sm:$0xf]  ;;  %v5697_v37 = vld [vmem:[#allocation8 + $0x2b0] sm:$0xf0]  ;;  %v6084_v54 = vor.u32 %v6721_v47, %v6081_v48 }
 0x16b   :  { %3590 = vmatpush.bf16.msra.mxu0 %v5952_v13  ;;  %v5700_v45 = vor.u32 %v6625_v38, %v5697_v37  ;;  %v6621_v19 = vld [vmem:[#allocation8 + $0x284] sm:$0xf]  ;;  %v5873_v38 = vld [vmem:[#allocation8 + $0x410] sm:$0xf0] }
 0x16c   :  { %6786 = vtanh.f32 %v2203_v40  ;;  %v6609_v6 = vld [vmem:[#allocation8 + $0x224] sm:$0xf]  ;;  %v5617_v48 = vld [vmem:[#allocation8 + $0x210] sm:$0xf0] }
 0x16d   :  { %3616 = vmatpush.bf16.msra.mxu2 %v5444_v8  ;;  %v6633_v8 = vld [vmem:[#allocation8 + $0x2e4] sm:$0xf] }
 0x16e   :  { %3629 = vmatpush.bf16.msra.mxu3 %v5572_v23  ;;  %v5969_v23 = vld [vmem:[#allocation8 + $0x4d0] sm:$0xf0]  ;;  %v5732_v24 = vor.u32 %v6633_v8, %v5729_v9  ;;  %v6677_v8 = vld [vmem:[#allocation8 + $0x444] sm:$0xf] }
 0x16f   :  { %3591 = vmatpush.bf16.msra.mxu0 %v5936_v1  ;;  %v2191_v61 = vpop.f32.mrf.mxu2  ;;  %v5713_v1 = vld [vmem:[#allocation8 + $0x2d0] sm:$0xf0]  ;;  %v5972_v30 = vor.u32 %v6693_v49, %v5969_v23  ;;  %v6605_v47 = vld [vmem:[#allocation8 + $0x204] sm:$0xf] }
 0x170   :  { %v2204_v2 = vpop.f32.mrf.mxu3  ;;  %v5716_v33 = vor.u32 %v6629_v28, %v5713_v1  ;;  %v5905_v49 = vld [vmem:[#allocation8 + $0x450] sm:$0xf0]  ;;  %v6031_v28 = vld [vmem:[#allocation8 + $0x540] sm:$0xf]  ;;  %v6711_v1 = vld [vmem:[#allocation8 + $0x54c] sm:$0xf0] }
 0x171   :  { %3617 = vmatpush.bf16.msra.mxu2 %v5428_v16  ;;  %v5872_v16 = vor.u32 %v6671_v5, %v5871_v4  ;;  %v6617_v2 = vld [vmem:[#allocation8 + $0x264] sm:$0xf]  ;;  %v5665_v4 = vld [vmem:[#allocation8 + $0x270] sm:$0xf0]  ;;  %v5924_v5 = vor.u32 %v6681_v52, %v5921_v7  ;;  %v5908_v23 = vor.u32 %v6677_v8, %v5905_v49  ;;  %v5719_v52 = vld [vmem:[#allocation8 + $0x2c8] sm:$0xf] }
 0x172   :  { %3630 = vmatpush.bf16.msra.mxu3 %v5556_v32  ;;  %v6787_v10 = vpop.eup %6786  ;;  %v6727_v32 = vld [vmem:[#allocation8 + $0x5cc] sm:$0xf0]  ;;  %v5999_v7 = vld [vmem:[#allocation8 + $0x500] sm:$0xf]  ;;  %v5857_v8 = vld [vmem:[#allocation8 + $0x3f0] sm:$0xf0] }
 0x173   :  { %3592 = vmatpush.bf16.msra.mxu0 %v5920_v35  ;;  %v7169_v13 = vpack.c.bf16 %v6787_v10, %v6787_v10  ;;  %v6096_v34 = vor.u32 %v6727_v32, %v6095_v20  ;;  %v6097_v35 = vld [vmem:[#allocation8 + $0x5d0] sm:$0xf0]  ;;  %v6047_v10 = vld [vmem:[#allocation8 + $0x560] sm:$0xf]  ;;  %v6709_v20 = vld [vmem:[#allocation8 + $0x544] sm:$0xf] }
 0x174   :  { %v6100_v40 = vor.u32 %v6725_v36, %v6097_v35  ;;  %v6033_v32 = vld [vmem:[#allocation8 + $0x550] sm:$0xf0]  ;;  %v6669_v36 = vld [vmem:[#allocation8 + $0x404] sm:$0xf] }
 0x175   :  { %3618 = vmatpush.bf16.msra.mxu2 %v5412_v31  ;;  %3583 = vmatmul.bf16.vlgmr.msrb.gmra.mxu3 %v7169_v13  ;;  %v6116_v31 = vor.u32 %v6729_v25, %v6113_v27  ;;  %v6036_v37 = vor.u32 %v6709_v20, %v6033_v32  ;;  %v6660_v20 = vld [vmem:[#allocation8 + $0x3b4] sm:$0xf0] }
 0x176   :  { %3631 = vmatpush.bf16.msra.mxu3 %v5540_v44  ;;  %v5937_v44 = vld [vmem:[#allocation8 + $0x490] sm:$0xf0]  ;;  %3602 = vmatpush.bf16.msra.mxu1 %v6096_v34  ;;  %v425_v34 = vperm.slane %v7155_v41, 4 }
 0x177   :  { %3593 = vmatpush.bf16.msra.mxu0 %v5904_v50  ;;  %v5681_v50 = vld [vmem:[#allocation8 + $0x290] sm:$0xf0]  ;;  %v5940_v22 = vor.u32 %v6685_v3, %v5937_v44  ;;  %v6707_v3 = vld [vmem:[#allocation8 + $0x52c] sm:$0xf0]  ;;  %v6705_v44 = vld [vmem:[#allocation8 + $0x524] sm:$0xf] }
 0x178   :  { %v5684_v60 = vor.u32 %v6621_v19, %v5681_v50 }
 0x179   :  { %3619 = vmatpush.bf16.msra.mxu2 %v5396_v42  ;;  %v6079_v42 = vld [vmem:[#allocation8 + $0x5a0] sm:$0xf] }
 0x17a   :  { %3632 = vmatpush.bf16.msra.mxu3 %v5524_v58  ;;  %v6080_v46 = vor.u32 %v6723_v43, %v6079_v42  ;;  %v6719_v58 = vld [vmem:[#allocation8 + $0x58c] sm:$0xf0] }
 0x17b   :  { %3594 = vmatpush.bf16.msra.mxu0 %v5888_v62  ;;  %v6064_v61 = vor.u32 %v6719_v58, %v6063_v56  ;;  %v6717_v62 = vld [vmem:[#allocation8 + $0x584] sm:$0xf] }
 0x17c   :  { %3603 = vmatpush.bf16.msra.mxu1 %v6080_v46  ;;  %v6068_v9 = vor.u32 %v6717_v62, %v6065_v0  ;;  %v6636_v46 = vld [vmem:[#allocation8 + $0x2f4] sm:$0xf0]  ;;  %v5620_v62 = vor.u32 %v6605_v47, %v5617_v48  ;;  %v6701_v0 = vld [vmem:[#allocation8 + $0x504] sm:$0xf]  ;;  %v5793_v48 = vld [vmem:[#allocation8 + $0x370] sm:$0xf0] }
 0x17d   :  { %3620 = vmatpush.bf16.msra.mxu2 %v5380_v53  ;;  %v6649_v47 = vld [vmem:[#allocation8 + $0x364] sm:$0xf] }
 0x17e   :  { %3633 = vmatpush.bf16.msra.mxu3 %v5508_v11  ;;  %v5668_v11 = vor.u32 %v6617_v2, %v5665_v4  ;;  %v6001_v2 = vld [vmem:[#allocation8 + $0x510] sm:$0xf0]  ;;  %v6665_v4 = vld [vmem:[#allocation8 + $0x3e4] sm:$0xf] }
 0x17f   :  { %3595 = vmatpush.bf16.msra.mxu0 %v5872_v16  ;;  %v7173_v53 = vpop.f32.mrf.mxu0  ;;  %v6613_v16 = vld [vmem:[#allocation8 + $0x244] sm:$0xf]  ;;  %v6004_v49 = vor.u32 %v6701_v0, %v6001_v2  ;;  %v6612_v0 = vld [vmem:[#allocation8 + $0x234] sm:$0xf0]  ;;  %v5479_v2 = vld [vmem:[#allocation8 + $0xe8] sm:$0xf] }
 0x180   :  { %v7175_v59 = vpop.f32.mrf.mxu1  ;;  %3604 = vmatpush.bf16.msra.mxu1 %v6064_v61  ;;  %v5652_v18 = vor.u32 %v6613_v16, %v5649_v17  ;;  %v2216_v19 = vadd.f32 %v7173_v53, %v425_v34  ;;  %v5863_v53 = vld [vmem:[#allocation8 + $0x3e8] sm:$0xf]  ;;  %v5841_v16 = vld [vmem:[#allocation8 + $0x3d0] sm:$0xf0]  ;;  %v6628_v17 = vld [vmem:[#allocation8 + $0x2b4] sm:$0xf0] }
 0x181   :  { %3621 = vmatpush.bf16.msra.mxu2 %v5364_v63  ;;  %v6715_v63 = vld [vmem:[#allocation8 + $0x56c] sm:$0xf0] }
 0x182   :  { %3634 = vmatpush.bf16.msra.mxu3 %v5492_v29  ;;  %v6048_v12 = vor.u32 %v6715_v63, %v6047_v10  ;;  %v5889_v29 = vld [vmem:[#allocation8 + $0x430] sm:$0xf0]  ;;  %v2229_v10 = vadd.f32 %v7175_v59, %v2216_v19  ;;  %v5860_v63 = vor.u32 %v6665_v4, %v5857_v8  ;;  %v6616_v19 = vld [vmem:[#allocation8 + $0x254] sm:$0xf0] }
 0x183   :  { %3640 = vmatpush.bf16.msrb.mxu0 %v5732_v24  ;;  %v6673_v24 = vld [vmem:[#allocation8 + $0x424] sm:$0xf]  ;;  %v6572_v4 = vld [vmem:[#allocation8 + $0xf4] sm:$0xf0] }
 0x184   :  { %3622 = vmatmul.bf16.vlgmr.msra.gmra.mxu2 %v7160_v55  ;;  %3605 = vmatpush.bf16.msra.mxu1 %v6048_v12  ;;  %v5892_v35 = vor.u32 %v6673_v24, %v5889_v29  ;;  %v5703_v12 = vld [vmem:[#allocation8 + $0x2a8] sm:$0xf]  ;;  %v6664_v24 = vld [vmem:[#allocation8 + $0x3d4] sm:$0xf0]  ;;  %v6657_v29 = vld [vmem:[#allocation8 + $0x3a4] sm:$0xf] }
 0x185   :  { %3666 = vmatpush.bf16.msrb.mxu2 %v5988_v14  ;;  %v6713_v14 = vld [vmem:[#allocation8 + $0x564] sm:$0xf]  ;;  %3635 = vmatmul.bf16.vlgmr.msra.gmra.mxu3 %v7162_v57  ;;  %v5704_v59 = vor.u32 %v6628_v17, %v5703_v12  ;;  %v5480_v12 = vor.u32 %v6572_v4, %v5479_v2  ;;  %v6554_v2 = vld [vmem:[#allocation8 + $0x6c] sm:$0xf]  ;;  %v5417_v4 = vld [vmem:[#allocation8 + $0x78] sm:$0xf0] }
 0x186   :  { %3679 = vmatpush.bf16.msrb.mxu3 %v6116_v31  ;;  %v6052_v27 = vor.u32 %v6713_v14, %v6049_v15  ;;  %v6032_v31 = vor.u32 %v6711_v1, %v6031_v28  ;;  %v6661_v15 = vld [vmem:[#allocation8 + $0x3c4] sm:$0xf]  ;;  %v5687_v28 = vld [vmem:[#allocation8 + $0x288] sm:$0xf] }
 0x187   :  { %3641 = vmatpush.bf16.msrb.mxu0 %v5716_v33  ;;  %v7178_v21 = vpop.f32.mrf.mxu2  ;;  %v2217_v51 = vpop.f32.mrf.mxu0  ;;  %v5633_v33 = vld [vmem:[#allocation8 + $0x230] sm:$0xf0] }
 0x188   :  { %v7180_v25 = vpop.f32.mrf.mxu3  ;;  %v5636_v42 = vor.u32 %v6609_v6, %v5633_v33  ;;  %3606 = vmatpush.bf16.msra.mxu1 %v6032_v31  ;;  %v2242_v51 = vadd.f32 %v7178_v21, %v2229_v10  ;;  %v5831_v31 = vld [vmem:[#allocation8 + $0x3a8] sm:$0xf]  ;;  %v6648_v10 = vld [vmem:[#allocation8 + $0x354] sm:$0xf0] }
 0x189   :  { %3667 = vmatpush.bf16.msrb.mxu2 %v5972_v30  ;;  %v2230_v30 = vpop.f32.mrf.mxu1  ;;  %v5671_v21 = vld [vmem:[#allocation8 + $0x268] sm:$0xf]  ;;  %v5832_v34 = vor.u32 %v6660_v20, %v5831_v31  ;;  %v6637_v20 = vld [vmem:[#allocation8 + $0x304] sm:$0xf] }
 0x18a   :  { %3680 = vmatpush.bf16.msrb.mxu3 %v6100_v40  ;;  %v5735_v40 = vld [vmem:[#allocation8 + $0x2e8] sm:$0xf]  ;;  %v5825_v30 = vld [vmem:[#allocation8 + $0x3b0] sm:$0xf0]  ;;  %v2255_v32 = vadd.f32 %v7180_v25, %v2242_v51  ;;  %v6570_v51 = vld [vmem:[#allocation8 + $0xec] sm:$0xf] }
 0x18b   :  { %3642 = vmatpush.bf16.msrb.mxu0 %v5700_v45  ;;  %v6017_v45 = vld [vmem:[#allocation8 + $0x530] sm:$0xf0]  ;;  %v5736_v61 = vor.u32 %v6636_v46, %v5735_v40  ;;  %v5828_v6 = vor.u32 %v6657_v29, %v5825_v30  ;;  %v6644_v29 = vld [vmem:[#allocation8 + $0x334] sm:$0xf0] }
 0x18c   :  { %v6020_v58 = vor.u32 %v6705_v44, %v6017_v45  ;;  %v5655_v45 = vld [vmem:[#allocation8 + $0x248] sm:$0xf] }
 0x18d   :  { %3668 = vmatpush.bf16.msrb.mxu2 %v5956_v26  ;;  %v6015_v26 = vld [vmem:[#allocation8 + $0x520] sm:$0xf] }
 0x18e   :  { %3681 = vmatpush.bf16.msrb.mxu3 %v6084_v54  ;;  %v6016_v43 = vor.u32 %v6707_v3, %v6015_v26  ;;  %v6632_v54 = vld [vmem:[#allocation8 + $0x2d4] sm:$0xf0]  ;;  %v5815_v26 = vld [vmem:[#allocation8 + $0x388] sm:$0xf] }
 0x18f   :  { %3643 = vmatpush.bf16.msrb.mxu0 %v5684_v60  ;;  %v2243_v50 = vpop.f32.mrf.mxu2  ;;  %v6703_v60 = vld [vmem:[#allocation8 + $0x50c] sm:$0xf0]  ;;  %v6656_v3 = vld [vmem:[#allocation8 + $0x394] sm:$0xf0] }
 0x190   :  { %v2256_v56 = vpop.f32.mrf.mxu3  ;;  %3607 = vmatpush.bf16.msra.mxu1 %v6016_v43  ;;  %v5816_v46 = vor.u32 %v6656_v3, %v5815_v26  ;;  %v5799_v50 = vld [vmem:[#allocation8 + $0x368] sm:$0xf]  ;;  %v6640_v3 = vld [vmem:[#allocation8 + $0x314] sm:$0xf0] }
 0x191   :  { %3669 = vmatpush.bf16.msrb.mxu2 %v5940_v22  ;;  %v5876_v22 = vor.u32 %v6669_v36, %v5873_v38  ;;  %v6653_v36 = vld [vmem:[#allocation8 + $0x384] sm:$0xf]  ;;  %v5751_v26 = vld [vmem:[#allocation8 + $0x308] sm:$0xf] }
 0x192   :  { %3682 = vmatpush.bf16.msrb.mxu3 %v6068_v9  ;;  %v6668_v9 = vld [vmem:[#allocation8 + $0x3f4] sm:$0xf0] }
 0x193   :  { %3644 = vmatpush.bf16.msrb.mxu0 %v5668_v11  ;;  %v5720_v11 = vor.u32 %v6632_v54, %v5719_v52  ;;  %v5864_v14 = vor.u32 %v6668_v9, %v5863_v53  ;;  %v5796_v52 = vor.u32 %v6649_v47, %v5793_v48  ;;  %v5656_v54 = vor.u32 %v6616_v19, %v5655_v45  ;;  %v5783_v9 = vld [vmem:[#allocation8 + $0x348] sm:$0xf]  ;;  %v6562_v45 = vld [vmem:[#allocation8 + $0xac] sm:$0xf] }
 0x194   :  { %v426_v47 = vperm.slane %v7155_v41, 5 }
 0x195   :  { %3670 = vmatpush.bf16.msrb.mxu2 %v5924_v5  ;;  %v6000_v5 = vor.u32 %v6703_v60, %v5999_v7  ;;  %v6645_v60 = vld [vmem:[#allocation8 + $0x344] sm:$0xf] }
 0x196   :  { %3683 = vmatpush.bf16.msrb.mxu3 %v6052_v27  ;;  %v5844_v27 = vor.u32 %v6661_v15, %v5841_v16  ;;  %v6641_v15 = vld [vmem:[#allocation8 + $0x324] sm:$0xf]  ;;  %v5761_v16 = vld [vmem:[#allocation8 + $0x330] sm:$0xf0] }
 0x197   :  { %3645 = vmatpush.bf16.msrb.mxu0 %v5652_v18  ;;  %3608 = vmatpush.bf16.msra.mxu1 %v6000_v5  ;;  %v6624_v18 = vld [vmem:[#allocation8 + $0x294] sm:$0xf0] }
 0x198   :  { %v5688_v33 = vor.u32 %v6624_v18, %v5687_v28  ;;  %v5764_v28 = vor.u32 %v6641_v15, %v5761_v16  ;;  %v5367_v15 = vld [vmem:[#allocation8 + $0x8] sm:$0xf]  ;;  %v6544_v16 = vld [vmem:[#allocation8 + $0x14] sm:$0xf0] }
 0x199   :  { %3671 = vmatpush.bf16.msrb.mxu2 %v5908_v23  ;;  %v5847_v23 = vld [vmem:[#allocation8 + $0x3c8] sm:$0xf] }
 0x19a   :  { %3684 = vmatpush.bf16.msrb.mxu3 %v6036_v37  ;;  %v5848_v1 = vor.u32 %v6664_v24, %v5847_v23  ;;  %v6620_v37 = vld [vmem:[#allocation8 + $0x274] sm:$0xf0]  ;;  %v5463_v23 = vld [vmem:[#allocation8 + $0xc8] sm:$0xf] }
 0x19b   :  { %3646 = vmatpush.bf16.msrb.mxu0 %v5636_v42  ;;  %3653 = vmatpush.bf16.msrb.mxu1 %v5860_v63  ;;  %v5672_v25 = vor.u32 %v6620_v37, %v5671_v21  ;;  %v5623_v63 = vld [vmem:[#allocation8 + $0x208] sm:$0xf]  ;;  %v6568_v24 = vld [vmem:[#allocation8 + $0xd4] sm:$0xf0] }
 0x19c   :  { %v5464_v18 = vor.u32 %v6568_v24, %v5463_v23  ;;  %v5447_v21 = vld [vmem:[#allocation8 + $0xa8] sm:$0xf]  ;;  %v6546_v23 = vld [vmem:[#allocation8 + $0x2c] sm:$0xf] }
 0x19d   :  { %3672 = vmatpush.bf16.msrb.mxu2 %v5892_v35  ;;  %v5809_v35 = vld [vmem:[#allocation8 + $0x390] sm:$0xf0] }
 0x19e   :  { %3685 = vmatpush.bf16.msrb.mxu3 %v6020_v58  ;;  %v5812_v43 = vor.u32 %v6653_v36, %v5809_v35  ;;  %v5639_v58 = vld [vmem:[#allocation8 + $0x228] sm:$0xf]  ;;  %v6566_v36 = vld [vmem:[#allocation8 + $0xcc] sm:$0xf] }
 0x19f   :  { %3647 = vmatpush.bf16.msrb.mxu0 %v5620_v62  ;;  %3654 = vmatpush.bf16.msrb.mxu1 %v5844_v27  ;;  %v2267_v38 = vpop.f32.mrf.mxu0  ;;  %v5784_v27 = vor.u32 %v6648_v10, %v5783_v9  ;;  %v5383_v10 = vld [vmem:[#allocation8 + $0x28] sm:$0xf] }
 0x1a0   :  { %v2268_v40 = vadd.f32 %v2267_v38, %v2255_v32  ;;  %v2280_v42 = vpop.f32.mrf.mxu1  ;;  %v5745_v32 = vld [vmem:[#allocation8 + $0x310] sm:$0xf0]  ;;  %v5465_v38 = vld [vmem:[#allocation8 + $0xd8] sm:$0xf0] }
 0x1a1   :  { %3673 = vmatpush.bf16.msrb.mxu2 %v5876_v22  ;;  %v6652_v22 = vld [vmem:[#allocation8 + $0x374] sm:$0xf0]  ;;  %v5748_v37 = vor.u32 %v6637_v20, %v5745_v32 }
 0x1a2   :  { %3686 = vmatpush.bf16.msrb.mxu3 %v6004_v49  ;;  %v2281_v44 = vadd.f32 %v2280_v42, %v2268_v40  ;;  %v5800_v7 = vor.u32 %v6652_v22, %v5799_v50  ;;  %v5468_v42 = vor.u32 %v6566_v36, %v5465_v38  ;;  %v5415_v50 = vld [vmem:[#allocation8 + $0x68] sm:$0xf]  ;;  %v6556_v22 = vld [vmem:[#allocation8 + $0x74] sm:$0xf0]  ;;  %v6698_v36 = vld [vmem:[#allocation8 + $0x4ec] sm:$0xf] }
 0x1a3   :  { %3655 = vmatpush.bf16.msrb.mxu1 %v5828_v6 }
 0x1a4   :  { %6788 = vtanh.f32 %v2281_v44  ;;  %v6560_v44 = vld [vmem:[#allocation8 + $0x94] sm:$0xf0] }
 0x1a5   :  { %3718 = vmatpush.bf16.msra.mxu2 %v5736_v61  ;;  %v5777_v61 = vld [vmem:[#allocation8 + $0x350] sm:$0xf0] }
 0x1a6   :  { %3731 = vmatpush.bf16.msra.mxu3 %v5864_v14  ;;  %v5780_v53 = vor.u32 %v6645_v60, %v5777_v61  ;;  %v6608_v14 = vld [vmem:[#allocation8 + $0x214] sm:$0xf0]  ;;  %v5399_v61 = vld [vmem:[#allocation8 + $0x48] sm:$0xf] }
 0x1a7   :  { %3656 = vmatpush.bf16.msrb.mxu1 %v5812_v43  ;;  %v7187_v56 = vpop.f32.mrf.mxu2  ;;  %v2269_v5 = vpop.f32.mrf.mxu0  ;;  %v5624_v30 = vor.u32 %v6608_v14, %v5623_v63  ;;  %v5431_v43 = vld [vmem:[#allocation8 + $0x88] sm:$0xf]  ;;  %v6548_v63 = vld [vmem:[#allocation8 + $0x34] sm:$0xf0] }
 0x1a8   :  { %v7189_v62 = vpop.f32.mrf.mxu3  ;;  %v2282_v8 = vpop.f32.mrf.mxu1  ;;  %v5432_v48 = vor.u32 %v6560_v44, %v5431_v43  ;;  %v6604_v43 = vld [vmem:[#allocation8 + $0x1f4] sm:$0xf0]  ;;  %v6602_v44 = vld [vmem:[#allocation8 + $0x1ec] sm:$0xf] }
 0x1a9   :  { %3719 = vmatpush.bf16.msra.mxu2 %v5720_v11  ;;  %v5640_v11 = vor.u32 %v6612_v0, %v5639_v58  ;;  %v2294_v58 = vadd.f32 %v7187_v56, %v426_v47  ;;  %v6552_v0 = vld [vmem:[#allocation8 + $0x54] sm:$0xf0]  ;;  %v5420_v56 = vor.u32 %v6554_v2, %v5417_v4  ;;  %v6694_v47 = vld [vmem:[#allocation8 + $0x4cc] sm:$0xf]  ;;  %v5943_v2 = vld [vmem:[#allocation8 + $0x488] sm:$0xf] }
 0x1aa   :  { %3732 = vmatpush.bf16.msra.mxu3 %v5848_v1  ;;  %v6789_v49 = vpop.eup %6788  ;;  %v5767_v1 = vld [vmem:[#allocation8 + $0x328] sm:$0xf]  ;;  %v6688_v4 = vld [vmem:[#allocation8 + $0x494] sm:$0xf0] }
 0x1ab   :  { %3657 = vmatpush.bf16.msrb.mxu1 %v5796_v52  ;;  %v7191_v17 = vpack.c.bf16 %v6789_v49, %v6789_v49  ;;  %v5768_v35 = vor.u32 %v6644_v29, %v5767_v1  ;;  %v6558_v52 = vld [vmem:[#allocation8 + $0x8c] sm:$0xf]  ;;  %v2307_v41 = vadd.f32 %v7189_v62, %v2294_v58  ;;  %v5591_v58 = vld [vmem:[#allocation8 + $0x1c8] sm:$0xf] }
 0x1ac   :  { %v6550_v49 = vld [vmem:[#allocation8 + $0x4c] sm:$0xf] }
 0x1ad   :  { %3720 = vmatpush.bf16.msra.mxu2 %v5704_v59  ;;  %v5481_v59 = vld [vmem:[#allocation8 + $0xf8] sm:$0xf0]  ;;  %3596 = vmatmul.bf16.vlgmr.msra.gmra.mxu0 %v7191_v17 }
 0x1ae   :  { %3733 = vmatpush.bf16.msra.mxu3 %v5832_v34  ;;  %3674 = vmatmul.bf16.vlgmr.msrb.gmra.mxu2 %v7191_v17  ;;  %v5484_v6 = vor.u32 %v6570_v51, %v5481_v59  ;;  %v6564_v34 = vld [vmem:[#allocation8 + $0xb4] sm:$0xf0]  ;;  %v5991_v59 = vld [vmem:[#allocation8 + $0x4e8] sm:$0xf] }
 0x1af   :  { %3658 = vmatpush.bf16.msrb.mxu1 %v5780_v53  ;;  %3692 = vmatpush.bf16.msra.mxu0 %v5480_v12  ;;  %v2295_v31 = vpop.f32.mrf.mxu2  ;;  %v5448_v40 = vor.u32 %v6564_v34, %v5447_v21  ;;  %v5400_v53 = vor.u32 %v6552_v0, %v5399_v61  ;;  %v5384_v12 = vor.u32 %v6548_v63, %v5383_v10  ;;  %v5975_v21 = vld [vmem:[#allocation8 + $0x4c8] sm:$0xf]  ;;  %v6696_v34 = vld [vmem:[#allocation8 + $0x4d4] sm:$0xf0]  ;;  %v5593_v0 = vld [vmem:[#allocation8 + $0x1d8] sm:$0xf0] }
 0x1b0   :  { %v6596_v10 = vld [vmem:[#allocation8 + $0x1b4] sm:$0xf0]  ;;  %v6594_v63 = vld [vmem:[#allocation8 + $0x1ac] sm:$0xf] }
 0x1b1   :  { %3721 = vmatpush.bf16.msra.mxu2 %v5688_v33  ;;  %v2308_v33 = vpop.f32.mrf.mxu3 }
 0x1b2   :  { %3734 = vmatpush.bf16.msra.mxu3 %v5816_v46  ;;  %v5449_v46 = vld [vmem:[#allocation8 + $0xb8] sm:$0xf0] }
 0x1b3   :  { %3659 = vmatpush.bf16.msrb.mxu1 %v5764_v28  ;;  %3693 = vmatpush.bf16.msra.mxu0 %v5464_v18  ;;  %v5452_v19 = vor.u32 %v6562_v45, %v5449_v46  ;;  %v6700_v28 = vld [vmem:[#allocation8 + $0x4f4] sm:$0xf0]  ;;  %v5368_v18 = vor.u32 %v6544_v16, %v5367_v15  ;;  %v5369_v33 = vld [vmem:[#allocation8 + $0x18] sm:$0xf0]  ;;  %v5959_v45 = vld [vmem:[#allocation8 + $0x4a8] sm:$0xf] }
 0x1b4   :  { %v5992_v32 = vor.u32 %v6700_v28, %v5991_v59  ;;  %v6692_v46 = vld [vmem:[#allocation8 + $0x4b4] sm:$0xf0]  ;;  %v6686_v15 = vld [vmem:[#allocation8 + $0x48c] sm:$0xf]  ;;  %v5945_v16 = vld [vmem:[#allocation8 + $0x498] sm:$0xf0] }
 0x1b5   :  { %3722 = vmatpush.bf16.msra.mxu2 %v5672_v25  ;;  %v5752_v25 = vor.u32 %v6640_v3, %v5751_v26  ;;  %v6592_v59 = vld [vmem:[#allocation8 + $0x194] sm:$0xf0]  ;;  %v6590_v28 = vld [vmem:[#allocation8 + $0x18c] sm:$0xf] }
 0x1b6   :  { %3735 = vmatpush.bf16.msra.mxu3 %v5800_v7  ;;  %v5416_v7 = vor.u32 %v6556_v22, %v5415_v50 }
 0x1b7   :  { %3660 = vmatpush.bf16.msrb.mxu1 %v5748_v37  ;;  %3694 = vmatpush.bf16.msra.mxu0 %v5448_v40  ;;  %v5976_v37 = vor.u32 %v6696_v34, %v5975_v21 }
 0x1b9   :  { %3723 = vmatpush.bf16.msra.mxu2 %v5656_v54  ;;  %v5433_v54 = vld [vmem:[#allocation8 + $0x98] sm:$0xf0] }
 0x1ba   :  { %3736 = vmatpush.bf16.msra.mxu3 %v5784_v27  ;;  %v5436_v60 = vor.u32 %v6558_v52, %v5433_v54  ;;  %v5385_v27 = vld [vmem:[#allocation8 + $0x38] sm:$0xf0]  ;;  %v5960_v54 = vor.u32 %v6692_v46, %v5959_v45  ;;  %v5527_v46 = vld [vmem:[#allocation8 + $0x148] sm:$0xf] }
 0x1bb   :  { %3695 = vmatpush.bf16.msra.mxu0 %v5432_v48  ;;  %v5388_v20 = vor.u32 %v6546_v23, %v5385_v27  ;;  %v5977_v48 = vld [vmem:[#allocation8 + $0x4d8] sm:$0xf0]  ;;  %v5559_v27 = vld [vmem:[#allocation8 + $0x188] sm:$0xf] }
 0x1bc   :  { %v5980_v61 = vor.u32 %v6694_v47, %v5977_v48  ;;  %v5560_v21 = vor.u32 %v6592_v59, %v5559_v27  ;;  %v5495_v27 = vld [vmem:[#allocation8 + $0x108] sm:$0xf]  ;;  %v6576_v59 = vld [vmem:[#allocation8 + $0x114] sm:$0xf0] }
 0x1bd   :  { %3724 = vmatpush.bf16.msra.mxu2 %v5640_v11  ;;  %3648 = vmatmul.bf16.vlgmr.msrb.gmra.mxu0 %v7158_v39  ;;  %v5401_v11 = vld [vmem:[#allocation8 + $0x58] sm:$0xf0] }
 0x1be   :  { %3737 = vmatpush.bf16.msra.mxu3 %v5768_v35  ;;  %v5404_v62 = vor.u32 %v6550_v49, %v5401_v11  ;;  %v5993_v35 = vld [vmem:[#allocation8 + $0x4f8] sm:$0xf0]  ;;  %v7206_v49 = vld [vmem:[#allocation10] sm:$0xf] }
 0x1bf   :  { %v2319_v5 = vpop.f32.mrf.mxu0  ;;  %3696 = vmatpush.bf16.msra.mxu0 %v5416_v7  ;;  %v5996_v40 = vor.u32 %v6698_v36, %v5993_v35  ;;  %v6600_v7 = vld [vmem:[#allocation8 + $0x1d4] sm:$0xf0]  ;;  %v5543_v35 = vld [vmem:[#allocation8 + $0x168] sm:$0xf] }
 0x1c0   :  { %v2332_v8 = vpop.f32.mrf.mxu1  ;;  %v2320_v9 = vadd.f32 %v2319_v5, %v2307_v41  ;;  %v6690_v41 = vld [vmem:[#allocation8 + $0x4ac] sm:$0xf]  ;;  %v5961_v5 = vld [vmem:[#allocation8 + $0x4b8] sm:$0xf0] }
 0x1c1   :  { %3725 = vmatpush.bf16.msra.mxu2 %v5624_v30  ;;  %v5964_v11 = vor.u32 %v6690_v41, %v5961_v5  ;;  %v6634_v41 = vld [vmem:[#allocation8 + $0x2ec] sm:$0xf]  ;;  %v5737_v5 = vld [vmem:[#allocation8 + $0x2f8] sm:$0xf0] }
 0x1c2   :  { %3738 = vmatpush.bf16.msra.mxu3 %v5752_v25  ;;  %v2333_v14 = vadd.f32 %v2332_v8, %v2320_v9  ;;  %v5609_v25 = vld [vmem:[#allocation8 + $0x1f8] sm:$0xf0]  ;;  %v5592_v8 = vor.u32 %v6600_v7, %v5591_v58  ;;  %v5879_v7 = vld [vmem:[#allocation8 + $0x408] sm:$0xf] }
 0x1c3   :  { %3697 = vmatpush.bf16.msra.mxu0 %v5400_v53  ;;  %v5612_v52 = vor.u32 %v6602_v44, %v5609_v25  ;;  %v5575_v53 = vld [vmem:[#allocation8 + $0x1a8] sm:$0xf]  ;;  %v6678_v44 = vld [vmem:[#allocation8 + $0x44c] sm:$0xf]  ;;  %v5913_v25 = vld [vmem:[#allocation8 + $0x458] sm:$0xf0] }
 0x1c4   :  { %3726 = vmatmul.bf16.vlgmr.msra.gmra.mxu2 %v7158_v39  ;;  %v5576_v23 = vor.u32 %v6596_v10, %v5575_v53  ;;  %v5916_v58 = vor.u32 %v6678_v44, %v5913_v25  ;;  %v5511_v10 = vld [vmem:[#allocation8 + $0x128] sm:$0xf]  ;;  %v5689_v44 = vld [vmem:[#allocation8 + $0x298] sm:$0xf0] }
 0x1c5   :  { %3770 = vmatpush.bf16.msrb.mxu2 %v5484_v6  ;;  %v6542_v6 = vld [vmem:[#allocation8 + $0xc] sm:$0xf] }
 0x1c6   :  { %v5372_v38 = vor.u32 %v6542_v6, %v5369_v33 }
 0x1c7   :  { %v2345_v24 = vpop.f32.mrf.mxu2  ;;  %v2321_v29 = vpop.f32.mrf.mxu0  ;;  %3698 = vmatpush.bf16.msra.mxu0 %v5384_v12  ;;  %v5577_v12 = vld [vmem:[#allocation8 + $0x1b8] sm:$0xf0] }
 0x1c8   :  { %v2358_v51 = vpop.f32.mrf.mxu3  ;;  %v2346_v1 = vadd.f32 %v2345_v24, %v2333_v14  ;;  %v2334_v30 = vpop.f32.mrf.mxu1  ;;  %v5927_v14 = vld [vmem:[#allocation8 + $0x468] sm:$0xf]  ;;  %v5580_v24 = vor.u32 %v6594_v63, %v5577_v12  ;;  %v5561_v29 = vld [vmem:[#allocation8 + $0x198] sm:$0xf0]  ;;  %v6580_v63 = vld [vmem:[#allocation8 + $0x134] sm:$0xf0]  ;;  %v5740_v12 = vor.u32 %v6634_v41, %v5737_v5 }
 0x1c9   :  { %3771 = vmatpush.bf16.msrb.mxu2 %v5468_v42  ;;  %v5607_v42 = vld [vmem:[#allocation8 + $0x1e8] sm:$0xf]  ;;  %v5564_v34 = vor.u32 %v6590_v28, %v5561_v29  ;;  %v6574_v28 = vld [vmem:[#allocation8 + $0x10c] sm:$0xf]  ;;  %v5657_v5 = vld [vmem:[#allocation8 + $0x258] sm:$0xf0] }
 0x1ca   :  { %v2359_v31 = vadd.f32 %v2358_v51, %v2346_v1  ;;  %v5608_v50 = vor.u32 %v6604_v43, %v5607_v42  ;;  %v5948_v1 = vor.u32 %v6686_v15, %v5945_v16  ;;  %v5911_v30 = vld [vmem:[#allocation8 + $0x448] sm:$0xf]  ;;  %v6676_v43 = vld [vmem:[#allocation8 + $0x434] sm:$0xf0]  ;;  %v6670_v15 = vld [vmem:[#allocation8 + $0x40c] sm:$0xf] }
 0x1cb   :  { %3699 = vmatpush.bf16.msra.mxu0 %v5368_v18  ;;  %v6680_v18 = vld [vmem:[#allocation8 + $0x454] sm:$0xf0]  ;;  %v5895_v42 = vld [vmem:[#allocation8 + $0x428] sm:$0xf]  ;;  %v5881_v16 = vld [vmem:[#allocation8 + $0x418] sm:$0xf0] }
 0x1cc   :  { %6790 = vtanh.f32 %v2359_v31  ;;  %v5912_v36 = vor.u32 %v6680_v18, %v5911_v30  ;;  %v5896_v48 = vor.u32 %v6676_v43, %v5895_v42  ;;  %v5884_v29 = vor.u32 %v6670_v15, %v5881_v16  ;;  %v5497_v18 = vld [vmem:[#allocation8 + $0x118] sm:$0xf0]  ;;  %v6622_v43 = vld [vmem:[#allocation8 + $0x28c] sm:$0xf] }
 0x1cd   :  { %3772 = vmatpush.bf16.msrb.mxu2 %v5452_v19  ;;  %v6105_v42 = vld [vmem:[#allocation8 + $0x5d8] sm:$0xf0]  ;;  %v6614_v41 = vld [vmem:[#allocation8 + $0x24c] sm:$0xf] }
 0x1ce   :  { %3700 = vmatmul.bf16.vlgmr.msra.gmra.mxu0 %v7160_v55 }
 0x1cf   :  { %3744 = vmatpush.bf16.msrb.mxu0 %v5992_v32  ;;  %v2347_v26 = vpop.f32.mrf.mxu2  ;;  %v5929_v32 = vld [vmem:[#allocation8 + $0x478] sm:$0xf0] }
 0x1d0   :  { %v2360_v3 = vpop.f32.mrf.mxu3 }
 0x1d1   :  { %3773 = vmatpush.bf16.msrb.mxu2 %v5436_v60  ;;  %v6598_v60 = vld [vmem:[#allocation8 + $0x1cc] sm:$0xf] }
 0x1d2   :  { %v6791_v19 = vpop.eup %6790  ;;  %v5596_v9 = vor.u32 %v6598_v60, %v5593_v0  ;;  %v6672_v60 = vld [vmem:[#allocation8 + $0x414] sm:$0xf0] }
 0x1d3   :  { %3745 = vmatpush.bf16.msrb.mxu0 %v5976_v37  ;;  %v7201_v22 = vpack.c.bf16 %v6791_v19, %v6791_v19  ;;  %v6586_v37 = vld [vmem:[#allocation8 + $0x16c] sm:$0xf]  ;;  %v6584_v19 = vld [vmem:[#allocation8 + $0x154] sm:$0xf0] }
 0x1d4   :  { %v5528_v53 = vor.u32 %v6584_v19, %v5527_v46  ;;  %v6087_v46 = vld [vmem:[#allocation8 + $0x5a8] sm:$0xf]  ;;  %v6722_v19 = vld [vmem:[#allocation8 + $0x5ac] sm:$0xf] }
 0x1d5   :  { %3774 = vmatpush.bf16.msrb.mxu2 %v5420_v56  ;;  %3609 = vmatmul.bf16.vlgmr.msra.gmra.mxu1 %v7201_v22  ;;  %v5944_v56 = vor.u32 %v6688_v4, %v5943_v2  ;;  %v5897_v4 = vld [vmem:[#allocation8 + $0x438] sm:$0xf0] }
 0x1d6   :  { %3687 = vmatmul.bf16.vlgmr.msrb.gmra.mxu3 %v7201_v22  ;;  %3705 = vmatpush.bf16.msra.mxu1 %v5608_v50  ;;  %v6582_v50 = vld [vmem:[#allocation8 + $0x14c] sm:$0xf] }
 0x1d7   :  { %3783 = vmatpush.bf16.msrb.mxu3 %v5612_v52  ;;  %3746 = vmatpush.bf16.msrb.mxu0 %v5960_v54  ;;  %v5529_v52 = vld [vmem:[#allocation8 + $0x158] sm:$0xf0] }
 0x1d9   :  { %3775 = vmatpush.bf16.msrb.mxu2 %v5404_v62  ;;  %v6684_v62 = vld [vmem:[#allocation8 + $0x474] sm:$0xf0] }
 0x1da   :  { %3706 = vmatpush.bf16.msra.mxu1 %v5592_v8  ;;  %v5928_v51 = vor.u32 %v6684_v62, %v5927_v14  ;;  %v6578_v14 = vld [vmem:[#allocation8 + $0x12c] sm:$0xf]  ;;  %v5513_v62 = vld [vmem:[#allocation8 + $0x138] sm:$0xf0] }
 0x1db   :  { %3784 = vmatpush.bf16.msrb.mxu3 %v5596_v9  ;;  %3747 = vmatpush.bf16.msrb.mxu0 %v5944_v56  ;;  %v5532_v9 = vor.u32 %v6582_v50, %v5529_v52  ;;  %v5880_v56 = vor.u32 %v6672_v60, %v5879_v7  ;;  %v6089_v50 = vld [vmem:[#allocation8 + $0x5b8] sm:$0xf0]  ;;  %v6618_v52 = vld [vmem:[#allocation8 + $0x26c] sm:$0xf]  ;;  %v6071_v60 = vld [vmem:[#allocation8 + $0x588] sm:$0xf] }
 0x1dc   :  { %v6092_v7 = vor.u32 %v6722_v19, %v6089_v50  ;;  %v6658_v50 = vld [vmem:[#allocation8 + $0x3ac] sm:$0xf] }
 0x1dd   :  { %3776 = vmatpush.bf16.msrb.mxu2 %v5388_v20  ;;  %v6682_v20 = vld [vmem:[#allocation8 + $0x46c] sm:$0xf] }
 0x1de   :  { %3707 = vmatpush.bf16.msra.mxu1 %v5576_v23  ;;  %v5932_v3 = vor.u32 %v6682_v20, %v5929_v32  ;;  %v6630_v23 = vld [vmem:[#allocation8 + $0x2cc] sm:$0xf]  ;;  %v6732_v20 = vld [vmem:[#allocation8 + $0x5f4] sm:$0xf0] }
 0x1df   :  { %v3545_v31 = vpop.f32.mrf.mxu0  ;;  %3785 = vmatpush.bf16.msrb.mxu3 %v5580_v24  ;;  %3748 = vmatpush.bf16.msrb.mxu0 %v5928_v51  ;;  %v5512_v24 = vor.u32 %v6580_v63, %v5511_v10  ;;  %v5516_v51 = vor.u32 %v6578_v14, %v5513_v62  ;;  %v6730_v32 = vld [vmem:[#allocation8 + $0x5ec] sm:$0xf]  ;;  %v5641_v62 = vld [vmem:[#allocation8 + $0x238] sm:$0xf0] }
 0x1e0   :  { %v3558_v33 = vpop.f32.mrf.mxu1  ;;  %v6714_v63 = vld [vmem:[#allocation8 + $0x56c] sm:$0xf] }
 0x1e1   :  { %3777 = vmatpush.bf16.msrb.mxu2 %v5372_v38  ;;  %v6588_v38 = vld [vmem:[#allocation8 + $0x174] sm:$0xf0]  ;;  %v6610_v14 = vld [vmem:[#allocation8 + $0x22c] sm:$0xf] }
 0x1e2   :  { %3708 = vmatpush.bf16.msra.mxu1 %v5560_v21  ;;  %v5544_v45 = vor.u32 %v6588_v38, %v5543_v35  ;;  %v6626_v21 = vld [vmem:[#allocation8 + $0x2ac] sm:$0xf] }
 0x1e3   :  { %3786 = vmatpush.bf16.msrb.mxu3 %v5564_v34  ;;  %3749 = vmatpush.bf16.msrb.mxu0 %v5912_v36  ;;  %v5705_v34 = vld [vmem:[#allocation8 + $0x2b8] sm:$0xf0]  ;;  %v5500_v36 = vor.u32 %v6574_v28, %v5497_v18  ;;  %v6606_v28 = vld [vmem:[#allocation8 + $0x20c] sm:$0xf]  ;;  %v6708_v18 = vld [vmem:[#allocation8 + $0x534] sm:$0xf0] }
 0x1e4   :  { %3778 = vmatmul.bf16.vlgmr.msrb.gmra.mxu2 %v7160_v55  ;;  %v2568_v55 = vperm.slane %v7206_v49, 0 }
 0x1e5   :  { %3822 = vmatpush.bf16.msra.mxu2 %v5996_v40  ;;  %v5545_v40 = vld [vmem:[#allocation8 + $0x178] sm:$0xf0]  ;;  %3661 = vmatmul.bf16.vlgmr.msrb.gmra.mxu1 %v7169_v13 }
 0x1e6   :  { %v3546_v6 = vadd.f32 %v3545_v31, %v2568_v55  ;;  %v5548_v47 = vor.u32 %v6586_v37, %v5545_v40  ;;  %3739 = vmatmul.bf16.vlgmr.msra.gmra.mxu3 %v7169_v13  ;;  %3709 = vmatpush.bf16.msra.mxu1 %v5544_v45  ;;  %v5721_v55 = vld [vmem:[#allocation8 + $0x2d8] sm:$0xf0]  ;;  %v6119_v31 = vld [vmem:[#allocation8 + $0x5e8] sm:$0xf]  ;;  %v6726_v40 = vld [vmem:[#allocation8 + $0x5cc] sm:$0xf] }
 0x1e7   :  { %v3571_v54 = vpop.f32.mrf.mxu2  ;;  %v3547_v2 = vpop.f32.mrf.mxu0  ;;  %3750 = vmatpush.bf16.msrb.mxu0 %v5896_v48  ;;  %v5724_v30 = vor.u32 %v6630_v23, %v5721_v55  ;;  %v6120_v35 = vor.u32 %v6732_v20, %v6119_v31  ;;  %v6103_v37 = vld [vmem:[#allocation8 + $0x5c8] sm:$0xf]  ;;  %v6108_v45 = vor.u32 %v6726_v40, %v6105_v42  ;;  %v5692_v48 = vor.u32 %v6622_v43, %v5689_v44  ;;  %v6712_v55 = vld [vmem:[#allocation8 + $0x554] sm:$0xf0]  ;;  %v5865_v40 = vld [vmem:[#allocation8 + $0x3f8] sm:$0xf0] }
 0x1e8   :  { %v3559_v26 = vadd.f32 %v3558_v33, %v3546_v6  ;;  %v3560_v8 = vpop.f32.mrf.mxu1  ;;  %3787 = vmatpush.bf16.msrb.mxu3 %v5548_v47  ;;  %v6121_v6 = vld [vmem:[#allocation8 + $0x5f8] sm:$0xf0]  ;;  %v5496_v33 = vor.u32 %v6576_v59, %v5495_v27  ;;  %v6724_v47 = vld [vmem:[#allocation8 + $0x5b4] sm:$0xf0]  ;;  %v6718_v2 = vld [vmem:[#allocation8 + $0x58c] sm:$0xf] }
 0x1e9   :  { %3823 = vmatpush.bf16.msra.mxu2 %v5980_v61  ;;  %v6674_v61 = vld [vmem:[#allocation8 + $0x42c] sm:$0xf]  ;;  %v6124_v38 = vor.u32 %v6730_v32, %v6121_v6  ;;  %v6039_v23 = vld [vmem:[#allocation8 + $0x548] sm:$0xf]  ;;  %v6041_v59 = vld [vmem:[#allocation8 + $0x558] sm:$0xf0] }
 0x1ea   :  { %v7209_v0 = vadd.f32 %v3571_v54, %v3559_v26  ;;  %3710 = vmatpush.bf16.msra.mxu1 %v5528_v53  ;;  %v6728_v26 = vld [vmem:[#allocation8 + $0x5d4] sm:$0xf0]  ;;  %v5673_v54 = vld [vmem:[#allocation8 + $0x278] sm:$0xf0]  ;;  %v6710_v27 = vld [vmem:[#allocation8 + $0x54c] sm:$0xf] }
 0x1eb   :  { %3751 = vmatpush.bf16.msrb.mxu0 %v5880_v56  ;;  %v6104_v25 = vor.u32 %v6728_v26, %v6103_v37  ;;  %v5660_v56 = vor.u32 %v6614_v41, %v5657_v5  ;;  %v6706_v32 = vld [vmem:[#allocation8 + $0x52c] sm:$0xf]  ;;  %v6025_v6 = vld [vmem:[#allocation8 + $0x538] sm:$0xf0] }
 0x1ec   :  { %3788 = vmatpush.bf16.msrb.mxu3 %v5532_v9  ;;  %v6055_v9 = vld [vmem:[#allocation8 + $0x568] sm:$0xf]  ;;  %v6009_v26 = vld [vmem:[#allocation8 + $0x518] sm:$0xf0]  ;;  %v6646_v5 = vld [vmem:[#allocation8 + $0x34c] sm:$0xf] }
 0x1ed   :  { %3824 = vmatpush.bf16.msra.mxu2 %v5964_v11  ;;  %v5900_v11 = vor.u32 %v6674_v61, %v5897_v4  ;;  %v5676_v61 = vor.u32 %v6618_v52, %v5673_v54  ;;  %v6073_v4 = vld [vmem:[#allocation8 + $0x598] sm:$0xf0] }
 0x1ee   :  { %3711 = vmatpush.bf16.msra.mxu1 %v5512_v24  ;;  %3752 = vmatmul.bf16.vlgmr.msrb.gmra.mxu0 %v7191_v17  ;;  %v6076_v53 = vor.u32 %v6718_v2, %v6073_v4  ;;  %v5833_v52 = vld [vmem:[#allocation8 + $0x3b8] sm:$0xf0]  ;;  %v6739_v4 = vld [vmem:[#allocation11 + $0x30] sm:$0xff] }
 0x1ef   :  { %3796 = vmatpush.bf16.msra.mxu0 %v5740_v12  ;;  %v5836_v54 = vor.u32 %v6658_v50, %v5833_v52  ;;  %v5801_v2 = vld [vmem:[#allocation8 + $0x378] sm:$0xf0] }
 0x1f0   :  { %3789 = vmatpush.bf16.msrb.mxu3 %v5516_v51  ;;  %v5644_v51 = vor.u32 %v6610_v14, %v5641_v62  ;;  %v6736_v14 = vld [vmem:[#allocation11 + $0x18] sm:$0xff] }
 0x1f1   :  { %3825 = vmatpush.bf16.msra.mxu2 %v5948_v1  ;;  %v3573_v1 = vpop.f32.mrf.mxu2  ;;  %v6752_v50 = vld [vmem:[#allocation11 + $0x98] sm:$0xff] }
 0x1f2   :  { %3712 = vmatpush.bf16.msra.mxu1 %v5496_v33  ;;  %v5625_v1 = vld [vmem:[#allocation8 + $0x218] sm:$0xf0]  ;;  %v2569_v33 = vperm.slane %v7206_v49, 1 }
 0x1f3   :  { %3797 = vmatpush.bf16.msra.mxu0 %v5724_v30  ;;  %v6023_v30 = vld [vmem:[#allocation8 + $0x528] sm:$0xf]  ;;  %v5628_v31 = vor.u32 %v6606_v28, %v5625_v1  ;;  %v6746_v28 = vld [vmem:[#allocation11 + $0x68] sm:$0xff] }
 0x1f4   :  { %3790 = vmatpush.bf16.msrb.mxu3 %v5500_v36  ;;  %v6007_v36 = vld [vmem:[#allocation8 + $0x508] sm:$0xf] }
 0x1f5   :  { %3826 = vmatpush.bf16.msra.mxu2 %v5932_v3  ;;  %v5708_v3 = vor.u32 %v6626_v21, %v5705_v34  ;;  %3713 = vmatmul.bf16.vlgmr.msra.gmra.mxu1 %v7162_v57  ;;  %v6024_v21 = vor.u32 %v6708_v18, %v6023_v30  ;;  %v6028_v34 = vor.u32 %v6706_v32, %v6025_v6  ;;  %v6745_v1 = vld [vmem:[#allocation11 + $0x60] sm:$0xff]  ;;  %v6743_v18 = vld [vmem:[#allocation11 + $0x50] sm:$0xff] }
 0x1f6   :  { %3757 = vmatpush.bf16.msrb.mxu1 %v6120_v35  ;;  %v6704_v35 = vld [vmem:[#allocation8 + $0x514] sm:$0xf0]  ;;  %v6741_v32 = vld [vmem:[#allocation11 + $0x40] sm:$0xff] }
 0x1f7   :  { %3798 = vmatpush.bf16.msra.mxu0 %v5708_v3  ;;  %3791 = vmatmul.bf16.vlgmr.msrb.gmra.mxu3 %v7162_v57  ;;  %v6716_v57 = vld [vmem:[#allocation8 + $0x574] sm:$0xf0]  ;;  %v6666_v3 = vld [vmem:[#allocation8 + $0x3ec] sm:$0xf]  ;;  %v6008_v42 = vor.u32 %v6704_v35, %v6007_v36 }
 0x1f8   :  { %3835 = vmatpush.bf16.msra.mxu3 %v6124_v38  ;;  %v3584_v10 = vpop.f32.mrf.mxu3  ;;  %v6056_v15 = vor.u32 %v6716_v57, %v6055_v9  ;;  %v6702_v38 = vld [vmem:[#allocation8 + $0x50c] sm:$0xf]  ;;  %v5769_v57 = vld [vmem:[#allocation8 + $0x338] sm:$0xf0] }
 0x1f9   :  { %3827 = vmatpush.bf16.msra.mxu2 %v5916_v58  ;;  %v6088_v58 = vor.u32 %v6724_v47, %v6087_v46  ;;  %v7218_v12 = vadd.f32 %v3584_v10, %v7209_v0  ;;  %v6044_v0 = vor.u32 %v6710_v27, %v6041_v59  ;;  %v6012_v44 = vor.u32 %v6702_v38, %v6009_v26  ;;  %v6662_v46 = vld [vmem:[#allocation8 + $0x3cc] sm:$0xf]  ;;  %v5849_v47 = vld [vmem:[#allocation8 + $0x3d8] sm:$0xf0]  ;;  %v6733_v59 = vld [vmem:[#allocation11] sm:$0xff] }
 0x1fa   :  { %3758 = vmatpush.bf16.msrb.mxu1 %v6104_v25  ;;  %v5868_v25 = vor.u32 %v6666_v3, %v5865_v40  ;;  %v5852_v19 = vor.u32 %v6662_v46, %v5849_v47  ;;  %v6642_v9 = vld [vmem:[#allocation8 + $0x32c] sm:$0xf]  ;;  %v6753_v46 = vld [vmem:[#allocation11 + $0xa0] sm:$0xff] }
 0x1fb   :  { %3799 = vmatpush.bf16.msra.mxu0 %v5692_v48  ;;  %v5772_v10 = vor.u32 %v6642_v9, %v5769_v57  ;;  %v6763_v9 = vld [vmem:[#allocation11 + $0xf0] sm:$0xff] }
 0x1fc   :  { %3836 = vmatpush.bf16.msra.mxu3 %v6108_v45 }
 0x1fd   :  { %3828 = vmatpush.bf16.msra.mxu2 %v5900_v11  ;;  %v6057_v11 = vld [vmem:[#allocation8 + $0x578] sm:$0xf0] }
 0x1fe   :  { %3759 = vmatpush.bf16.msrb.mxu1 %v6088_v58  ;;  %v6060_v16 = vor.u32 %v6714_v63, %v6057_v11  ;;  %v6654_v58 = vld [vmem:[#allocation8 + $0x38c] sm:$0xf]  ;;  %v5753_v11 = vld [vmem:[#allocation8 + $0x318] sm:$0xf0] }
 0x1ff   :  { %3800 = vmatpush.bf16.msra.mxu0 %v5676_v61  ;;  %v6650_v61 = vld [vmem:[#allocation8 + $0x36c] sm:$0xf] }
 0x200   :  { %3837 = vmatpush.bf16.msra.mxu3 %v6092_v7  ;;  %v3586_v20 = vpop.f32.mrf.mxu3  ;;  %v5817_v7 = vld [vmem:[#allocation8 + $0x398] sm:$0xf0]  ;;  %v5804_v41 = vor.u32 %v6650_v61, %v5801_v2  ;;  %v6638_v63 = vld [vmem:[#allocation8 + $0x30c] sm:$0xf] }
 0x201   :  { %3829 = vmatpush.bf16.msra.mxu2 %v5884_v29  ;;  %v6040_v29 = vor.u32 %v6712_v55, %v6039_v23  ;;  %v5756_v62 = vor.u32 %v6638_v63, %v5753_v11  ;;  %v6734_v55 = vld [vmem:[#allocation11 + $0x8] sm:$0xff] }
 0x202   :  { %v6742_v20 = vld [vmem:[#allocation11 + $0x48] sm:$0xff] }
 0x203   :  { %3801 = vmatpush.bf16.msra.mxu0 %v5660_v56  ;;  %v6737_v56 = vld [vmem:[#allocation11 + $0x20] sm:$0xff]  ;;  %v6750_v2 = vld [vmem:[#allocation11 + $0x88] sm:$0xff] }
 0x204   :  { %3830 = vmatmul.bf16.vlgmr.msra.gmra.mxu2 %v7191_v17  ;;  %v6720_v17 = vld [vmem:[#allocation8 + $0x594] sm:$0xf0]  ;;  %3838 = vmatpush.bf16.msra.mxu3 %v6076_v53  ;;  %v6738_v53 = vld [vmem:[#allocation11 + $0x28] sm:$0xff] }
 0x205   :  { %v6072_v8 = vor.u32 %v6720_v17, %v6071_v60  ;;  %v6740_v60 = vld [vmem:[#allocation11 + $0x38] sm:$0xff]  ;;  %v5820_v17 = vor.u32 %v6654_v58, %v5817_v7 }
 0x207   :  { %3760 = vmatpush.bf16.msrb.mxu1 %v6072_v8  ;;  %v3623_v24 = vpop.f32.mrf.mxu2  ;;  %3802 = vmatpush.bf16.msra.mxu0 %v5644_v51  ;;  %v5785_v8 = vld [vmem:[#allocation8 + $0x358] sm:$0xf0] }
 0x208   :  { %3839 = vmatpush.bf16.msra.mxu3 %v6060_v16  ;;  %v3624_v43 = vadd.f32 %v3623_v24, %v2569_v33  ;;  %v3636_v45 = vpop.f32.mrf.mxu3  ;;  %v6748_v16 = vld [vmem:[#allocation11 + $0x78] sm:$0xff]  ;;  %v6747_v24 = vld [vmem:[#allocation11 + $0x70] sm:$0xff] }
 0x20a   :  { %v7222_v48 = vadd.f32 %v3636_v45, %v3624_v43  ;;  %v6755_v43 = vld [vmem:[#allocation11 + $0xb0] sm:$0xff] }
 0x20b   :  { %3761 = vmatpush.bf16.msrb.mxu1 %v6056_v15  ;;  %3803 = vmatpush.bf16.msra.mxu0 %v5628_v31  ;;  %v6735_v15 = vld [vmem:[#allocation11 + $0x10] sm:$0xff] }
 0x20c   :  { %3840 = vmatpush.bf16.msra.mxu3 %v6044_v0  ;;  %v6744_v0 = vld [vmem:[#allocation11 + $0x58] sm:$0xff] }
 0x20e   :  { %3804 = vmatmul.bf16.vlgmr.msra.gmra.mxu0 %v7158_v39 }
 0x20f   :  { %3762 = vmatpush.bf16.msrb.mxu1 %v6040_v29  ;;  %v3625_v37 = vpop.f32.mrf.mxu2  ;;  %4116 = vmatpush.bf16.msrb.mxu0 %v6740_v60  ;;  %v6751_v60 = vld [vmem:[#allocation11 + $0x90] sm:$0xff] }
 0x210   :  { %3841 = vmatpush.bf16.msra.mxu3 %v6028_v34  ;;  %v3638_v39 = vpop.f32.mrf.mxu3  ;;  %v6756_v37 = vld [vmem:[#allocation11 + $0xb8] sm:$0xff] }
 0x211   :  { %4142 = vmatpush.bf16.msrb.mxu2 %v6756_v37 }
 0x213   :  { %3763 = vmatpush.bf16.msrb.mxu1 %v6024_v21  ;;  %4117 = vmatpush.bf16.msrb.mxu0 %v6739_v4 }
 0x214   :  { %3842 = vmatpush.bf16.msra.mxu3 %v6012_v44  ;;  %v6754_v44 = vld [vmem:[#allocation11 + $0xa8] sm:$0xff] }
 0x215   :  { %4143 = vmatpush.bf16.msrb.mxu2 %v6755_v43 }
 0x217   :  { %3764 = vmatpush.bf16.msrb.mxu1 %v6008_v42  ;;  %3843 = vmatmul.bf16.vlgmr.msra.gmra.mxu3 %v7201_v22 }
 0x218   :  { %4118 = vmatpush.bf16.msrb.mxu0 %v6738_v53  ;;  %v6764_v53 = vld [vmem:[#allocation11 + $0xf8] sm:$0xff] }
 0x219   :  { %4144 = vmatpush.bf16.msrb.mxu2 %v6754_v44  ;;  %4155 = vmatpush.bf16.msrb.mxu3 %v6764_v53  ;;  %v6779_v44 = vld [vmem:[#allocation13] ss:$0 sm:$0xff] }
 0x21a   :  { %3765 = vmatmul.bf16.vlgmr.msrb.gmra.mxu1 %v7201_v22  ;;  %v5788_v22 = vor.u32 %v6646_v5, %v5785_v8 }
 0x21b   :  { %3809 = vmatpush.bf16.msra.mxu1 %v5868_v25 }
 0x21c   :  { %4119 = vmatpush.bf16.msrb.mxu0 %v6737_v56  ;;  %v2570_v56 = vperm.slane %v7206_v49, 2 }
 0x21d   :  { %4145 = vmatpush.bf16.msrb.mxu2 %v6753_v46  ;;  %4156 = vmatpush.bf16.msrb.mxu3 %v6763_v9 }
 0x21f   :  { %3810 = vmatpush.bf16.msra.mxu1 %v5852_v19 }
 0x220   :  { %4120 = vmatpush.bf16.msrb.mxu0 %v6736_v14 }
 0x221   :  { %4146 = vmatpush.bf16.msrb.mxu2 %v6752_v50 }
 0x223   :  { %3811 = vmatpush.bf16.msra.mxu1 %v5836_v54 }
 0x224   :  { %4121 = vmatpush.bf16.msrb.mxu0 %v6735_v15 }
 0x225   :  { %4147 = vmatpush.bf16.msrb.mxu2 %v6751_v60 }
 0x227   :  { %3812 = vmatpush.bf16.msra.mxu1 %v5820_v17 }
 0x228   :  { %4122 = vmatpush.bf16.msrb.mxu0 %v6734_v55 }
 0x229   :  { %4148 = vmatpush.bf16.msrb.mxu2 %v6750_v2 }
 0x22a   :  { %v3597_v23 = vpop.f32.mrf.mxu0 }
 0x22b   :  { %3813 = vmatpush.bf16.msra.mxu1 %v5804_v41  ;;  %v3598_v21 = vadd.f32 %v3597_v23, %v7218_v12  ;;  %v6749_v41 = vld [vmem:[#allocation11 + $0x80] sm:$0xff] }
 0x22c   :  { %4123 = vmatpush.bf16.msrb.mxu0 %v6733_v59 }
 0x22d   :  { %4149 = vmatpush.bf16.msrb.mxu2 %v6749_v41 }
 0x22f   :  { %3814 = vmatpush.bf16.msra.mxu1 %v5788_v22 }
 0x231   :  { %v3675_v51 = vpop.f32.mrf.mxu2 }
 0x232   :  { %v3599_v27 = vpop.f32.mrf.mxu0 }
 0x233   :  { %3815 = vmatpush.bf16.msra.mxu1 %v5772_v10  ;;  %v6762_v10 = vld [vmem:[#allocation11 + $0xe8] sm:$0xff] }
 0x234   :  { %4157 = vmatpush.bf16.msrb.mxu3 %v6762_v10 }
 0x237   :  { %3816 = vmatpush.bf16.msra.mxu1 %v5756_v62  ;;  %v6761_v62 = vld [vmem:[#allocation11 + $0xe0] sm:$0xff] }
 0x238   :  { %4158 = vmatpush.bf16.msrb.mxu3 %v6761_v62 }
 0x239   :  { %v3677_v29 = vpop.f32.mrf.mxu2 }
 0x23a   :  { %3817 = vmatmul.bf16.vlgmr.msra.gmra.mxu1 %v7169_v13  ;;  %v3649_v30 = vpop.f32.mrf.mxu0 }
 0x23b   :  { %4129 = vmatpush.bf16.msrb.mxu1 %v6748_v16  ;;  %v3650_v45 = vadd.f32 %v3649_v30, %v7222_v48  ;;  %v6760_v16 = vld [vmem:[#allocation11 + $0xd8] sm:$0xff]  ;;  %v6757_v30 = vld [vmem:[#allocation11 + $0xc0] sm:$0xff] }
 0x23c   :  { %4159 = vmatpush.bf16.msrb.mxu3 %v6760_v16 }
 0x23f   :  { %4130 = vmatpush.bf16.msrb.mxu1 %v6747_v24 }
 0x242   :  { %v3651_v13 = vpop.f32.mrf.mxu0 }
 0x243   :  { %4131 = vmatpush.bf16.msrb.mxu1 %v6746_v28  ;;  %v6758_v28 = vld [vmem:[#allocation11 + $0xc8] sm:$0xff] }
 0x247   :  { %4132 = vmatpush.bf16.msrb.mxu1 %v6745_v1  ;;  %v7227_v31 = vpop.f32.mrf.mxu2 }
 0x24b   :  { %4133 = vmatpush.bf16.msrb.mxu1 %v6744_v0  ;;  %v3701_v33 = vpop.f32.mrf.mxu0 }
 0x24c   :  { %v3702_v11 = vadd.f32 %v3701_v33, %v2570_v56 }
 0x24f   :  { %4134 = vmatpush.bf16.msrb.mxu1 %v6743_v18  ;;  %v3729_v6 = vpop.f32.mrf.mxu2 }
 0x252   :  { %v3610_v34 = vpop.f32.mrf.mxu1 }
 0x253   :  { %4135 = vmatpush.bf16.msrb.mxu1 %v6742_v20  ;;  %v3611_v36 = vadd.f32 %v3610_v34, %v3598_v21  ;;  %v3703_v38 = vpop.f32.mrf.mxu0 }
 0x255   :  { %v3848_v35 = vmax.f32 %v3611_v36, 0.0 }
 0x257   :  { %4136 = vmatpush.bf16.msrb.mxu1 %v6741_v32  ;;  %v3852_v26 = vpack.c.bf16 %v3848_v35, %v3848_v35 }
 0x259   :  { %v3688_v3 = vpop.f32.mrf.mxu3  ;;  %4124 = vmatmul.bf16.vlgmr.msrb.gmra.mxu0 %v3852_v26 }
 0x25a   :  { %v3612_v42 = vpop.f32.mrf.mxu1 }
 0x261   :  { %v3690_v25 = vpop.f32.mrf.mxu3 }
 0x262   :  { %v3662_v47 = vpop.f32.mrf.mxu1 }
 0x263   :  { %v3663_v19 = vadd.f32 %v3662_v47, %v3650_v45 }
 0x265   :  { %v3676_v52 = vadd.f32 %v3675_v51, %v3663_v19  ;;  %v6759_v51 = vld [vmem:[#allocation11 + $0xd0] sm:$0xff] }
 0x266   :  { %4160 = vmatpush.bf16.msrb.mxu3 %v6759_v51 }
 0x267   :  { %v7230_v40 = vpop.f32.mrf.mxu2  ;;  %v3689_v54 = vadd.f32 %v3688_v3, %v3676_v52 }
 0x269   :  { %v3740_v39 = vpop.f32.mrf.mxu3  ;;  %v3849_v58 = vmax.f32 %v3689_v54, 0.0 }
 0x26a   :  { %v3664_v7 = vpop.f32.mrf.mxu1  ;;  %4161 = vmatpush.bf16.msrb.mxu3 %v6758_v28 }
 0x26b   :  { %v3853_v17 = vpack.c.bf16 %v3849_v58, %v3849_v58  ;;  %v3753_v61 = vpop.f32.mrf.mxu0 }
 0x26d   :  { %4137 = vmatmul.bf16.vlgmr.msrb.gmra.mxu1 %v3853_v17 }
 0x26e   :  { %4162 = vmatpush.bf16.msrb.mxu3 %v6757_v30 }
 0x26f   :  { %v3781_v12 = vpop.f32.mrf.mxu2 }
 0x271   :  { %v3742_v4 = vpop.f32.mrf.mxu3 }
 0x272   :  { %v3714_v48 = vpop.f32.mrf.mxu1 }
 0x273   :  { %v3755_v5 = vpop.f32.mrf.mxu0  ;;  %v3715_v15 = vadd.f32 %v3714_v48, %v3702_v11 }
 0x275   :  { %v3728_v23 = vadd.f32 %v7227_v31, %v3715_v15  ;;  %v2571_v31 = vperm.slane %v7206_v49, 3 }
 0x277   :  { %v3741_v24 = vadd.f32 %v3740_v39, %v3728_v23  ;;  %v3780_v6 = vadd.f32 %v7230_v40, %v2571_v31  ;;  %v4168_v40 = vlaneseq }
 0x279   :  { %v3754_v27 = vadd.f32 %v3753_v61, %v3741_v24  ;;  %v4169_v19 = vand.u32 127, %v4168_v40 }
 0x27a   :  { %v3792_v22 = vpop.f32.mrf.mxu3  ;;  %v3716_v57 = vpop.f32.mrf.mxu1 }
 0x27b   :  { %v3793_v33 = vadd.f32 %v3792_v22, %v3780_v6  ;;  %vm4170_vm0 = vcmp.lt.s32.totalorder %v4169_v19, 2 }
 0x282   :  { %v3794_v14 = vpop.f32.mrf.mxu3 }
 0x287   :  { %v3831_v8 = vpop.f32.mrf.mxu2 }
 0x28b   :  { %v3805_v55 = vpop.f32.mrf.mxu0 }
 0x28c   :  { %v3806_v21 = vadd.f32 %v3805_v55, %v3793_v33 }
 0x28f   :  { %v3833_v63 = vpop.f32.mrf.mxu2 }
 0x293   :  { %v3807_v29 = vpop.f32.mrf.mxu0 }
 0x297   :  { %v3766_v59 = vpop.f32.mrf.mxu1 }
 0x298   :  { %v3767_v1 = vadd.f32 %v3766_v59, %v3754_v27 }
 0x29a   :  { %v3850_v0 = vmax.f32 %v3767_v1, 0.0  ;;  %v3844_v13 = vpop.f32.mrf.mxu3 }
 0x29c   :  { %v3854_v18 = vpack.c.bf16 %v3850_v0, %v3850_v0 }
 0x29e   :  { %4150 = vmatmul.bf16.vlgmr.msrb.gmra.mxu2 %v3854_v18 }
 0x29f   :  { %v3768_v20 = vpop.f32.mrf.mxu1 }
 0x2a2   :  { %v3846_v32 = vpop.f32.mrf.mxu3 }
 0x2b7   :  { %v3818_v34 = vpop.f32.mrf.mxu1 }
 0x2b8   :  { %v3819_v36 = vadd.f32 %v3818_v34, %v3806_v21 }
 0x2ba   :  { %v3832_v35 = vadd.f32 %v3831_v8, %v3819_v36 }
 0x2bc   :  { %v3845_v38 = vadd.f32 %v3844_v13, %v3832_v35 }
 0x2be   :  { %v3851_v37 = vmax.f32 %v3845_v38, 0.0 }
 0x2bf   :  { %v3820_v26 = vpop.f32.mrf.mxu1 }
 0x2c0   :  { %v3855_v3 = vpack.c.bf16 %v3851_v37, %v3851_v37 }
 0x2c2   :  { %4163 = vmatmul.bf16.vlgmr.msrb.gmra.mxu3 %v3855_v3 }
 0x2d6   :  { %v4125_v42 = vpop.f32.mrf.mxu0 }
 0x2d7   :  { %v4126_v25 = vadd.f32 %v6779_v44, %v4125_v42 }
 0x2de   :  { %v4127_v43 = vpop.f32.mrf.mxu0 }
 0x2ea   :  { %v4138_v45 = vpop.f32.mrf.mxu1 }
 0x2eb   :  { %v4139_v12 = vadd.f32 %v4138_v45, %v4126_v25 }
 0x2f2   :  { %v4140_v46 = vpop.f32.mrf.mxu1 }
 0x321   :  { %v4151_v49 = vpop.f32.mrf.mxu2 }
 0x322   :  { %v4152_v50 = vadd.f32 %v4151_v49, %v4139_v12 }
 0x329   :  { %v4153_v47 = vpop.f32.mrf.mxu2 }
 0x345   :  { %v4164_v52 = vpop.f32.mrf.mxu3 }
 0x346   :  { %v4165_v54 = vadd.f32 %v4164_v52, %v4152_v50 }
 0x348   :  { %v4171_v39 = vsel %vm4170_vm0, %v4165_v54, -1e+30 }
 0x349   :  { %4172 = vmax.xlane.f32.xlu0 %v4171_v39 }
 0x34d   :  { %v4166_v58 = vpop.f32.mrf.mxu3 }
 0x3bc   :  { %v4173_v7 = vpop.xlane.xlu0 %4172 }
 0x3bd   :  { %v4174_v60 = vsub.f32 %v4171_v39, %v4173_v7 }
 0x3bf   :  { %v4175_v17 = vmul.f32 1.442695, %v4174_v60 }
 0x3c1   :  { %6792 = vpow2.f32 %v4175_v17 }
 0x3c7   :  { %v6793_v61 = vpop.eup %6792 }
 0x3c8   :  { %4177 = vadd.xlane.f32.xlu0 %v6793_v61 }
 0x43b   :  { %v4178_v2 = vpop.xlane.xlu0 %4177 }
 0x43c   :  { %6794 = vlog2.f32 %v4178_v2 }
 0x442   :  { %v6795_v4 = vpop.eup %6794 }
 0x443   :  { %v4180_v48 = vmul.f32 0.6931472, %v6795_v4 }
 0x445   :  { %v4181_v41 = vadd.f32 %v4180_v48, %v4173_v7 }
 0x447   :  { %v4182_v5 = vsub.f32 %v4171_v39, %v4181_v41 }
 0x449   :  { %v4183_v8 = vsel %vm4170_vm0, %v4182_v5, 0.0 }
 0x44a   :  { %4184 = vst [vmem:[#allocation14] sm:$0xff] %v4183_v8 }
 0x44b   :  { %4195 = dma.vmem_to_hbm [thread:$0]  %s4191_s6, 128, %s4193_s15, [#allocation4]  }
 0x44c   :  { %6997 = dma.done.wait [#allocation4], 128  }
 0x44d   :  { %6998 = vsyncadd [#allocation4], 4294967168 }
 0x44e   :  { %4200 = vsyncpa [#allocation3], 1 }
 0x44f   :  { %4201 = vsyncpa [#allocation6], 1 }
 0x450   :  { %4202 = vsyncpa [#allocation9], 1 }
 0x451   :  { %4203 = vsyncpa [#allocation12], 1 }
 0x452   :  { %4204 = vsyncpa [#allocation4], 1 }

</bundles_post_ra>
